<compile_context>
chip_gen: v7x
topology: tpu7x:2x2x1
jax: 0.10.0
libtpu: 0.0.40
codegen_flags: <defaults>
</compile_context>

<pallas_src>
import math

import numpy as np
import jax
import jax.numpy as jnp
from jax.experimental import pallas as pl
from jax.experimental.pallas import tpu as pltpu

NHID = 32                       # hidden width of the Net module
POOL_RATIO = 0.5
MXU_DTYPE = jnp.bfloat16        # MXU operand dtype; accumulation stays float32


# ---------------------------------------------------------------- in-kernel building blocks

def _project(x, w):
    """x @ W for a group of G graphs as ONE sublane-filled 2-D MXU matmul.

    x: (G, m, Fin) f32, w: (Fin, H) bf16 (pre-cast in HBM).  Returns (G, m, H) f32.
    The node axis is padded to a multiple of 8 so the (G, m) -> (G*m) collapse stays
    tile-aligned and the MXU sees G*m rows instead of m."""
    G, m, fin = x.shape
    h_dim = w.shape[-1]
    mp = -(-m // 8) * 8
    if mp != m:
        x = jnp.concatenate([x, jnp.zeros((G, mp - m, fin), x.dtype)], axis=1)
    y = jnp.dot(x.reshape(G * mp, fin).astype(MXU_DTYPE), w,
                preferred_element_type=jnp.float32).reshape(G, mp, h_dim)
    return y[:, :m, :] if mp != m else y


def _gcn_relu(a_bf, x, w, b_row, dinv_col):
    """relu(A_hat @ (x @ W) + b) for G graphs; A_hat applied as dinv*(A@(dinv*z)+dinv*z)."""
    xw = _project(x, w)                                       # (G, m, H) f32
    u = dinv_col * xw
    au = jnp.einsum('gij,gjh->gih', a_bf, u.astype(MXU_DTYPE),
                    preferred_element_type=jnp.float32)       # MXU, bf16 in / f32 acc
    return jnp.maximum(dinv_col * (au + u) + b_row, 0.0)


def _score_head(a32, h, ws_row, bs, dinv_row):
    """SAGPool score head GCNConv(H -> 1), kept lane-dense as (G, m).
    H->1 projection is a lane reduction; A @ v is a VPU mul + lane reduce, so the
    1-wide column never takes an MXU pass."""
    hw = jnp.sum(h * ws_row, axis=-1)                         # (G, m)  == h @ Ws
    v = dinv_row * hw
    av = jnp.sum(a32 * v[:, None, :], axis=-1)                # (G, m)  == A @ v
    return dinv_row * (av + v) + bs


def _sag_pool_readout(a_bf, h, score, k):
    """Per-graph top-k (k static), gate, filtered adjacency and [gmp|gap] readout.

    Selection = k unrolled masked-argmax steps building a one-hot matrix P (G,k,m);
    gathers become exact one-hot matmuls: x_sel = P @ h, A_sel = P @ A @ P^T.
    Returns xg (G,k,H) f32, a_sel (G,k,k) bf16, readout (G,1,2H) f32."""
    G, m, _ = h.shape
    iota = jax.lax.broadcasted_iota(jnp.int32, (G, m), 1)
    avail = score
    rows = []
    # TODO(synk): on exactly-tied scores this picks the lowest node index; torch.topk order may differ.
    for _ in range(k):
        mx = jnp.max(avail, axis=-1, keepdims=True)
        idx = jnp.min(jnp.where(avail >= mx, iota, m), axis=-1, keepdims=True)
        onehot = (iota == idx).astype(jnp.float32)
        rows.append(onehot)
        avail = jnp.where(onehot > 0.0, jnp.float32(-3.0e38), avail)
    P = jnp.stack(rows, axis=1)                                          # (G, k, m) one-hot rows
    gate = jnp.sum(P * jnp.tanh(score)[:, None, :], axis=-1,
                   keepdims=True)                                        # (G, k, 1) tanh(score[perm])
    x_sel = jnp.einsum('gkm,gmh->gkh', P, h,
                       preferred_element_type=jnp.float32)               # exact gather of h rows
    xg = x_sel * gate                                                    # x[perm] * tanh(score[perm])
    p_bf = P.astype(MXU_DTYPE)
    pa = jnp.einsum('gkm,gmj->gkj', p_bf, a_bf, preferred_element_type=jnp.float32)
    a_sel = jnp.einsum('gkj,glj->gkl', pa.astype(MXU_DTYPE), p_bf,
                       preferred_element_type=jnp.float32)               # P @ A @ P^T == filter_adj
    read = jnp.concatenate([jnp.max(xg, axis=1, keepdims=True),          # gmp
                            jnp.mean(xg, axis=1, keepdims=True)],        # gap
                           axis=-1)                                      # (G, 1, 2H)
    return xg, a_sel.astype(MXU_DTYPE), read


def _make_net_kernel(ks):
    """Whole Net.sag_encode for a group of G graphs per grid step (ks = static pool sizes)."""

    def kernel(bs_ref, a_ref, x_ref,
               w1_ref, b1_ref, ws1_ref,
               w2_ref, b2_ref, ws2_ref,
               w3_ref, b3_ref, ws3_ref,
               out_ref):
        a = a_ref[...]                                 # (G, n, n) bf16 adjacency (0/1, exact)
        x = x_ref[...]                                 # (G, n, F) f32
        layers = ((w1_ref, b1_ref, ws1_ref),
                  (w2_ref, b2_ref, ws2_ref),
                  (w3_ref, b3_ref, ws3_ref))
        read_sum = None
        # TODO(synk): assumes every graph has exactly n valid nodes; variable-size batches
        # would need a node mask applied to deg, the score (-inf) and the max/mean readout.
        for li, (w_ref, b_ref, ws_ref) in enumerate(layers):
            a32 = a.astype(jnp.float32)
            deg = jnp.sum(a32, axis=-1) + 1.0          # (G, m) degree incl. self loop
            dinv_row = jax.lax.rsqrt(deg)              # D^-1/2
            dinv_col = dinv_row[:, :, None]
            h = _gcn_relu(a, x, w_ref[...], b_ref[...], dinv_col)        # relu(GCNConv(x))
            s = _score_head(a32, h, ws_ref[...], bs_ref[li], dinv_row)   # SAGPool score
            x, a, read = _sag_pool_readout(a, h, s, ks[li])              # pool + gate + readout
            read_sum = read if read_sum is None else read_sum + read
        out_ref[...] = read_sum                        # (G, 1, 2H) == x1 + x2 + x3

    return kernel


# ---------------------------------------------------------------- wrapper

def _graphs_per_step(batch, max_group=8):
    """Largest divisor of the batch that keeps >= 2 grid steps when possible so both v7x
    TensorCores get work (on v5e/v6e the grid is a serial loop, so bigger groups are
    strictly better).  Re-derive max_group from VMEM when n grows (v7x: 64 MiB physical)."""
    divs = [d for d in range(1, batch + 1) if batch % d == 0 and d <= max_group]
    two_step = [d for d in divs if batch // d >= 2]
    return max(two_step) if two_step else max(divs)


def net_forward(params, x, a_blocks, ratio=POOL_RATIO, graphs_per_step=None):
    """Net.sag_encode: 3x (GCNConv+relu -> SAGPool -> [gmp|gap]), summed readouts.
    One fused pallas_call; the grid iterates over groups of G graphs."""
    B, n, fin = x.shape
    (W1, b1, ws1, bs1), (W2, b2, ws2, bs2), (W3, b3, ws3, bs3) = params
    H = W1.shape[1]

    ks, m = [], n
    for _ in range(3):
        m = int(math.ceil(ratio * m))                  # PyG topk: k = ceil(ratio * num_nodes)
        ks.append(m)
    ks = tuple(ks)

    G = _graphs_per_step(B) if graphs_per_step is None else graphs_per_step
    assert B % G == 0, "graphs_per_step must divide the batch"

    # HBM-side prep (once per forward, outside the grid loop): bf16 adjacency + weights
    # (exact for 0/1 adjacency, halves adjacency DMA); score-head biases packed into SMEM.
    a_bf = a_blocks.astype(MXU_DTYPE)
    bs_all = jnp.concatenate([jnp.reshape(bs1, (1,)), jnp.reshape(bs2, (1,)),
                              jnp.reshape(bs3, (1,))]).astype(jnp.float32)

    def rep2d(arr):
        return pl.BlockSpec(arr.shape, lambda g: (0, 0))   # replicated weight / bias block

    out = pl.pallas_call(
        _make_net_kernel(ks),
        grid=(B // G,),
        in_specs=[
            pl.BlockSpec(memory_space=pltpu.MemorySpace.SMEM),   # (3,) score-head biases
            pl.BlockSpec((G, n, n), lambda g: (g, 0, 0)),        # adjacency group (bf16)
            pl.BlockSpec((G, n, fin), lambda g: (g, 0, 0)),      # node-feature group
            rep2d(W1), rep2d(b1), rep2d(ws1),
            rep2d(W2), rep2d(b2), rep2d(ws2),
            rep2d(W3), rep2d(b3), rep2d(ws3),
        ],
        out_specs=pl.BlockSpec((G, 1, 2 * H), lambda g: (g, 0, 0)),
        out_shape=jax.ShapeDtypeStruct((B, 1, 2 * H), jnp.float32),
        compiler_params=pltpu.CompilerParams(
            dimension_semantics=("parallel",),           # graph groups across v7x TensorCores
            vmem_limit_bytes=32 * 1024 * 1024),          # safe on v5e/v6e/v7x at these tiles
    )(bs_all, a_bf, x,
      W1.astype(MXU_DTYPE), b1, ws1,
      W2.astype(MXU_DTYPE), b2, ws2,
      W3.astype(MXU_DTYPE), b3, ws3)
    return out[:, 0, :]


# ---------------------------------------------------------------- plain-JAX reference (same numerics)

def net_forward_ref(params, x, a_blocks, ratio=POOL_RATIO):
    a = a_blocks.astype(jnp.float32)
    reads = []
    for (W, b, ws, bs) in params:
        deg = jnp.sum(a, axis=-1, keepdims=True) + 1.0
        dinv = jax.lax.rsqrt(deg)
        xw = jnp.einsum('gmf,fh->gmh', x.astype(MXU_DTYPE), W.astype(MXU_DTYPE),
                        preferred_element_type=jnp.float32)
        u = dinv * xw
        au = jnp.einsum('gij,gjh->gih', a.astype(MXU_DTYPE), u.astype(MXU_DTYPE),
                        preferred_element_type=jnp.float32)
        h = jnp.maximum(dinv * (au + u) + b, 0.0)
        hw = jnp.sum(h * ws, axis=-1, keepdims=True)
        v = dinv * hw
        av = jnp.einsum('gij,gjo->gio', a, v)
        s = (dinv * (av + v) + bs)[..., 0]
        k = int(math.ceil(ratio * h.shape[1]))
        _, idx = jax.lax.top_k(s, k)
        h_sel = jnp.take_along_axis(h, idx[..., None], axis=1)
        s_sel = jnp.take_along_axis(s, idx, axis=1)
        a = jax.vmap(lambda ab, ii: ab[ii][:, ii])(a, idx)
        x = h_sel * jnp.tanh(s_sel)[..., None]
        reads.append(jnp.concatenate([jnp.max(x, axis=1), jnp.mean(x, axis=1)], axis=-1))
    return reads[0] + reads[1] + reads[2]


# ---------------------------------------------------------------- deterministic setup

def init_params(key, num_features, nhid):
    params = []
    fin = num_features
    for _ in range(3):
        key, k1, k2, k3, k4 = jax.random.split(key, 5)
        W = jax.random.normal(k1, (fin, nhid), jnp.float32) / math.sqrt(fin)
        b = 0.1 * jax.random.normal(k2, (1, nhid), jnp.float32)
        ws = jax.random.normal(k3, (1, nhid), jnp.float32) / math.sqrt(nhid)  # GCNConv(nhid,1).weight^T
        bs = 0.1 * jax.random.normal(k4, (1, 1), jnp.float32)
        params.append((W, b, ws, bs))
        fin = nhid
    return params


def build_ring_adj_blocks(B, n):
    """Deterministic undirected per-graph adjacency: a ring + one chord per graph."""
    A = np.zeros((B, n, n), np.float32)
    for g in range(B):
        for i in range(n):
            j = (i + 1) % n
            A[g, i, j] = A[g, j, i] = 1.0
        c0, c1 = g % n, (g + n // 2) % n
        A[g, c0, c1] = A[g, c1, c0] = 1.0
    return jnp.asarray(A)


if __name__ == "__main__":
    key = jax.random.PRNGKey(0)
    B, n_per_graph, num_features = 8, 16, 16        # 8 graphs x 16 nodes, 16 features
    kx, kp = jax.random.split(key)

    x = jax.random.normal(kx, (B, n_per_graph, num_features), jnp.float32)
    a_blocks = build_ring_adj_blocks(B, n_per_graph)
    params = init_params(kp, num_features, NHID)

    fwd = jax.jit(net_forward)
    out = jax.block_until_ready(fwd(params, x, a_blocks))

    ref = net_forward_ref(params, x, a_blocks)
    assert out.shape == (B, 2 * NHID)
    assert bool(jnp.all(jnp.isfinite(out)))
    assert bool(jnp.allclose(out, ref, rtol=5e-2, atol=5e-2))
    print("KERNEL_OK")
</pallas_src>

<mosaic_0001>
module attributes {stable_mosaic.version = 11 : i64} {
  func.func @kernel(%arg0: i32, %arg1: memref<3xf32, #tpu.memory_space<smem>>, %arg2: memref<4x16x16xbf16, #tpu.memory_space<vmem>>, %arg3: memref<4x16x16xf32, #tpu.memory_space<vmem>>, %arg4: memref<16x32xbf16, #tpu.memory_space<vmem>>, %arg5: memref<1x32xf32, #tpu.memory_space<vmem>>, %arg6: memref<1x32xf32, #tpu.memory_space<vmem>>, %arg7: memref<32x32xbf16, #tpu.memory_space<vmem>>, %arg8: memref<1x32xf32, #tpu.memory_space<vmem>>, %arg9: memref<1x32xf32, #tpu.memory_space<vmem>>, %arg10: memref<32x32xbf16, #tpu.memory_space<vmem>>, %arg11: memref<1x32xf32, #tpu.memory_space<vmem>>, %arg12: memref<1x32xf32, #tpu.memory_space<vmem>>, %arg13: memref<4x1x64xf32, #tpu.memory_space<vmem>>) attributes {dimension_semantics = [#tpu.dimension_semantics<parallel>], iteration_bounds = array<i64: 2>, scalar_prefetch = 0 : i64, scratch_operands = 0 : i64, tpu.core_type = #tpu.core_type<tc>, window_params = [{transform_indices = @transform_0, window_bounds = array<i64: 3>}, {transform_indices = @transform_1, window_bounds = array<i64: 4, 16, 16>}, {transform_indices = @transform_2, window_bounds = array<i64: 4, 16, 16>}, {pipeline_mode = #tpu.pipeline_mode<synchronous>, transform_indices = @transform_3, window_bounds = array<i64: 16, 32>}, {pipeline_mode = #tpu.pipeline_mode<synchronous>, transform_indices = @transform_4, window_bounds = array<i64: 1, 32>}, {pipeline_mode = #tpu.pipeline_mode<synchronous>, transform_indices = @transform_5, window_bounds = array<i64: 1, 32>}, {pipeline_mode = #tpu.pipeline_mode<synchronous>, transform_indices = @transform_6, window_bounds = array<i64: 32, 32>}, {pipeline_mode = #tpu.pipeline_mode<synchronous>, transform_indices = @transform_7, window_bounds = array<i64: 1, 32>}, {pipeline_mode = #tpu.pipeline_mode<synchronous>, transform_indices = @transform_8, window_bounds = array<i64: 1, 32>}, {pipeline_mode = #tpu.pipeline_mode<synchronous>, transform_indices = @transform_9, window_bounds = array<i64: 32, 32>}, {pipeline_mode = #tpu.pipeline_mode<synchronous>, transform_indices = @transform_10, window_bounds = array<i64: 1, 32>}, {pipeline_mode = #tpu.pipeline_mode<synchronous>, transform_indices = @transform_11, window_bounds = array<i64: 1, 32>}, {transform_indices = @transform_12, window_bounds = array<i64: 4, 1, 64>}]} {
    %c0 = arith.constant 0 : index
    %c0_0 = arith.constant 0 : index
    %c0_1 = arith.constant 0 : index
    %0 = vector.load %arg2[%c0, %c0_0, %c0_1] : memref<4x16x16xbf16, #tpu.memory_space<vmem>>, vector<4x16x16xbf16>
    %c0_2 = arith.constant 0 : index
    %c0_3 = arith.constant 0 : index
    %c0_4 = arith.constant 0 : index
    %1 = vector.load %arg3[%c0_2, %c0_3, %c0_4] : memref<4x16x16xf32, #tpu.memory_space<vmem>>, vector<4x16x16xf32>
    %2 = arith.extf %0 : vector<4x16x16xbf16> to vector<4x16x16xf32>
    %cst = arith.constant dense<0.000000e+00> : vector<4x16xf32>
    %3 = vector.multi_reduction <add>, %2, %cst [2] : vector<4x16x16xf32> to vector<4x16xf32>
    %cst_5 = arith.constant 1.000000e+00 : f32
    %4 = vector.broadcast %cst_5 : f32 to vector<4x16xf32>
    %5 = arith.addf %3, %4 : vector<4x16xf32>
    %6 = math.rsqrt %5 : vector<4x16xf32>
    %7 = vector.shape_cast %6 : vector<4x16xf32> to vector<4x16x1xf32>
    %c0_6 = arith.constant 0 : index
    %c0_7 = arith.constant 0 : index
    %8 = vector.load %arg4[%c0_6, %c0_7] : memref<16x32xbf16, #tpu.memory_space<vmem>>, vector<16x32xbf16>
    %c0_8 = arith.constant 0 : index
    %c0_9 = arith.constant 0 : index
    %9 = vector.load %arg5[%c0_8, %c0_9] : memref<1x32xf32, #tpu.memory_space<vmem>>, vector<1x32xf32>
    %10 = vector.shape_cast %1 : vector<4x16x16xf32> to vector<64x16xf32>
    %11 = arith.truncf %10 : vector<64x16xf32> to vector<64x16xbf16>
    %cst_10 = arith.constant dense<0.000000e+00> : vector<64x32xf32>
    %12 = tpu.matmul %11, %8, %cst_10 {dimension_numbers = #tpu.dot_dimension_numbers<[1], [0], [0], [1], [0, 0, 1, 1], [], []>} : vector<64x16xbf16>, vector<16x32xbf16>, vector<64x32xf32> -> vector<64x32xf32>
    %13 = vector.shape_cast %12 : vector<64x32xf32> to vector<4x16x32xf32>
    %14 = vector.broadcast %7 : vector<4x16x1xf32> to vector<4x16x32xf32>
    %15 = arith.mulf %14, %13 : vector<4x16x32xf32>
    %16 = arith.truncf %15 : vector<4x16x32xf32> to vector<4x16x32xbf16>
    "tpu.trace_start"() <{level = 10 : i32, message = "gij,gjh->gih"}> : () -> ()
    %cst_11 = arith.constant dense<0.000000e+00> : vector<4x16x32xf32>
    %17 = tpu.matmul %0, %16, %cst_11 {dimension_numbers = #tpu.dot_dimension_numbers<[2], [1], [1], [2], [0, 0, 0, 1, 1, 2], [0], [0]>} : vector<4x16x16xbf16>, vector<4x16x32xbf16>, vector<4x16x32xf32> -> vector<4x16x32xf32>
    "tpu.trace_stop"() : () -> ()
    %18 = arith.addf %17, %15 : vector<4x16x32xf32>
    %19 = vector.broadcast %7 : vector<4x16x1xf32> to vector<4x16x32xf32>
    %20 = arith.mulf %19, %18 : vector<4x16x32xf32>
    %21 = vector.shape_cast %9 : vector<1x32xf32> to vector<1x1x32xf32>
    %22 = vector.broadcast %21 : vector<1x1x32xf32> to vector<4x16x32xf32>
    %23 = arith.addf %20, %22 : vector<4x16x32xf32>
    %cst_12 = arith.constant 0.000000e+00 : f32
    %24 = vector.broadcast %cst_12 : f32 to vector<4x16x32xf32>
    %25 = arith.maximumf %23, %24 : vector<4x16x32xf32>
    %c0_13 = arith.constant 0 : index
    %c0_14 = arith.constant 0 : index
    %26 = vector.load %arg6[%c0_13, %c0_14] : memref<1x32xf32, #tpu.memory_space<vmem>>, vector<1x32xf32>
    %c0_15 = arith.constant 0 : index
    %27 = memref.load %arg1[%c0_15] : memref<3xf32, #tpu.memory_space<smem>>
    %28 = vector.shape_cast %26 : vector<1x32xf32> to vector<1x1x32xf32>
    %29 = vector.broadcast %28 : vector<1x1x32xf32> to vector<4x16x32xf32>
    %30 = arith.mulf %25, %29 : vector<4x16x32xf32>
    %cst_16 = arith.constant dense<0.000000e+00> : vector<4x16xf32>
    %31 = vector.multi_reduction <add>, %30, %cst_16 [2] : vector<4x16x32xf32> to vector<4x16xf32>
    %32 = arith.mulf %6, %31 : vector<4x16xf32>
    %33 = vector.shape_cast %32 : vector<4x16xf32> to vector<4x1x16xf32>
    %34 = vector.broadcast %33 : vector<4x1x16xf32> to vector<4x16x16xf32>
    %35 = arith.mulf %2, %34 : vector<4x16x16xf32>
    %cst_17 = arith.constant dense<0.000000e+00> : vector<4x16xf32>
    %36 = vector.multi_reduction <add>, %35, %cst_17 [2] : vector<4x16x16xf32> to vector<4x16xf32>
    %37 = arith.addf %36, %32 : vector<4x16xf32>
    %38 = arith.mulf %6, %37 : vector<4x16xf32>
    %39 = vector.broadcast %27 : f32 to vector<4x16xf32>
    %40 = arith.addf %38, %39 : vector<4x16xf32>
    %41 = tpu.iota {dimensions = array<i32: 1>} : vector<4x16xi32>
    %cst_18 = arith.constant dense<0xFF800000> : vector<4xf32>
    %42 = vector.multi_reduction <maximumf>, %40, %cst_18 [1] : vector<4x16xf32> to vector<4xf32>
    %43 = vector.shape_cast %42 : vector<4xf32> to vector<4x1xf32>
    %44 = vector.broadcast %43 : vector<4x1xf32> to vector<4x16xf32>
    %45 = arith.cmpf oge, %40, %44 : vector<4x16xf32>
    %c16_i32 = arith.constant 16 : i32
    %46 = vector.broadcast %c16_i32 : i32 to vector<4x16xi32>
    %47 = arith.select %45, %41, %46 : vector<4x16xi1>, vector<4x16xi32>
    %cst_19 = arith.constant dense<2147483647> : vector<4xi32>
    %48 = vector.multi_reduction <minsi>, %47, %cst_19 [1] : vector<4x16xi32> to vector<4xi32>
    %49 = vector.shape_cast %48 : vector<4xi32> to vector<4x1xi32>
    %50 = vector.broadcast %49 : vector<4x1xi32> to vector<4x16xi32>
    %51 = arith.cmpi eq, %41, %50 : vector<4x16xi32>
    %52 = arith.extui %51 : vector<4x16xi1> to vector<4x16xi32>
    %53 = arith.sitofp %52 : vector<4x16xi32> to vector<4x16xf32>
    %cst_20 = arith.constant 0.000000e+00 : f32
    %54 = vector.broadcast %cst_20 : f32 to vector<4x16xf32>
    %55 = arith.cmpf ogt, %53, %54 : vector<4x16xf32>
    %cst_21 = arith.constant -3.000000e+38 : f32
    %56 = vector.broadcast %cst_21 : f32 to vector<4x16xf32>
    %57 = arith.select %55, %56, %40 : vector<4x16xi1>, vector<4x16xf32>
    %cst_22 = arith.constant dense<0xFF800000> : vector<4xf32>
    %58 = vector.multi_reduction <maximumf>, %57, %cst_22 [1] : vector<4x16xf32> to vector<4xf32>
    %59 = vector.shape_cast %58 : vector<4xf32> to vector<4x1xf32>
    %60 = vector.broadcast %59 : vector<4x1xf32> to vector<4x16xf32>
    %61 = arith.cmpf oge, %57, %60 : vector<4x16xf32>
    %c16_i32_23 = arith.constant 16 : i32
    %62 = vector.broadcast %c16_i32_23 : i32 to vector<4x16xi32>
    %63 = arith.select %61, %41, %62 : vector<4x16xi1>, vector<4x16xi32>
    %cst_24 = arith.constant dense<2147483647> : vector<4xi32>
    %64 = vector.multi_reduction <minsi>, %63, %cst_24 [1] : vector<4x16xi32> to vector<4xi32>
    %65 = vector.shape_cast %64 : vector<4xi32> to vector<4x1xi32>
    %66 = vector.broadcast %65 : vector<4x1xi32> to vector<4x16xi32>
    %67 = arith.cmpi eq, %41, %66 : vector<4x16xi32>
    %68 = arith.extui %67 : vector<4x16xi1> to vector<4x16xi32>
    %69 = arith.sitofp %68 : vector<4x16xi32> to vector<4x16xf32>
    %cst_25 = arith.constant 0.000000e+00 : f32
    %70 = vector.broadcast %cst_25 : f32 to vector<4x16xf32>
    %71 = arith.cmpf ogt, %69, %70 : vector<4x16xf32>
    %cst_26 = arith.constant -3.000000e+38 : f32
    %72 = vector.broadcast %cst_26 : f32 to vector<4x16xf32>
    %73 = arith.select %71, %72, %57 : vector<4x16xi1>, vector<4x16xf32>
    %cst_27 = arith.constant dense<0xFF800000> : vector<4xf32>
    %74 = vector.multi_reduction <maximumf>, %73, %cst_27 [1] : vector<4x16xf32> to vector<4xf32>
    %75 = vector.shape_cast %74 : vector<4xf32> to vector<4x1xf32>
    %76 = vector.broadcast %75 : vector<4x1xf32> to vector<4x16xf32>
    %77 = arith.cmpf oge, %73, %76 : vector<4x16xf32>
    %c16_i32_28 = arith.constant 16 : i32
    %78 = vector.broadcast %c16_i32_28 : i32 to vector<4x16xi32>
    %79 = arith.select %77, %41, %78 : vector<4x16xi1>, vector<4x16xi32>
    %cst_29 = arith.constant dense<2147483647> : vector<4xi32>
    %80 = vector.multi_reduction <minsi>, %79, %cst_29 [1] : vector<4x16xi32> to vector<4xi32>
    %81 = vector.shape_cast %80 : vector<4xi32> to vector<4x1xi32>
    %82 = vector.broadcast %81 : vector<4x1xi32> to vector<4x16xi32>
    %83 = arith.cmpi eq, %41, %82 : vector<4x16xi32>
    %84 = arith.extui %83 : vector<4x16xi1> to vector<4x16xi32>
    %85 = arith.sitofp %84 : vector<4x16xi32> to vector<4x16xf32>
    %cst_30 = arith.constant 0.000000e+00 : f32
    %86 = vector.broadcast %cst_30 : f32 to vector<4x16xf32>
    %87 = arith.cmpf ogt, %85, %86 : vector<4x16xf32>
    %cst_31 = arith.constant -3.000000e+38 : f32
    %88 = vector.broadcast %cst_31 : f32 to vector<4x16xf32>
    %89 = arith.select %87, %88, %73 : vector<4x16xi1>, vector<4x16xf32>
    %cst_32 = arith.constant dense<0xFF800000> : vector<4xf32>
    %90 = vector.multi_reduction <maximumf>, %89, %cst_32 [1] : vector<4x16xf32> to vector<4xf32>
    %91 = vector.shape_cast %90 : vector<4xf32> to vector<4x1xf32>
    %92 = vector.broadcast %91 : vector<4x1xf32> to vector<4x16xf32>
    %93 = arith.cmpf oge, %89, %92 : vector<4x16xf32>
    %c16_i32_33 = arith.constant 16 : i32
    %94 = vector.broadcast %c16_i32_33 : i32 to vector<4x16xi32>
    %95 = arith.select %93, %41, %94 : vector<4x16xi1>, vector<4x16xi32>
    %cst_34 = arith.constant dense<2147483647> : vector<4xi32>
    %96 = vector.multi_reduction <minsi>, %95, %cst_34 [1] : vector<4x16xi32> to vector<4xi32>
    %97 = vector.shape_cast %96 : vector<4xi32> to vector<4x1xi32>
    %98 = vector.broadcast %97 : vector<4x1xi32> to vector<4x16xi32>
    %99 = arith.cmpi eq, %41, %98 : vector<4x16xi32>
    %100 = arith.extui %99 : vector<4x16xi1> to vector<4x16xi32>
    %101 = arith.sitofp %100 : vector<4x16xi32> to vector<4x16xf32>
    %cst_35 = arith.constant 0.000000e+00 : f32
    %102 = vector.broadcast %cst_35 : f32 to vector<4x16xf32>
    %103 = arith.cmpf ogt, %101, %102 : vector<4x16xf32>
    %cst_36 = arith.constant -3.000000e+38 : f32
    %104 = vector.broadcast %cst_36 : f32 to vector<4x16xf32>
    %105 = arith.select %103, %104, %89 : vector<4x16xi1>, vector<4x16xf32>
    %cst_37 = arith.constant dense<0xFF800000> : vector<4xf32>
    %106 = vector.multi_reduction <maximumf>, %105, %cst_37 [1] : vector<4x16xf32> to vector<4xf32>
    %107 = vector.shape_cast %106 : vector<4xf32> to vector<4x1xf32>
    %108 = vector.broadcast %107 : vector<4x1xf32> to vector<4x16xf32>
    %109 = arith.cmpf oge, %105, %108 : vector<4x16xf32>
    %c16_i32_38 = arith.constant 16 : i32
    %110 = vector.broadcast %c16_i32_38 : i32 to vector<4x16xi32>
    %111 = arith.select %109, %41, %110 : vector<4x16xi1>, vector<4x16xi32>
    %cst_39 = arith.constant dense<2147483647> : vector<4xi32>
    %112 = vector.multi_reduction <minsi>, %111, %cst_39 [1] : vector<4x16xi32> to vector<4xi32>
    %113 = vector.shape_cast %112 : vector<4xi32> to vector<4x1xi32>
    %114 = vector.broadcast %113 : vector<4x1xi32> to vector<4x16xi32>
    %115 = arith.cmpi eq, %41, %114 : vector<4x16xi32>
    %116 = arith.extui %115 : vector<4x16xi1> to vector<4x16xi32>
    %117 = arith.sitofp %116 : vector<4x16xi32> to vector<4x16xf32>
    %cst_40 = arith.constant 0.000000e+00 : f32
    %118 = vector.broadcast %cst_40 : f32 to vector<4x16xf32>
    %119 = arith.cmpf ogt, %117, %118 : vector<4x16xf32>
    %cst_41 = arith.constant -3.000000e+38 : f32
    %120 = vector.broadcast %cst_41 : f32 to vector<4x16xf32>
    %121 = arith.select %119, %120, %105 : vector<4x16xi1>, vector<4x16xf32>
    %cst_42 = arith.constant dense<0xFF800000> : vector<4xf32>
    %122 = vector.multi_reduction <maximumf>, %121, %cst_42 [1] : vector<4x16xf32> to vector<4xf32>
    %123 = vector.shape_cast %122 : vector<4xf32> to vector<4x1xf32>
    %124 = vector.broadcast %123 : vector<4x1xf32> to vector<4x16xf32>
    %125 = arith.cmpf oge, %121, %124 : vector<4x16xf32>
    %c16_i32_43 = arith.constant 16 : i32
    %126 = vector.broadcast %c16_i32_43 : i32 to vector<4x16xi32>
    %127 = arith.select %125, %41, %126 : vector<4x16xi1>, vector<4x16xi32>
    %cst_44 = arith.constant dense<2147483647> : vector<4xi32>
    %128 = vector.multi_reduction <minsi>, %127, %cst_44 [1] : vector<4x16xi32> to vector<4xi32>
    %129 = vector.shape_cast %128 : vector<4xi32> to vector<4x1xi32>
    %130 = vector.broadcast %129 : vector<4x1xi32> to vector<4x16xi32>
    %131 = arith.cmpi eq, %41, %130 : vector<4x16xi32>
    %132 = arith.extui %131 : vector<4x16xi1> to vector<4x16xi32>
    %133 = arith.sitofp %132 : vector<4x16xi32> to vector<4x16xf32>
    %cst_45 = arith.constant 0.000000e+00 : f32
    %134 = vector.broadcast %cst_45 : f32 to vector<4x16xf32>
    %135 = arith.cmpf ogt, %133, %134 : vector<4x16xf32>
    %cst_46 = arith.constant -3.000000e+38 : f32
    %136 = vector.broadcast %cst_46 : f32 to vector<4x16xf32>
    %137 = arith.select %135, %136, %121 : vector<4x16xi1>, vector<4x16xf32>
    %cst_47 = arith.constant dense<0xFF800000> : vector<4xf32>
    %138 = vector.multi_reduction <maximumf>, %137, %cst_47 [1] : vector<4x16xf32> to vector<4xf32>
    %139 = vector.shape_cast %138 : vector<4xf32> to vector<4x1xf32>
    %140 = vector.broadcast %139 : vector<4x1xf32> to vector<4x16xf32>
    %141 = arith.cmpf oge, %137, %140 : vector<4x16xf32>
    %c16_i32_48 = arith.constant 16 : i32
    %142 = vector.broadcast %c16_i32_48 : i32 to vector<4x16xi32>
    %143 = arith.select %141, %41, %142 : vector<4x16xi1>, vector<4x16xi32>
    %cst_49 = arith.constant dense<2147483647> : vector<4xi32>
    %144 = vector.multi_reduction <minsi>, %143, %cst_49 [1] : vector<4x16xi32> to vector<4xi32>
    %145 = vector.shape_cast %144 : vector<4xi32> to vector<4x1xi32>
    %146 = vector.broadcast %145 : vector<4x1xi32> to vector<4x16xi32>
    %147 = arith.cmpi eq, %41, %146 : vector<4x16xi32>
    %148 = arith.extui %147 : vector<4x16xi1> to vector<4x16xi32>
    %149 = arith.sitofp %148 : vector<4x16xi32> to vector<4x16xf32>
    %cst_50 = arith.constant 0.000000e+00 : f32
    %150 = vector.broadcast %cst_50 : f32 to vector<4x16xf32>
    %151 = arith.cmpf ogt, %149, %150 : vector<4x16xf32>
    %cst_51 = arith.constant -3.000000e+38 : f32
    %152 = vector.broadcast %cst_51 : f32 to vector<4x16xf32>
    %153 = arith.select %151, %152, %137 : vector<4x16xi1>, vector<4x16xf32>
    %cst_52 = arith.constant dense<0xFF800000> : vector<4xf32>
    %154 = vector.multi_reduction <maximumf>, %153, %cst_52 [1] : vector<4x16xf32> to vector<4xf32>
    %155 = vector.shape_cast %154 : vector<4xf32> to vector<4x1xf32>
    %156 = vector.broadcast %155 : vector<4x1xf32> to vector<4x16xf32>
    %157 = arith.cmpf oge, %153, %156 : vector<4x16xf32>
    %c16_i32_53 = arith.constant 16 : i32
    %158 = vector.broadcast %c16_i32_53 : i32 to vector<4x16xi32>
    %159 = arith.select %157, %41, %158 : vector<4x16xi1>, vector<4x16xi32>
    %cst_54 = arith.constant dense<2147483647> : vector<4xi32>
    %160 = vector.multi_reduction <minsi>, %159, %cst_54 [1] : vector<4x16xi32> to vector<4xi32>
    %161 = vector.shape_cast %160 : vector<4xi32> to vector<4x1xi32>
    %162 = vector.broadcast %161 : vector<4x1xi32> to vector<4x16xi32>
    %163 = arith.cmpi eq, %41, %162 : vector<4x16xi32>
    %164 = arith.extui %163 : vector<4x16xi1> to vector<4x16xi32>
    %165 = arith.sitofp %164 : vector<4x16xi32> to vector<4x16xf32>
    %166 = vector.shape_cast %53 : vector<4x16xf32> to vector<4x1x16xf32>
    %167 = vector.shape_cast %69 : vector<4x16xf32> to vector<4x1x16xf32>
    %168 = vector.shape_cast %85 : vector<4x16xf32> to vector<4x1x16xf32>
    %169 = vector.shape_cast %101 : vector<4x16xf32> to vector<4x1x16xf32>
    %170 = vector.shape_cast %117 : vector<4x16xf32> to vector<4x1x16xf32>
    %171 = vector.shape_cast %133 : vector<4x16xf32> to vector<4x1x16xf32>
    %172 = vector.shape_cast %149 : vector<4x16xf32> to vector<4x1x16xf32>
    %173 = vector.shape_cast %165 : vector<4x16xf32> to vector<4x1x16xf32>
    %174 = tpu.concatenate %166, %167, %168, %169, %170, %171, %172, %173 in 1 : vector<4x1x16xf32>, vector<4x1x16xf32>, vector<4x1x16xf32>, vector<4x1x16xf32>, vector<4x1x16xf32>, vector<4x1x16xf32>, vector<4x1x16xf32>, vector<4x1x16xf32> -> vector<4x8x16xf32>
    %175 = math.tanh %40 : vector<4x16xf32>
    %176 = vector.shape_cast %175 : vector<4x16xf32> to vector<4x1x16xf32>
    %177 = vector.broadcast %176 : vector<4x1x16xf32> to vector<4x8x16xf32>
    %178 = arith.mulf %174, %177 : vector<4x8x16xf32>
    %cst_55 = arith.constant dense<0.000000e+00> : vector<4x8xf32>
    %179 = vector.multi_reduction <add>, %178, %cst_55 [2] : vector<4x8x16xf32> to vector<4x8xf32>
    %180 = vector.shape_cast %179 : vector<4x8xf32> to vector<4x8x1xf32>
    "tpu.trace_start"() <{level = 10 : i32, message = "gkm,gmh->gkh"}> : () -> ()
    %cst_56 = arith.constant dense<0.000000e+00> : vector<4x8x32xf32>
    %181 = tpu.matmul %174, %25, %cst_56 {dimension_numbers = #tpu.dot_dimension_numbers<[2], [1], [1], [2], [0, 0, 0, 1, 1, 2], [0], [0]>} : vector<4x8x16xf32>, vector<4x16x32xf32>, vector<4x8x32xf32> -> vector<4x8x32xf32>
    "tpu.trace_stop"() : () -> ()
    %182 = vector.broadcast %180 : vector<4x8x1xf32> to vector<4x8x32xf32>
    %183 = arith.mulf %181, %182 : vector<4x8x32xf32>
    %184 = arith.truncf %174 : vector<4x8x16xf32> to vector<4x8x16xbf16>
    "tpu.trace_start"() <{level = 10 : i32, message = "gkm,gmj->gkj"}> : () -> ()
    %cst_57 = arith.constant dense<0.000000e+00> : vector<4x8x16xf32>
    %185 = tpu.matmul %184, %0, %cst_57 {dimension_numbers = #tpu.dot_dimension_numbers<[2], [1], [1], [2], [0, 0, 0, 1, 1, 2], [0], [0]>} : vector<4x8x16xbf16>, vector<4x16x16xbf16>, vector<4x8x16xf32> -> vector<4x8x16xf32>
    "tpu.trace_stop"() : () -> ()
    %186 = arith.truncf %185 : vector<4x8x16xf32> to vector<4x8x16xbf16>
    "tpu.trace_start"() <{level = 10 : i32, message = "gkj,glj->gkl"}> : () -> ()
    %cst_58 = arith.constant dense<0.000000e+00> : vector<4x8x8xf32>
    %187 = tpu.matmul %186, %184, %cst_58 {dimension_numbers = #tpu.dot_dimension_numbers<[2], [2], [1], [1], [0, 0, 0, 1, 1, 1], [0], [0]>} : vector<4x8x16xbf16>, vector<4x8x16xbf16>, vector<4x8x8xf32> -> vector<4x8x8xf32>
    "tpu.trace_stop"() : () -> ()
    %cst_59 = arith.constant dense<0xFF800000> : vector<4x32xf32>
    %188 = vector.multi_reduction <maximumf>, %183, %cst_59 [1] : vector<4x8x32xf32> to vector<4x32xf32>
    %189 = vector.shape_cast %188 : vector<4x32xf32> to vector<4x1x32xf32>
    %cst_60 = arith.constant dense<0.000000e+00> : vector<4x32xf32>
    %190 = vector.multi_reduction <add>, %183, %cst_60 [1] : vector<4x8x32xf32> to vector<4x32xf32>
    %191 = vector.shape_cast %190 : vector<4x32xf32> to vector<4x1x32xf32>
    %cst_61 = arith.constant 8.000000e+00 : f32
    %192 = vector.broadcast %cst_61 : f32 to vector<4x1x32xf32>
    %193 = arith.divf %191, %192 : vector<4x1x32xf32>
    %194 = tpu.concatenate %189, %193 in 2 : vector<4x1x32xf32>, vector<4x1x32xf32> -> vector<4x1x64xf32>
    %195 = arith.truncf %187 : vector<4x8x8xf32> to vector<4x8x8xbf16>
    %196 = arith.extf %195 : vector<4x8x8xbf16> to vector<4x8x8xf32>
    %cst_62 = arith.constant dense<0.000000e+00> : vector<4x8xf32>
    %197 = vector.multi_reduction <add>, %196, %cst_62 [2] : vector<4x8x8xf32> to vector<4x8xf32>
    %cst_63 = arith.constant 1.000000e+00 : f32
    %198 = vector.broadcast %cst_63 : f32 to vector<4x8xf32>
    %199 = arith.addf %197, %198 : vector<4x8xf32>
    %200 = math.rsqrt %199 : vector<4x8xf32>
    %201 = vector.shape_cast %200 : vector<4x8xf32> to vector<4x8x1xf32>
    %c0_64 = arith.constant 0 : index
    %c0_65 = arith.constant 0 : index
    %202 = vector.load %arg7[%c0_64, %c0_65] : memref<32x32xbf16, #tpu.memory_space<vmem>>, vector<32x32xbf16>
    %c0_66 = arith.constant 0 : index
    %c0_67 = arith.constant 0 : index
    %203 = vector.load %arg8[%c0_66, %c0_67] : memref<1x32xf32, #tpu.memory_space<vmem>>, vector<1x32xf32>
    %204 = vector.shape_cast %183 : vector<4x8x32xf32> to vector<32x32xf32>
    %205 = arith.truncf %204 : vector<32x32xf32> to vector<32x32xbf16>
    %cst_68 = arith.constant dense<0.000000e+00> : vector<32x32xf32>
    %206 = tpu.matmul %205, %202, %cst_68 {dimension_numbers = #tpu.dot_dimension_numbers<[1], [0], [0], [1], [0, 0, 1, 1], [], []>} : vector<32x32xbf16>, vector<32x32xbf16>, vector<32x32xf32> -> vector<32x32xf32>
    %207 = vector.shape_cast %206 : vector<32x32xf32> to vector<4x8x32xf32>
    %208 = vector.broadcast %201 : vector<4x8x1xf32> to vector<4x8x32xf32>
    %209 = arith.mulf %208, %207 : vector<4x8x32xf32>
    %210 = arith.truncf %209 : vector<4x8x32xf32> to vector<4x8x32xbf16>
    "tpu.trace_start"() <{level = 10 : i32, message = "gij,gjh->gih"}> : () -> ()
    %cst_69 = arith.constant dense<0.000000e+00> : vector<4x8x32xf32>
    %211 = tpu.matmul %195, %210, %cst_69 {dimension_numbers = #tpu.dot_dimension_numbers<[2], [1], [1], [2], [0, 0, 0, 1, 1, 2], [0], [0]>} : vector<4x8x8xbf16>, vector<4x8x32xbf16>, vector<4x8x32xf32> -> vector<4x8x32xf32>
    "tpu.trace_stop"() : () -> ()
    %212 = arith.addf %211, %209 : vector<4x8x32xf32>
    %213 = vector.broadcast %201 : vector<4x8x1xf32> to vector<4x8x32xf32>
    %214 = arith.mulf %213, %212 : vector<4x8x32xf32>
    %215 = vector.shape_cast %203 : vector<1x32xf32> to vector<1x1x32xf32>
    %216 = vector.broadcast %215 : vector<1x1x32xf32> to vector<4x8x32xf32>
    %217 = arith.addf %214, %216 : vector<4x8x32xf32>
    %cst_70 = arith.constant 0.000000e+00 : f32
    %218 = vector.broadcast %cst_70 : f32 to vector<4x8x32xf32>
    %219 = arith.maximumf %217, %218 : vector<4x8x32xf32>
    %c0_71 = arith.constant 0 : index
    %c0_72 = arith.constant 0 : index
    %220 = vector.load %arg9[%c0_71, %c0_72] : memref<1x32xf32, #tpu.memory_space<vmem>>, vector<1x32xf32>
    %c1 = arith.constant 1 : index
    %221 = memref.load %arg1[%c1] : memref<3xf32, #tpu.memory_space<smem>>
    %222 = vector.shape_cast %220 : vector<1x32xf32> to vector<1x1x32xf32>
    %223 = vector.broadcast %222 : vector<1x1x32xf32> to vector<4x8x32xf32>
    %224 = arith.mulf %219, %223 : vector<4x8x32xf32>
    %cst_73 = arith.constant dense<0.000000e+00> : vector<4x8xf32>
    %225 = vector.multi_reduction <add>, %224, %cst_73 [2] : vector<4x8x32xf32> to vector<4x8xf32>
    %226 = arith.mulf %200, %225 : vector<4x8xf32>
    %227 = vector.shape_cast %226 : vector<4x8xf32> to vector<4x1x8xf32>
    %228 = vector.broadcast %227 : vector<4x1x8xf32> to vector<4x8x8xf32>
    %229 = arith.mulf %196, %228 : vector<4x8x8xf32>
    %cst_74 = arith.constant dense<0.000000e+00> : vector<4x8xf32>
    %230 = vector.multi_reduction <add>, %229, %cst_74 [2] : vector<4x8x8xf32> to vector<4x8xf32>
    %231 = arith.addf %230, %226 : vector<4x8xf32>
    %232 = arith.mulf %200, %231 : vector<4x8xf32>
    %233 = vector.broadcast %221 : f32 to vector<4x8xf32>
    %234 = arith.addf %232, %233 : vector<4x8xf32>
    %235 = tpu.iota {dimensions = array<i32: 1>} : vector<4x8xi32>
    %cst_75 = arith.constant dense<0xFF800000> : vector<4xf32>
    %236 = vector.multi_reduction <maximumf>, %234, %cst_75 [1] : vector<4x8xf32> to vector<4xf32>
    %237 = vector.shape_cast %236 : vector<4xf32> to vector<4x1xf32>
    %238 = vector.broadcast %237 : vector<4x1xf32> to vector<4x8xf32>
    %239 = arith.cmpf oge, %234, %238 : vector<4x8xf32>
    %c8_i32 = arith.constant 8 : i32
    %240 = vector.broadcast %c8_i32 : i32 to vector<4x8xi32>
    %241 = arith.select %239, %235, %240 : vector<4x8xi1>, vector<4x8xi32>
    %cst_76 = arith.constant dense<2147483647> : vector<4xi32>
    %242 = vector.multi_reduction <minsi>, %241, %cst_76 [1] : vector<4x8xi32> to vector<4xi32>
    %243 = vector.shape_cast %242 : vector<4xi32> to vector<4x1xi32>
    %244 = vector.broadcast %243 : vector<4x1xi32> to vector<4x8xi32>
    %245 = arith.cmpi eq, %235, %244 : vector<4x8xi32>
    %246 = arith.extui %245 : vector<4x8xi1> to vector<4x8xi32>
    %247 = arith.sitofp %246 : vector<4x8xi32> to vector<4x8xf32>
    %cst_77 = arith.constant 0.000000e+00 : f32
    %248 = vector.broadcast %cst_77 : f32 to vector<4x8xf32>
    %249 = arith.cmpf ogt, %247, %248 : vector<4x8xf32>
    %cst_78 = arith.constant -3.000000e+38 : f32
    %250 = vector.broadcast %cst_78 : f32 to vector<4x8xf32>
    %251 = arith.select %249, %250, %234 : vector<4x8xi1>, vector<4x8xf32>
    %cst_79 = arith.constant dense<0xFF800000> : vector<4xf32>
    %252 = vector.multi_reduction <maximumf>, %251, %cst_79 [1] : vector<4x8xf32> to vector<4xf32>
    %253 = vector.shape_cast %252 : vector<4xf32> to vector<4x1xf32>
    %254 = vector.broadcast %253 : vector<4x1xf32> to vector<4x8xf32>
    %255 = arith.cmpf oge, %251, %254 : vector<4x8xf32>
    %c8_i32_80 = arith.constant 8 : i32
    %256 = vector.broadcast %c8_i32_80 : i32 to vector<4x8xi32>
    %257 = arith.select %255, %235, %256 : vector<4x8xi1>, vector<4x8xi32>
    %cst_81 = arith.constant dense<2147483647> : vector<4xi32>
    %258 = vector.multi_reduction <minsi>, %257, %cst_81 [1] : vector<4x8xi32> to vector<4xi32>
    %259 = vector.shape_cast %258 : vector<4xi32> to vector<4x1xi32>
    %260 = vector.broadcast %259 : vector<4x1xi32> to vector<4x8xi32>
    %261 = arith.cmpi eq, %235, %260 : vector<4x8xi32>
    %262 = arith.extui %261 : vector<4x8xi1> to vector<4x8xi32>
    %263 = arith.sitofp %262 : vector<4x8xi32> to vector<4x8xf32>
    %cst_82 = arith.constant 0.000000e+00 : f32
    %264 = vector.broadcast %cst_82 : f32 to vector<4x8xf32>
    %265 = arith.cmpf ogt, %263, %264 : vector<4x8xf32>
    %cst_83 = arith.constant -3.000000e+38 : f32
    %266 = vector.broadcast %cst_83 : f32 to vector<4x8xf32>
    %267 = arith.select %265, %266, %251 : vector<4x8xi1>, vector<4x8xf32>
    %cst_84 = arith.constant dense<0xFF800000> : vector<4xf32>
    %268 = vector.multi_reduction <maximumf>, %267, %cst_84 [1] : vector<4x8xf32> to vector<4xf32>
    %269 = vector.shape_cast %268 : vector<4xf32> to vector<4x1xf32>
    %270 = vector.broadcast %269 : vector<4x1xf32> to vector<4x8xf32>
    %271 = arith.cmpf oge, %267, %270 : vector<4x8xf32>
    %c8_i32_85 = arith.constant 8 : i32
    %272 = vector.broadcast %c8_i32_85 : i32 to vector<4x8xi32>
    %273 = arith.select %271, %235, %272 : vector<4x8xi1>, vector<4x8xi32>
    %cst_86 = arith.constant dense<2147483647> : vector<4xi32>
    %274 = vector.multi_reduction <minsi>, %273, %cst_86 [1] : vector<4x8xi32> to vector<4xi32>
    %275 = vector.shape_cast %274 : vector<4xi32> to vector<4x1xi32>
    %276 = vector.broadcast %275 : vector<4x1xi32> to vector<4x8xi32>
    %277 = arith.cmpi eq, %235, %276 : vector<4x8xi32>
    %278 = arith.extui %277 : vector<4x8xi1> to vector<4x8xi32>
    %279 = arith.sitofp %278 : vector<4x8xi32> to vector<4x8xf32>
    %cst_87 = arith.constant 0.000000e+00 : f32
    %280 = vector.broadcast %cst_87 : f32 to vector<4x8xf32>
    %281 = arith.cmpf ogt, %279, %280 : vector<4x8xf32>
    %cst_88 = arith.constant -3.000000e+38 : f32
    %282 = vector.broadcast %cst_88 : f32 to vector<4x8xf32>
    %283 = arith.select %281, %282, %267 : vector<4x8xi1>, vector<4x8xf32>
    %cst_89 = arith.constant dense<0xFF800000> : vector<4xf32>
    %284 = vector.multi_reduction <maximumf>, %283, %cst_89 [1] : vector<4x8xf32> to vector<4xf32>
    %285 = vector.shape_cast %284 : vector<4xf32> to vector<4x1xf32>
    %286 = vector.broadcast %285 : vector<4x1xf32> to vector<4x8xf32>
    %287 = arith.cmpf oge, %283, %286 : vector<4x8xf32>
    %c8_i32_90 = arith.constant 8 : i32
    %288 = vector.broadcast %c8_i32_90 : i32 to vector<4x8xi32>
    %289 = arith.select %287, %235, %288 : vector<4x8xi1>, vector<4x8xi32>
    %cst_91 = arith.constant dense<2147483647> : vector<4xi32>
    %290 = vector.multi_reduction <minsi>, %289, %cst_91 [1] : vector<4x8xi32> to vector<4xi32>
    %291 = vector.shape_cast %290 : vector<4xi32> to vector<4x1xi32>
    %292 = vector.broadcast %291 : vector<4x1xi32> to vector<4x8xi32>
    %293 = arith.cmpi eq, %235, %292 : vector<4x8xi32>
    %294 = arith.extui %293 : vector<4x8xi1> to vector<4x8xi32>
    %295 = arith.sitofp %294 : vector<4x8xi32> to vector<4x8xf32>
    %296 = vector.shape_cast %247 : vector<4x8xf32> to vector<4x1x8xf32>
    %297 = vector.shape_cast %263 : vector<4x8xf32> to vector<4x1x8xf32>
    %298 = vector.shape_cast %279 : vector<4x8xf32> to vector<4x1x8xf32>
    %299 = vector.shape_cast %295 : vector<4x8xf32> to vector<4x1x8xf32>
    %300 = tpu.concatenate %296, %297, %298, %299 in 1 : vector<4x1x8xf32>, vector<4x1x8xf32>, vector<4x1x8xf32>, vector<4x1x8xf32> -> vector<4x4x8xf32>
    %301 = math.tanh %234 : vector<4x8xf32>
    %302 = vector.shape_cast %301 : vector<4x8xf32> to vector<4x1x8xf32>
    %303 = vector.broadcast %302 : vector<4x1x8xf32> to vector<4x4x8xf32>
    %304 = arith.mulf %300, %303 : vector<4x4x8xf32>
    %cst_92 = arith.constant dense<0.000000e+00> : vector<4x4xf32>
    %305 = vector.multi_reduction <add>, %304, %cst_92 [2] : vector<4x4x8xf32> to vector<4x4xf32>
    %306 = vector.shape_cast %305 : vector<4x4xf32> to vector<4x4x1xf32>
    "tpu.trace_start"() <{level = 10 : i32, message = "gkm,gmh->gkh"}> : () -> ()
    %cst_93 = arith.constant dense<0.000000e+00> : vector<4x4x32xf32>
    %307 = tpu.matmul %300, %219, %cst_93 {dimension_numbers = #tpu.dot_dimension_numbers<[2], [1], [1], [2], [0, 0, 0, 1, 1, 2], [0], [0]>} : vector<4x4x8xf32>, vector<4x8x32xf32>, vector<4x4x32xf32> -> vector<4x4x32xf32>
    "tpu.trace_stop"() : () -> ()
    %308 = vector.broadcast %306 : vector<4x4x1xf32> to vector<4x4x32xf32>
    %309 = arith.mulf %307, %308 : vector<4x4x32xf32>
    %310 = arith.truncf %300 : vector<4x4x8xf32> to vector<4x4x8xbf16>
    "tpu.trace_start"() <{level = 10 : i32, message = "gkm,gmj->gkj"}> : () -> ()
    %cst_94 = arith.constant dense<0.000000e+00> : vector<4x4x8xf32>
    %311 = tpu.matmul %310, %195, %cst_94 {dimension_numbers = #tpu.dot_dimension_numbers<[2], [1], [1], [2], [0, 0, 0, 1, 1, 2], [0], [0]>} : vector<4x4x8xbf16>, vector<4x8x8xbf16>, vector<4x4x8xf32> -> vector<4x4x8xf32>
    "tpu.trace_stop"() : () -> ()
    %312 = arith.truncf %311 : vector<4x4x8xf32> to vector<4x4x8xbf16>
    "tpu.trace_start"() <{level = 10 : i32, message = "gkj,glj->gkl"}> : () -> ()
    %cst_95 = arith.constant dense<0.000000e+00> : vector<4x4x4xf32>
    %313 = tpu.matmul %312, %310, %cst_95 {dimension_numbers = #tpu.dot_dimension_numbers<[2], [2], [1], [1], [0, 0, 0, 1, 1, 1], [0], [0]>} : vector<4x4x8xbf16>, vector<4x4x8xbf16>, vector<4x4x4xf32> -> vector<4x4x4xf32>
    "tpu.trace_stop"() : () -> ()
    %cst_96 = arith.constant dense<0xFF800000> : vector<4x32xf32>
    %314 = vector.multi_reduction <maximumf>, %309, %cst_96 [1] : vector<4x4x32xf32> to vector<4x32xf32>
    %315 = vector.shape_cast %314 : vector<4x32xf32> to vector<4x1x32xf32>
    %cst_97 = arith.constant dense<0.000000e+00> : vector<4x32xf32>
    %316 = vector.multi_reduction <add>, %309, %cst_97 [1] : vector<4x4x32xf32> to vector<4x32xf32>
    %317 = vector.shape_cast %316 : vector<4x32xf32> to vector<4x1x32xf32>
    %cst_98 = arith.constant 4.000000e+00 : f32
    %318 = vector.broadcast %cst_98 : f32 to vector<4x1x32xf32>
    %319 = arith.divf %317, %318 : vector<4x1x32xf32>
    %320 = tpu.concatenate %315, %319 in 2 : vector<4x1x32xf32>, vector<4x1x32xf32> -> vector<4x1x64xf32>
    %321 = arith.truncf %313 : vector<4x4x4xf32> to vector<4x4x4xbf16>
    %322 = arith.addf %194, %320 : vector<4x1x64xf32>
    %323 = arith.extf %321 : vector<4x4x4xbf16> to vector<4x4x4xf32>
    %cst_99 = arith.constant dense<0.000000e+00> : vector<4x4xf32>
    %324 = vector.multi_reduction <add>, %323, %cst_99 [2] : vector<4x4x4xf32> to vector<4x4xf32>
    %cst_100 = arith.constant 1.000000e+00 : f32
    %325 = vector.broadcast %cst_100 : f32 to vector<4x4xf32>
    %326 = arith.addf %324, %325 : vector<4x4xf32>
    %327 = math.rsqrt %326 : vector<4x4xf32>
    %328 = vector.shape_cast %327 : vector<4x4xf32> to vector<4x4x1xf32>
    %c0_101 = arith.constant 0 : index
    %c0_102 = arith.constant 0 : index
    %329 = vector.load %arg10[%c0_101, %c0_102] : memref<32x32xbf16, #tpu.memory_space<vmem>>, vector<32x32xbf16>
    %c0_103 = arith.constant 0 : index
    %c0_104 = arith.constant 0 : index
    %330 = vector.load %arg11[%c0_103, %c0_104] : memref<1x32xf32, #tpu.memory_space<vmem>>, vector<1x32xf32>
    %cst_105 = arith.constant 0.000000e+00 : f32
    %331 = vector.broadcast %cst_105 : f32 to vector<4x4x32xf32>
    %332 = tpu.concatenate %309, %331 in 1 : vector<4x4x32xf32>, vector<4x4x32xf32> -> vector<4x8x32xf32>
    %333 = vector.shape_cast %332 : vector<4x8x32xf32> to vector<32x32xf32>
    %334 = arith.truncf %333 : vector<32x32xf32> to vector<32x32xbf16>
    %cst_106 = arith.constant dense<0.000000e+00> : vector<32x32xf32>
    %335 = tpu.matmul %334, %329, %cst_106 {dimension_numbers = #tpu.dot_dimension_numbers<[1], [0], [0], [1], [0, 0, 1, 1], [], []>} : vector<32x32xbf16>, vector<32x32xbf16>, vector<32x32xf32> -> vector<32x32xf32>
    %336 = vector.shape_cast %335 : vector<32x32xf32> to vector<4x8x32xf32>
    %337 = vector.extract_strided_slice %336 {offsets = [0, 0, 0], sizes = [4, 4, 32], strides = [1, 1, 1]} : vector<4x8x32xf32> to vector<4x4x32xf32>
    %338 = vector.broadcast %328 : vector<4x4x1xf32> to vector<4x4x32xf32>
    %339 = arith.mulf %338, %337 : vector<4x4x32xf32>
    %340 = arith.truncf %339 : vector<4x4x32xf32> to vector<4x4x32xbf16>
    "tpu.trace_start"() <{level = 10 : i32, message = "gij,gjh->gih"}> : () -> ()
    %cst_107 = arith.constant dense<0.000000e+00> : vector<4x4x32xf32>
    %341 = tpu.matmul %321, %340, %cst_107 {dimension_numbers = #tpu.dot_dimension_numbers<[2], [1], [1], [2], [0, 0, 0, 1, 1, 2], [0], [0]>} : vector<4x4x4xbf16>, vector<4x4x32xbf16>, vector<4x4x32xf32> -> vector<4x4x32xf32>
    "tpu.trace_stop"() : () -> ()
    %342 = arith.addf %341, %339 : vector<4x4x32xf32>
    %343 = vector.broadcast %328 : vector<4x4x1xf32> to vector<4x4x32xf32>
    %344 = arith.mulf %343, %342 : vector<4x4x32xf32>
    %345 = vector.shape_cast %330 : vector<1x32xf32> to vector<1x1x32xf32>
    %346 = vector.broadcast %345 : vector<1x1x32xf32> to vector<4x4x32xf32>
    %347 = arith.addf %344, %346 : vector<4x4x32xf32>
    %cst_108 = arith.constant 0.000000e+00 : f32
    %348 = vector.broadcast %cst_108 : f32 to vector<4x4x32xf32>
    %349 = arith.maximumf %347, %348 : vector<4x4x32xf32>
    %c0_109 = arith.constant 0 : index
    %c0_110 = arith.constant 0 : index
    %350 = vector.load %arg12[%c0_109, %c0_110] : memref<1x32xf32, #tpu.memory_space<vmem>>, vector<1x32xf32>
    %c2 = arith.constant 2 : index
    %351 = memref.load %arg1[%c2] : memref<3xf32, #tpu.memory_space<smem>>
    %352 = vector.shape_cast %350 : vector<1x32xf32> to vector<1x1x32xf32>
    %353 = vector.broadcast %352 : vector<1x1x32xf32> to vector<4x4x32xf32>
    %354 = arith.mulf %349, %353 : vector<4x4x32xf32>
    %cst_111 = arith.constant dense<0.000000e+00> : vector<4x4xf32>
    %355 = vector.multi_reduction <add>, %354, %cst_111 [2] : vector<4x4x32xf32> to vector<4x4xf32>
    %356 = arith.mulf %327, %355 : vector<4x4xf32>
    %357 = vector.shape_cast %356 : vector<4x4xf32> to vector<4x1x4xf32>
    %358 = vector.broadcast %357 : vector<4x1x4xf32> to vector<4x4x4xf32>
    %359 = arith.mulf %323, %358 : vector<4x4x4xf32>
    %cst_112 = arith.constant dense<0.000000e+00> : vector<4x4xf32>
    %360 = vector.multi_reduction <add>, %359, %cst_112 [2] : vector<4x4x4xf32> to vector<4x4xf32>
    %361 = arith.addf %360, %356 : vector<4x4xf32>
    %362 = arith.mulf %327, %361 : vector<4x4xf32>
    %363 = vector.broadcast %351 : f32 to vector<4x4xf32>
    %364 = arith.addf %362, %363 : vector<4x4xf32>
    %365 = tpu.iota {dimensions = array<i32: 1>} : vector<4x4xi32>
    %cst_113 = arith.constant dense<0xFF800000> : vector<4xf32>
    %366 = vector.multi_reduction <maximumf>, %364, %cst_113 [1] : vector<4x4xf32> to vector<4xf32>
    %367 = vector.shape_cast %366 : vector<4xf32> to vector<4x1xf32>
    %368 = vector.broadcast %367 : vector<4x1xf32> to vector<4x4xf32>
    %369 = arith.cmpf oge, %364, %368 : vector<4x4xf32>
    %c4_i32 = arith.constant 4 : i32
    %370 = vector.broadcast %c4_i32 : i32 to vector<4x4xi32>
    %371 = arith.select %369, %365, %370 : vector<4x4xi1>, vector<4x4xi32>
    %cst_114 = arith.constant dense<2147483647> : vector<4xi32>
    %372 = vector.multi_reduction <minsi>, %371, %cst_114 [1] : vector<4x4xi32> to vector<4xi32>
    %373 = vector.shape_cast %372 : vector<4xi32> to vector<4x1xi32>
    %374 = vector.broadcast %373 : vector<4x1xi32> to vector<4x4xi32>
    %375 = arith.cmpi eq, %365, %374 : vector<4x4xi32>
    %376 = arith.extui %375 : vector<4x4xi1> to vector<4x4xi32>
    %377 = arith.sitofp %376 : vector<4x4xi32> to vector<4x4xf32>
    %cst_115 = arith.constant 0.000000e+00 : f32
    %378 = vector.broadcast %cst_115 : f32 to vector<4x4xf32>
    %379 = arith.cmpf ogt, %377, %378 : vector<4x4xf32>
    %cst_116 = arith.constant -3.000000e+38 : f32
    %380 = vector.broadcast %cst_116 : f32 to vector<4x4xf32>
    %381 = arith.select %379, %380, %364 : vector<4x4xi1>, vector<4x4xf32>
    %cst_117 = arith.constant dense<0xFF800000> : vector<4xf32>
    %382 = vector.multi_reduction <maximumf>, %381, %cst_117 [1] : vector<4x4xf32> to vector<4xf32>
    %383 = vector.shape_cast %382 : vector<4xf32> to vector<4x1xf32>
    %384 = vector.broadcast %383 : vector<4x1xf32> to vector<4x4xf32>
    %385 = arith.cmpf oge, %381, %384 : vector<4x4xf32>
    %c4_i32_118 = arith.constant 4 : i32
    %386 = vector.broadcast %c4_i32_118 : i32 to vector<4x4xi32>
    %387 = arith.select %385, %365, %386 : vector<4x4xi1>, vector<4x4xi32>
    %cst_119 = arith.constant dense<2147483647> : vector<4xi32>
    %388 = vector.multi_reduction <minsi>, %387, %cst_119 [1] : vector<4x4xi32> to vector<4xi32>
    %389 = vector.shape_cast %388 : vector<4xi32> to vector<4x1xi32>
    %390 = vector.broadcast %389 : vector<4x1xi32> to vector<4x4xi32>
    %391 = arith.cmpi eq, %365, %390 : vector<4x4xi32>
    %392 = arith.extui %391 : vector<4x4xi1> to vector<4x4xi32>
    %393 = arith.sitofp %392 : vector<4x4xi32> to vector<4x4xf32>
    %394 = vector.shape_cast %377 : vector<4x4xf32> to vector<4x1x4xf32>
    %395 = vector.shape_cast %393 : vector<4x4xf32> to vector<4x1x4xf32>
    %396 = tpu.concatenate %394, %395 in 1 : vector<4x1x4xf32>, vector<4x1x4xf32> -> vector<4x2x4xf32>
    %397 = math.tanh %364 : vector<4x4xf32>
    %398 = vector.shape_cast %397 : vector<4x4xf32> to vector<4x1x4xf32>
    %399 = vector.broadcast %398 : vector<4x1x4xf32> to vector<4x2x4xf32>
    %400 = arith.mulf %396, %399 : vector<4x2x4xf32>
    %cst_120 = arith.constant dense<0.000000e+00> : vector<4x2xf32>
    %401 = vector.multi_reduction <add>, %400, %cst_120 [2] : vector<4x2x4xf32> to vector<4x2xf32>
    %402 = vector.shape_cast %401 : vector<4x2xf32> to vector<4x2x1xf32>
    "tpu.trace_start"() <{level = 10 : i32, message = "gkm,gmh->gkh"}> : () -> ()
    %cst_121 = arith.constant dense<0.000000e+00> : vector<4x2x32xf32>
    %403 = tpu.matmul %396, %349, %cst_121 {dimension_numbers = #tpu.dot_dimension_numbers<[2], [1], [1], [2], [0, 0, 0, 1, 1, 2], [0], [0]>} : vector<4x2x4xf32>, vector<4x4x32xf32>, vector<4x2x32xf32> -> vector<4x2x32xf32>
    "tpu.trace_stop"() : () -> ()
    %404 = vector.broadcast %402 : vector<4x2x1xf32> to vector<4x2x32xf32>
    %405 = arith.mulf %403, %404 : vector<4x2x32xf32>
    %cst_122 = arith.constant dense<0xFF800000> : vector<4x32xf32>
    %406 = vector.multi_reduction <maximumf>, %405, %cst_122 [1] : vector<4x2x32xf32> to vector<4x32xf32>
    %407 = vector.shape_cast %406 : vector<4x32xf32> to vector<4x1x32xf32>
    %cst_123 = arith.constant dense<0.000000e+00> : vector<4x32xf32>
    %408 = vector.multi_reduction <add>, %405, %cst_123 [1] : vector<4x2x32xf32> to vector<4x32xf32>
    %409 = vector.shape_cast %408 : vector<4x32xf32> to vector<4x1x32xf32>
    %cst_124 = arith.constant 2.000000e+00 : f32
    %410 = vector.broadcast %cst_124 : f32 to vector<4x1x32xf32>
    %411 = arith.divf %409, %410 : vector<4x1x32xf32>
    %412 = tpu.concatenate %407, %411 in 2 : vector<4x1x32xf32>, vector<4x1x32xf32> -> vector<4x1x64xf32>
    %413 = arith.addf %322, %412 : vector<4x1x64xf32>
    %c0_125 = arith.constant 0 : index
    %c0_126 = arith.constant 0 : index
    %c0_127 = arith.constant 0 : index
    %414 = vector.load %arg13[%c0_125, %c0_126, %c0_127] : memref<4x1x64xf32, #tpu.memory_space<vmem>>, vector<4x1x64xf32>
    tpu.vector_store %arg13[%c0_125, %c0_126, %c0_127], %413 {strides = array<i32>} : memref<4x1x64xf32, #tpu.memory_space<vmem>>, vector<4x1x64xf32>,
    return
  }
  func.func @transform_0(%arg0: i32) -> i32 {
    %c0_i32 = arith.constant 0 : i32
    %c0_i32_0 = arith.constant 0 : i32
    return %c0_i32 : i32
  }
  func.func @transform_1(%arg0: i32) -> (i32, i32, i32) {
    %c0_i32 = arith.constant 0 : i32
    %c0_i32_0 = arith.constant 0 : i32
    %c0_i32_1 = arith.constant 0 : i32
    return %arg0, %c0_i32, %c0_i32_0 : i32, i32, i32
  }
  func.func @transform_2(%arg0: i32) -> (i32, i32, i32) {
    %c0_i32 = arith.constant 0 : i32
    %c0_i32_0 = arith.constant 0 : i32
    %c0_i32_1 = arith.constant 0 : i32
    return %arg0, %c0_i32, %c0_i32_0 : i32, i32, i32
  }
  func.func @transform_3(%arg0: i32) -> (i32, i32) {
    %c0_i32 = arith.constant 0 : i32
    %c0_i32_0 = arith.constant 0 : i32
    %c0_i32_1 = arith.constant 0 : i32
    return %c0_i32, %c0_i32_0 : i32, i32
  }
  func.func @transform_4(%arg0: i32) -> (i32, i32) {
    %c0_i32 = arith.constant 0 : i32
    %c0_i32_0 = arith.constant 0 : i32
    %c0_i32_1 = arith.constant 0 : i32
    return %c0_i32, %c0_i32_0 : i32, i32
  }
  func.func @transform_5(%arg0: i32) -> (i32, i32) {
    %c0_i32 = arith.constant 0 : i32
    %c0_i32_0 = arith.constant 0 : i32
    %c0_i32_1 = arith.constant 0 : i32
    return %c0_i32, %c0_i32_0 : i32, i32
  }
  func.func @transform_6(%arg0: i32) -> (i32, i32) {
    %c0_i32 = arith.constant 0 : i32
    %c0_i32_0 = arith.constant 0 : i32
    %c0_i32_1 = arith.constant 0 : i32
    return %c0_i32, %c0_i32_0 : i32, i32
  }
  func.func @transform_7(%arg0: i32) -> (i32, i32) {
    %c0_i32 = arith.constant 0 : i32
    %c0_i32_0 = arith.constant 0 : i32
    %c0_i32_1 = arith.constant 0 : i32
    return %c0_i32, %c0_i32_0 : i32, i32
  }
  func.func @transform_8(%arg0: i32) -> (i32, i32) {
    %c0_i32 = arith.constant 0 : i32
    %c0_i32_0 = arith.constant 0 : i32
    %c0_i32_1 = arith.constant 0 : i32
    return %c0_i32, %c0_i32_0 : i32, i32
  }
  func.func @transform_9(%arg0: i32) -> (i32, i32) {
    %c0_i32 = arith.constant 0 : i32
    %c0_i32_0 = arith.constant 0 : i32
    %c0_i32_1 = arith.constant 0 : i32
    return %c0_i32, %c0_i32_0 : i32, i32
  }
  func.func @transform_10(%arg0: i32) -> (i32, i32) {
    %c0_i32 = arith.constant 0 : i32
    %c0_i32_0 = arith.constant 0 : i32
    %c0_i32_1 = arith.constant 0 : i32
    return %c0_i32, %c0_i32_0 : i32, i32
  }
  func.func @transform_11(%arg0: i32) -> (i32, i32) {
    %c0_i32 = arith.constant 0 : i32
    %c0_i32_0 = arith.constant 0 : i32
    %c0_i32_1 = arith.constant 0 : i32
    return %c0_i32, %c0_i32_0 : i32, i32
  }
  func.func @transform_12(%arg0: i32) -> (i32, i32, i32) {
    %c0_i32 = arith.constant 0 : i32
    %c0_i32_0 = arith.constant 0 : i32
    %c0_i32_1 = arith.constant 0 : i32
    return %arg0, %c0_i32, %c0_i32_0 : i32, i32, i32
  }
}

</mosaic_0001>

<bundles_post_ra>
// kernel: net_forward.1
= control target key start
LH: loop header
LB: loop body
LE: loop exit
PB: predicated region body
PF: predicated region fallthrough
CT: control target
= control target key end

     0   :  { %s7350_s0 = inlined_call_operand.vmem [shape: f32[3], index: 0, kind: input, shape index: {}]   ;;  %s7351_s1 = inlined_call_operand.vmem [shape: bf16[8,16,16], index: 1, kind: input, shape index: {}]   ;;  %s7352_s2 = inlined_call_operand.vmem [shape: f32[8,16,16], index: 2, kind: input, shape index: {}]   ;;  %s7353_s3 = inlined_call_operand.vmem [shape: bf16[16,32], index: 3, kind: input, shape index: {}]   ;;  %s7354_s4 = inlined_call_operand.vmem [shape: f32[1,32], index: 4, kind: input, shape index: {}]   ;;  %s7355_s5 = inlined_call_operand.vmem [shape: f32[1,32], index: 5, kind: input, shape index: {}]   ;;  %s7356_s6 = inlined_call_operand.vmem [shape: bf16[32,32], index: 6, kind: input, shape index: {}]   ;;  %s7357_s7 = inlined_call_operand.vmem [shape: f32[1,32], index: 7, kind: input, shape index: {}]   ;;  %s7358_s8 = inlined_call_operand.vmem [shape: f32[1,32], index: 8, kind: input, shape index: {}]   ;;  %s7359_s9 = inlined_call_operand.vmem [shape: bf16[32,32], index: 9, kind: input, shape index: {}]   ;;  %s7360_s10 = inlined_call_operand.vmem [shape: f32[1,32], index: 10, kind: input, shape index: {}]   ;;  %s7361_s11 = inlined_call_operand.vmem [shape: f32[1,32], index: 11, kind: input, shape index: {}]   ;;  %s7362_s12 = inlined_call_operand.hbm [shape: f32[8,1,64], index: 12, kind: output, shape index: {}]  }
   0x1   :  { %7363 = sst [smem:[#allocation9_spill]] %s7350_s0 }
   0x2   :  { %17 = vsyncpa [#allocation4], 0 }
   0x3   :  { %18 = vsyncpa [#allocation3], 0 }
   0x4   :  { %20 = vsyncpa [#allocation3 + $0x1], 0  ;;  %s6098_s21 = smov 0   ;;  %s6100_s22 = smov 0  }
   0x5   :  { %s6102_s23 = smov 0   ;;  %s6104_s24 = smov 0  }
   0x6 LB: > { %s6119_s25 = sadd.s32 4294967295, %s6021_s24   ;;  %s5328_s26 = sadd.s32 4294967294, %s6021_s24   ;;  %s6021_s24 = sphi %s6104_s24, %s7373_s24   ;;  %s6017_s23 = sphi %s6102_s23, %s7372_s23   ;;  %s6013_s22 = sphi %s6100_s22, %s7371_s22   ;;  %s6009_s21 = sphi %s6098_s21, %s7370_s21  }
   0x7   : > { %s6123_s27 = sadd.s32 1, %s6021_s24   ;;  %s295_s28 = sadd.s32 1, %s6017_s23 }
   0x8   : > { %s292_s29 = ssub.s32 %s6021_s24, %s6123_s27  ;;  %p305_p0 = scmp.ne.s32.totalorder %s6017_s23, %s6013_s22 }
   0x9   : > { %p293_p1 = scmp.eq.s32.totalorder %s292_s29, 0  ;;  %p306_p2 = scmp.eq.s32.totalorder %s6119_s25, 1 }
   0xa   : > { %p311_p3 = scmp.ne.s32.totalorder %s6013_s22, %s6009_s21  ;;  %p312_p4 = scmp.eq.s32.totalorder %s5328_s26, 1 }
   0xb   : > { %s6134_s30 = scalar_select %p293_p1, %s6017_s23, %s295_s28  }
   0xc   : > { %p6136_p5 = por %p306_p2, %p305_p0  ;;  %p6140_p6 = por %p312_p4, %p311_p3 }
   0xd   : > { %7364 = sst [smem:[#allocation8_spill]] %s6134_s30  ;;  %p5329_p7 = scmp.ge.s32.totalorder %s6021_s24, 1 }
   0xe   : > { %p319_p8 = scmp.lt.s32.totalorder %s6021_s24, 3  ;;  %p5817_p9 = scmp.eq.s32.totalorder %s6119_s25, 0 }
   0xf   : > { %s7368_s0 = sld [smem:[#allocation9_spill]] }
  0x10   : > { %p6147_p10 = pnand %p5329_p7, %p319_p8 }
  0x12   : > { %p5809_p11 = pneg %p6147_p10 }
  0x14   : > { %p5810_p12 = pnand %p5817_p9, %p5809_p11 }
  0x15   : > { %s332_s18 = sshll.u32 %s7368_s0, 4  ;;  %s333_s18 = int_to_ptr.vmem [resolvable:$true] %s332_s18 }
  0x16   : > { %s5940_s19 = scalar_lea.vmem %s333_s18, 16  ;;  %p5942_p0 = pneg %p5810_p12 }
  0x17   : > { %p5941_p13 = scmp.ne.s32.totalorder %s333_s18, %s5940_s19  ;;  %p5948_p3 = scmp.lt.s32.totalorder %s333_s18, %s333_s18 }
  0x18   : > { %p5949_p4 = scmp.lt.s32.totalorder %s5940_s19, %s5940_s19 }
  0x19   : > { %p5943_p1 = pnand %p5942_p0, %p5941_p13 }
  0x1a   : > { %p5950_p7 = por %p5949_p4, %p5948_p3 }
  0x1b   : > { %p5944_p2 = pneg %p5943_p1 }
  0x1d   : > { %p5951_p8 = pnand %p5950_p7, %p5944_p2 }
  0x1f   : > { %5954 = shalt.err (!%p5951_p8)
}
  0x20   : > { %s6023_s20 = smov [#allocation2]   ;;  %392 = sbr.rel (%p6147_p10) target bundleno = 10129 (0x2791), region = 68 }
  0x21   : > { %5812 = dma.vmem_to_smem (!%p5810_p12), %s333_s18, 16, %s6023_s20, [#allocation4]  }
  0x27   : > { %6000 = dma.done.wait (%p5817_p9), [#allocation4], 16  }
  0x28   : > { %6002 = vsyncadd (%p5817_p9), [#allocation4], 4294967280 }
  0x29   : > { %398 = sfence }
  0x2a   : > { %v5863_v0 = vld [vmem:[%s7353_s3] sm:$0xff]   ;;  %s5335_s29 = sshll.u32 %s6119_s25, 2  ;;  %vm482_vm0 = vcmask 130048   ;;  %v6024_v33 = vmov 0.0   ;;  %vm6025_vm1 = vmmov 0   ;;  %vm867_vm2 = vcmask 261120  }
  0x2b   : > { %p443_p11 = scmp.lt.s32.totalorder %s5335_s29, 7  ;;  %5529 = vmatprep.subr.bf16.mxu0 %v5863_v0  ;;  %5539 = vmatprep.subr.bf16.mxu1 %v6024_v33  ;;  %vm919_vm3 = vcmask 130112   ;;  %vm948_vm4 = vcmask 1041409   ;;  %vm949_vm5 = vcmask 1042434   ;;  %vm951_vm6 = vcmask 1043459   ;;  %s5385_s26 = sld [smem:[#allocation2 + $0x1]] }
  0x2c   : > { %5530 = vmatpush3.bf16.msra.mxu0 %v5863_v0  ;;  %5541 = vmatprep.mubr.msk.bf16.mxu1 %vm6025_vm1, %v6024_v33  ;;  %vm1088_vm7 = vcmask 125952   ;;  %s5412_s0 = sld [smem:[#allocation2 + $0x2]] }
  0x2d   : > { %s7375_s29 = smov (!%p443_p11, %s5335_s29), 7  ;;  %5551 = vmatprep.subr.bf16.mxu0 %v6024_v33 }
  0x2e   : > { %s5430_s16 = sshll.u32 %s7375_s29, 4  ;;  %s5429_s15 = sshll.u32 %s7375_s29, 3 }
  0x2f   : > { %s454_s19 = scalar_lea.vmem %s7352_s2, %s5430_s16  ;;  %s6174_s30 = scalar_lea.vmem %s7351_s1, %s5429_s15 }
  0x30   : > { %v466_v1 = vld [vmem:[%s454_s19] sm:$0xff]  ;;  %v467_v2 = vld [vmem:[%s454_s19 + $0x8] sm:$0xff]  ;;  %v468_v3 = vld [vmem:[%s454_s19 + $0x10] sm:$0xff]  ;;  %s852_s29 = sld [smem:[#allocation2]]  ;;  %s5431_s15 = sshll.u32 %s6119_s25, 6 }
  0x31   : > { %v526_v4 = vpack.c.bf16 %v467_v2, %v466_v1  ;;  %v469_v5 = vld [vmem:[%s454_s19 + $0x18] sm:$0xff]  ;;  %v470_v6 = vld [vmem:[%s454_s19 + $0x20] sm:$0xff]  ;;  %v471_v7 = vld [vmem:[%s454_s19 + $0x28] sm:$0xff] }
  0x32   : > { %v527_v8 = vpack.c.bf16 %v469_v5, %v468_v3  ;;  %v528_v9 = vpack.c.bf16 %v471_v7, %v470_v6  ;;  %v6177_v10 = vld [vmem:[%s6174_s30] sm:$0xff]   ;;  %v6182_v12 = vld [vmem:[%s6174_s30 + $0x8] sm:$0xff]   ;;  %v6189_v16 = vld [vmem:[%s6174_s30 + $0x10] sm:$0xff]  }
  0x33   : > { %5531 = vmatprep.mubr.msk.bf16.mxu0 %vm482_vm0, %v526_v4  ;;  %v474_v11 = vunpack.c.l.bf16 %v6177_v10  ;;  %v475_v13 = vunpack.c.h.bf16 %v6177_v10  ;;  %v476_v14 = vunpack.c.l.bf16 %v6182_v12  ;;  %v477_v15 = vunpack.c.h.bf16 %v6182_v12  ;;  %v472_v17 = vld [vmem:[%s454_s19 + $0x30] sm:$0xff]  ;;  %v473_v18 = vld [vmem:[%s454_s19 + $0x38] sm:$0xff]  ;;  %s7301_s19 = scalar_lea.hbm %s7362_s12, %s5431_s15 }
  0x34   : > { %5532 = vmatmul.mubr.msk.bf16.vlgmr.msra.gmra.mrb[0].mxu0 %vm482_vm0, %v527_v8  ;;  %v478_v22 = vunpack.c.l.bf16 %v6189_v16  ;;  %v529_v23 = vpack.c.bf16 %v473_v18, %v472_v17  ;;  %v479_v25 = vunpack.c.h.bf16 %v6189_v16  ;;  %v6207_v26 = vld [vmem:[%s6174_s30 + $0x18] sm:$0xff]   ;;  %s6029_s30 = smov 32  }
  0x35   : > { %5535 = vmatprep.mubr.msk.bf16.mxu0 %vm482_vm0, %v528_v9  ;;  %v483_v19 = vsel %vm482_vm0, %v474_v11, 0.0  ;;  %v489_v20 = vsel %vm482_vm0, %v476_v14, 0.0  ;;  %v486_v21 = vsel %vm482_vm0, %v475_v13, 0.0  ;;  %v492_v24 = vsel %vm482_vm0, %v477_v15, 0.0 }
  0x36   : > { %484 = vadd.xlane.f32.xlu0 %v483_v19  ;;  %490 = vadd.xlane.f32.xlu1 %v489_v20  ;;  %v495_v27 = vsel %vm482_vm0, %v478_v22, 0.0  ;;  %v480_v28 = vunpack.c.l.bf16 %v6207_v26  ;;  %v498_v29 = vsel %vm482_vm0, %v479_v25, 0.0  ;;  %v481_v30 = vunpack.c.h.bf16 %v6207_v26 }
  0x38   : > { %v501_v31 = vsel %vm482_vm0, %v480_v28, 0.0  ;;  %v504_v32 = vsel %vm482_vm0, %v481_v30, 0.0 }
  0x3a   : > { %487 = vadd.xlane.f32.xlu0 %v486_v21  ;;  %493 = vadd.xlane.f32.xlu1 %v492_v24  ;;  %v6026_v21 = vmov 0.0|0.0  }
  0x3c   : > { %5536 = vmatmul.mubr.msk.bf16.gmra.mrb[4].mxu0 %vm482_vm0, %v529_v23 }
  0x3d   : > { %5553 = vmatprep.mubr.msk.bf16.mxu0 %vm6025_vm1, %v6024_v33 }
  0x3e   : > { %496 = vadd.xlane.f32.xlu0 %v495_v27  ;;  %499 = vadd.xlane.f32.xlu1 %v498_v29  ;;  %v6283_v29 = vld [vmem:[%s7354_s4] ss:$0 sm:$0xff] }
  0x42   : > { %502 = vadd.xlane.f32.xlu0 %v501_v31  ;;  %505 = vadd.xlane.f32.xlu1 %v504_v32 }
  0xc3   : > { %v485_v34 = vpop.xlane.xlu0 %484  ;;  %v491_v35 = vpop.xlane.xlu1 %490 }
  0xc4   : > { %v507_v40 = vadd.f32 1.0, %v485_v34  ;;  %v509_v43 = vadd.f32 1.0, %v491_v35 }
  0xc7   : > { %v488_v36 = vpop.xlane.xlu0 %487  ;;  %v494_v37 = vpop.xlane.xlu1 %493 }
  0xc8   : > { %v508_v38 = vadd.f32 1.0, %v488_v36  ;;  %v510_v42 = vadd.f32 1.0, %v494_v37 }
  0xca   : > { %5876 = vrsqrt.f32 %v508_v38  ;;  %v6291_v38 = vld [vmem:[%s7355_s5] ss:$0 sm:$0xff] }
  0xcb   : > { %v497_v39 = vpop.xlane.xlu0 %496  ;;  %v500_v41 = vpop.xlane.xlu1 %499  ;;  %5878 = vrsqrt.f32 %v507_v40 }
  0xcc   : > { %5880 = vrsqrt.f32 %v510_v42  ;;  %v511_v44 = vadd.f32 1.0, %v497_v39  ;;  %v512_v47 = vadd.f32 1.0, %v500_v41 }
  0xcd   : > { %5882 = vrsqrt.f32 %v509_v43 }
  0xce   : > { %5884 = vrsqrt.f32 %v511_v44 }
  0xcf   : > { %v503_v45 = vpop.xlane.xlu0 %502  ;;  %v506_v46 = vpop.xlane.xlu1 %505  ;;  %5886 = vrsqrt.f32 %v512_v47 }
  0xd0   : > { %v513_v48 = vadd.f32 1.0, %v503_v45  ;;  %v514_v49 = vadd.f32 1.0, %v506_v46 }
  0xd2   : > { %5888 = vrsqrt.f32 %v513_v48 }
  0xd3   : > { %5890 = vrsqrt.f32 %v514_v49 }
  0xd4   : > { %v6230_v51 = vpop.eup %5876 }
  0xd5   : > { %v6232_v53 = vpop.eup %5878 }
  0xd6   : > { %v6234_v55 = vpop.eup %5880 }
  0xd7   : > { %v6238_v59 = vpop.eup %5882 }
  0xd8   : > { %v6241_v62 = vpop.eup %5884 }
  0xd9   : > { %v6244_v1 = vpop.eup %5886 }
  0xdc   : > { %v6247_v3 = vpop.eup %5888 }
  0xdd   : > { %v6250_v7 = vpop.eup %5890 }
 0x107   : > { %v5533_v50 = vpop.f32.mrb[0].mxu0 }
 0x108   : > { %v582_v52 = vpop.f32.mrb[1].mxu0  ;;  %v615_v63 = vmul.f32 %v6238_v59, %v5533_v50 }
 0x109   : > { %v5534_v54 = vpop.f32.mrb[2].mxu0  ;;  %v613_v57 = vmul.f32 %v6232_v53, %v582_v52 }
 0x10a   : > { %v585_v56 = vpop.f32.mrb[3].mxu0  ;;  %v616_v60 = vmul.f32 %v6234_v55, %v5534_v54 }
 0x10b   : > { %v614_v58 = vmul.f32 %v6230_v51, %v585_v56 }
 0x10c   : > { %v622_v4 = vpack.c.bf16 %v616_v60, %v615_v63 }
 0x10d   : > { %v621_v61 = vpack.c.bf16 %v614_v58, %v613_v57 }
 0x10f   : > { %v5537_v0 = vpop.f32.mrb[4].mxu0  ;;  %5540 = vmatpush3.bf16.msra.mxu1 %v621_v61 }
 0x110   : > { %v598_v2 = vpop.f32.mrb[5].mxu0  ;;  %5545 = vmatprep.subr.bf16.mxu1 %v6024_v33  ;;  %v6259_v17 = vmul.f32 %v6247_v3, %v5537_v0 }
 0x111   : > { %v617_v5 = vmul.f32 %v6241_v62, %v598_v2  ;;  %v5538_v6 = vpop.f32.mrb[6].mxu0 }
 0x112   : > { %v601_v8 = vpop.f32.mrb[7].mxu0  ;;  %5542 = vmatmul.mubr.msk.bf16.vlgmr.msra.gmra.mrb[0].mxu1 %vm482_vm0, %v6177_v10  ;;  %v6262_v18 = vmul.f32 %v6250_v7, %v5538_v6 }
 0x113   : > { %v618_v9 = vmul.f32 %v6244_v1, %v601_v8  ;;  %5546 = vmatpush3.bf16.msra.mxu1 %v622_v4  ;;  %5547 = vmatprep.mubr.msk.bf16.mxu1 %vm6025_vm1, %v6024_v33 }
 0x114   : > { %5557 = vmatprep.subr.bf16.mxu1 %v6024_v33  ;;  %v624_v20 = vpack.c.bf16 %v6262_v18, %v6259_v17 }
 0x115   : > { %v623_v19 = vpack.c.bf16 %v618_v9, %v617_v5 }
 0x117   : > { %5552 = vmatpush3.bf16.msra.mxu0 %v623_v19 }
 0x118   : > { %5791 = vmatprep.subr.bf16.mxu0 %v6026_v21 }
 0x11a   : > { %5548 = vmatmul.mubr.msk.bf16.vlgmr.msra.gmra.mrb[4].mxu1 %vm482_vm0, %v6182_v12  ;;  %5554 = vmatmul.mubr.msk.bf16.vlgmr.msra.gmra.mrb[8].mxu0 %vm482_vm0, %v6189_v16 }
 0x11b   : > { %5558 = vmatpush3.bf16.msra.mxu1 %v624_v20  ;;  %5559 = vmatprep.mubr.msk.bf16.mxu1 %vm6025_vm1, %v6024_v33 }
 0x11c   : > { %5567 = vmatprep.mubr.msk.f32.mxu0 %vm6025_vm1, %v6024_v33  ;;  %5794 = vmatprep.subr.bf16.mxu1 %v6026_v21 }
 0x122   : > { %5560 = vmatmul.mubr.msk.bf16.vlgmr.msra.gmra.mrb[8].mxu1 %vm482_vm0, %v6207_v26 }
 0x123   : > { %5574 = vmatprep.mubr.msk.f32.mxu1 %vm6025_vm1, %v6024_v33 }
 0x1e5   : > { %v667_v23 = vpop.f32.mrb[0].mxu1 }
 0x1e6   : > { %v668_v24 = vadd.f32 %v667_v23, %v613_v57  ;;  %v5543_v27 = vpop.f32.mrb[1].mxu1 }
 0x1e7   : > { %v670_v31 = vpop.f32.mrb[2].mxu1 }
 0x1e8   : > { %v821_v32 = vmul.f32 %v6232_v53, %v668_v24  ;;  %v671_v34 = vadd.f32 %v670_v31, %v614_v58  ;;  %v5544_v35 = vpop.f32.mrb[3].mxu1 }
 0x1ea   : > { %v835_v36 = vadd.f32 %v6283_v29, %v821_v32  ;;  %v822_v37 = vmul.f32 %v6230_v51, %v671_v34 }
 0x1ec   : > { %v836_v39 = vadd.f32 %v6283_v29, %v822_v37  ;;  %v843_v40 = vmax.f32 %v835_v36, 0.0 }
 0x1ed   : > { %v716_v41 = vpop.f32.mrb[4].mxu1  ;;  %v765_v42 = vpop.f32.mrb[8].mxu0 }
 0x1ee   : > { %v844_v43 = vmax.f32 %v836_v39, 0.0  ;;  %v717_v44 = vadd.f32 %v716_v41, %v615_v63  ;;  %v766_v45 = vadd.f32 %v765_v42, %v617_v5  ;;  %v5549_v46 = vpop.f32.mrb[5].mxu1  ;;  %v5555_v47 = vpop.f32.mrb[9].mxu0  ;;  %v859_v48 = vmul.f32 %v6291_v38, %v843_v40 }
 0x1ef   : > { %v719_v49 = vpop.f32.mrb[6].mxu1  ;;  %v768_v50 = vpop.f32.mrb[10].mxu0 }
 0x1f0   : > { %v823_v52 = vmul.f32 %v6238_v59, %v717_v44  ;;  %v825_v54 = vmul.f32 %v6241_v62, %v766_v45  ;;  %v720_v56 = vadd.f32 %v719_v49, %v616_v60  ;;  %v769_v57 = vadd.f32 %v768_v50, %v618_v9  ;;  %v5550_v58 = vpop.f32.mrb[7].mxu1  ;;  %v5556_v61 = vpop.f32.mrb[11].mxu0 }
 0x1f1   : > { %v868_v0 = vsel %vm867_vm2, %v859_v48, 0.0  ;;  %v5792_v2 = vpack.c.bf16 %v844_v43, %v843_v40  ;;  %v860_v63 = vmul.f32 %v6291_v38, %v844_v43 }
 0x1f2   : > { %v837_v4 = vadd.f32 %v6283_v29, %v823_v52  ;;  %v839_v5 = vadd.f32 %v6283_v29, %v825_v54  ;;  %v824_v6 = vmul.f32 %v6234_v55, %v720_v56  ;;  %v826_v8 = vmul.f32 %v6244_v1, %v769_v57  ;;  %869 = vadd.xlane.f32.xlu0 %v868_v0 }
 0x1f3   : > { %5793 = vmatpush3.bf16.msra.mxu0 %v5792_v2  ;;  %v871_v60 = vsel %vm867_vm2, %v860_v63, 0.0 }
 0x1f4   : > { %v838_v9 = vadd.f32 %v6283_v29, %v824_v6  ;;  %v840_v19 = vadd.f32 %v6283_v29, %v826_v8  ;;  %872 = vadd.xlane.f32.xlu1 %v871_v60  ;;  %v845_v20 = vmax.f32 %v837_v4, 0.0  ;;  %v847_v23 = vmax.f32 %v839_v5, 0.0  ;;  %5797 = vmatprep.subr.bf16.mxu0 %v6026_v21 }
 0x1f5   : > { %v814_v24 = vpop.f32.mrb[8].mxu1 }
 0x1f6   : > { %v846_v27 = vmax.f32 %v838_v9, 0.0  ;;  %v815_v31 = vadd.f32 %v814_v24, %v6259_v17  ;;  %v5561_v32 = vpop.f32.mrb[9].mxu1  ;;  %v861_v34 = vmul.f32 %v6291_v38, %v845_v20  ;;  %v863_v36 = vmul.f32 %v6291_v38, %v847_v23 }
 0x1f7   : > { %v817_v35 = vpop.f32.mrb[10].mxu1  ;;  %v848_v37 = vmax.f32 %v840_v19, 0.0 }
 0x1f8   : > { %v827_v39 = vmul.f32 %v6247_v3, %v815_v31  ;;  %v818_v40 = vadd.f32 %v817_v35, %v6262_v18  ;;  %v874_v41 = vsel %vm867_vm2, %v861_v34, 0.0  ;;  %v5795_v42 = vpack.c.bf16 %v846_v27, %v845_v20  ;;  %v5562_v43 = vpop.f32.mrb[11].mxu1 }
 0x1f9   : > { %875 = vadd.xlane.f32.xlu0 %v874_v41  ;;  %v862_v44 = vmul.f32 %v6291_v38, %v846_v27  ;;  %v6314_v45 = vpack.c.bf16 %v848_v37, %v847_v23  ;;  %v864_v48 = vmul.f32 %v6291_v38, %v848_v37  ;;  %v880_v49 = vsel %vm867_vm2, %v863_v36, 0.0 }
 0x1fa   : > { %v841_v17 = vadd.f32 %v6283_v29, %v827_v39  ;;  %v828_v46 = vmul.f32 %v6250_v7, %v818_v40  ;;  %5796 = vmatpush3.bf16.msra.mxu1 %v5795_v42 }
 0x1fb   : > { %v877_v47 = vsel %vm867_vm2, %v862_v44, 0.0  ;;  %5800 = vmatprep.subr.bf16.mxu1 %v6026_v21  ;;  %v883_v56 = vsel %vm867_vm2, %v864_v48, 0.0 }
 0x1fc   : > { %v842_v18 = vadd.f32 %v6283_v29, %v828_v46  ;;  %878 = vadd.xlane.f32.xlu1 %v877_v47  ;;  %v849_v50 = vmax.f32 %v841_v17, 0.0  ;;  %v908_v29 = vlaneseq }
 0x1fd   : > { %881 = vadd.xlane.f32.xlu0 %v880_v49 }
 0x1fe   : > { %v865_v52 = vmul.f32 %v6291_v38, %v849_v50  ;;  %v850_v54 = vmax.f32 %v842_v18, 0.0  ;;  %v6330_v0 = vand.u32 127, %v908_v29  ;;  %v6332_v2 = vshrl.u32 %v908_v29, 7 }
 0x200   : > { %884 = vadd.xlane.f32.xlu1 %v883_v56  ;;  %v886_v57 = vsel %vm867_vm2, %v865_v52, 0.0  ;;  %v866_v58 = vmul.f32 %v6291_v38, %v850_v54  ;;  %v6327_v61 = vpack.c.bf16 %v850_v54, %v849_v50  ;;  %v914_v63 = vadd.s32 4294967288, %v6330_v0 }
 0x201   : > { %887 = vadd.xlane.f32.xlu0 %v886_v57  ;;  %v6337_v5 = vsub.s32 %v6330_v0, %v6332_v2 }
 0x202   : > { %v889_v21 = vsel %vm867_vm2, %v866_v58, 0.0  ;;  %v6341_v6 = vsub.s32 %v914_v63, %v6332_v2 }
 0x204   : > { %890 = vadd.xlane.f32.xlu1 %v889_v21 }
 0x27f   : > { %v870_v4 = vpop.xlane.xlu0 %869 }
 0x280   : > { %v892_v38 = vmul.f32 %v6232_v53, %v870_v4 }
 0x281   : > { %v873_v8 = vpop.xlane.xlu1 %872 }
 0x282   : > { %v893_v60 = vmul.f32 %v6230_v51, %v873_v8  ;;  %v913_v9 = vrot.slane %v892_v38, %v6337_v5 }
 0x284   : > { %v918_v19 = vrot.slane %v893_v60, %v6341_v6 }
 0x286   : > { %v876_v20 = vpop.xlane.xlu0 %875  ;;  %v920_v23 = vsel %vm919_vm3, %v918_v19, %v913_v9 }
 0x287   : > { %v984_v24 = vmul.f32 %v920_v23, %v475_v13  ;;  %v983_v27 = vmul.f32 %v920_v23, %v474_v11  ;;  %v894_v31 = vmul.f32 %v6238_v59, %v876_v20 }
 0x289   : > { %v879_v32 = vpop.xlane.xlu1 %878  ;;  %v994_v34 = vsel %vm482_vm0, %v984_v24, 0.0  ;;  %v991_v35 = vsel %vm482_vm0, %v983_v27, 0.0  ;;  %v924_v39 = vrot.slane %v894_v31, %v6337_v5 }
 0x28a   : > { %v895_v36 = vmul.f32 %v6234_v55, %v879_v32  ;;  %995 = vadd.xlane.f32.xlu1 %v994_v34  ;;  %992 = vadd.xlane.f32.xlu0 %v991_v35  ;;  %v882_v37 = vpop.xlane.xlu0 %881 }
 0x28b   : > { %v896_v13 = vmul.f32 %v6241_v62, %v882_v37 }
 0x28c   : > { %v928_v40 = vrot.slane %v895_v36, %v6341_v6 }
 0x28d   : > { %v885_v41 = vpop.xlane.xlu1 %884  ;;  %v933_v46 = vrot.slane %v896_v13, %v6337_v5 }
 0x28e   : > { %v897_v11 = vmul.f32 %v6244_v1, %v885_v41  ;;  %v888_v42 = vpop.xlane.xlu0 %887  ;;  %v929_v43 = vsel %vm919_vm3, %v928_v40, %v924_v39 }
 0x28f   : > { %v986_v44 = vmul.f32 %v929_v43, %v477_v15  ;;  %v985_v17 = vmul.f32 %v929_v43, %v476_v14  ;;  %v898_v48 = vmul.f32 %v6247_v3, %v888_v42 }
 0x290   : > { %v937_v47 = vrot.slane %v897_v11, %v6341_v6 }
 0x291   : > { %v891_v18 = vpop.xlane.xlu1 %890  ;;  %v1000_v49 = vsel %vm482_vm0, %v986_v44, 0.0  ;;  %v997_v50 = vsel %vm482_vm0, %v985_v17, 0.0  ;;  %v942_v56 = vrot.slane %v898_v48, %v6337_v5 }
 0x292   : > { %v899_v52 = vmul.f32 %v6250_v7, %v891_v18  ;;  %1001 = vadd.xlane.f32.xlu1 %v1000_v49  ;;  %998 = vadd.xlane.f32.xlu0 %v997_v50  ;;  %v938_v15 = vsel %vm919_vm3, %v937_v47, %v933_v46 }
 0x293   : > { %v988_v14 = vmul.f32 %v938_v15, %v479_v25  ;;  %v987_v54 = vmul.f32 %v938_v15, %v478_v22 }
 0x294   : > { %v946_v57 = vrot.slane %v899_v52, %v6341_v6 }
 0x295   : > { %v1006_v58 = vsel %vm482_vm0, %v988_v14, 0.0  ;;  %v1003_v21 = vsel %vm482_vm0, %v987_v54, 0.0 }
 0x296   : > { %1007 = vadd.xlane.f32.xlu1 %v1006_v58  ;;  %1004 = vadd.xlane.f32.xlu0 %v1003_v21  ;;  %v947_v29 = vsel %vm919_vm3, %v946_v57, %v942_v56 }
 0x297   : > { %v990_v63 = vmul.f32 %v947_v29, %v481_v30  ;;  %v989_v25 = vmul.f32 %v947_v29, %v480_v28  ;;  %v1031_v28 = vstv %s852_s29 }
 0x299   : > { %v1012_v22 = vsel %vm482_vm0, %v990_v63, 0.0  ;;  %v1009_v4 = vsel %vm482_vm0, %v989_v25, 0.0  ;;  %v6027_v63 = vmov 0   ;;  %v6440_v25 = vsub.s32 0, %v6332_v2 }
 0x29a   : > { %1013 = vadd.xlane.f32.xlu1 %v1012_v22  ;;  %1010 = vadd.xlane.f32.xlu0 %v1009_v4  ;;  %v6443_v22 = vsub.s32 1, %v6332_v2  ;;  %v6446_v4 = vsub.s32 3, %v6332_v2 }
 0x29b   : > { %5861 = vset.pattern.permute.xlu1 %v6027_v63  ;;  %5862 = vset.pattern.permute.xlu0 %v6027_v63 }
 0x2ab   : > { %1122 = vbcast.lane.b32.xlu1 %v6330_v0, 256 }
 0x317   : > { %v996_v8 = vpop.xlane.xlu1 %995  ;;  %v993_v9 = vpop.xlane.xlu0 %992 }
 0x318   : > { %v1016_v19 = vadd.f32 %v996_v8, %v893_v60  ;;  %v1015_v20 = vadd.f32 %v993_v9, %v892_v38 }
 0x31a   : > { %v1024_v32 = vmul.f32 %v6230_v51, %v1016_v19  ;;  %v1023_v34 = vmul.f32 %v6232_v53, %v1015_v20 }
 0x31c   : > { %v6395_v43 = vadd.f32 %v1031_v28, %v1024_v32  ;;  %v6458_v32 = vsub.s32 2, %v6332_v2 }
 0x31e   : > { %v1055_v46 = vrot.slane %v6395_v43, %v6341_v6  ;;  %5892 = vtanh.f32 %v6395_v43 }
 0x31f   : > { %v1002_v23 = vpop.xlane.xlu1 %1001  ;;  %v999_v24 = vpop.xlane.xlu0 %998 }
 0x320   : > { %v1018_v27 = vadd.f32 %v1002_v23, %v895_v36  ;;  %v1017_v30 = vadd.f32 %v999_v24, %v894_v31  ;;  %v6397_v31 = vadd.f32 %v1031_v28, %v1023_v34 }
 0x322   : > { %v1026_v35 = vmul.f32 %v6234_v55, %v1018_v27  ;;  %v1025_v37 = vmul.f32 %v6238_v59, %v1017_v30  ;;  %5894 = vtanh.f32 %v6397_v31 }
 0x323   : > { %v1008_v39 = vpop.xlane.xlu1 %1007  ;;  %v1005_v40 = vpop.xlane.xlu0 %1004 }
 0x324   : > { %v6391_v41 = vadd.f32 %v1031_v28, %v1026_v35  ;;  %v6393_v42 = vadd.f32 %v1031_v28, %v1025_v37  ;;  %v1020_v38 = vadd.f32 %v1008_v39, %v897_v11  ;;  %v1019_v60 = vadd.f32 %v1005_v40, %v896_v13 }
 0x326   : > { %v1028_v51 = vmul.f32 %v6244_v1, %v1020_v38  ;;  %v1064_v53 = vrot.slane %v6391_v41, %v6341_v6  ;;  %v1027_v55 = vmul.f32 %v6241_v62, %v1019_v60  ;;  %v1060_v44 = vrot.slane %v6393_v42, %v6337_v5 }
 0x327   : > { %v1014_v59 = vpop.xlane.xlu1 %1013  ;;  %v1011_v36 = vpop.xlane.xlu0 %1010  ;;  %v1051_v1 = vrot.slane %v6397_v31, %v6337_v5  ;;  %5896 = vtanh.f32 %v6391_v41 }
 0x328   : > { %v6405_v17 = vadd.f32 %v1031_v28, %v1028_v51  ;;  %v1022_v11 = vadd.f32 %v1014_v59, %v899_v52  ;;  %v1021_v13 = vadd.f32 %v1011_v36, %v898_v48  ;;  %v6409_v47 = vadd.f32 %v1031_v28, %v1027_v55 }
 0x329   : > { %v1065_v15 = vsel %vm919_vm3, %v1064_v53, %v1060_v44  ;;  %v1056_v54 = vsel %vm919_vm3, %v1055_v46, %v1051_v1  ;;  %5898 = vtanh.f32 %v6393_v42 }
 0x32a   : > { %v1073_v62 = vrot.slane %v6405_v17, %v6341_v6  ;;  %v1030_v18 = vmul.f32 %v6250_v7, %v1022_v11  ;;  %v1029_v49 = vmul.f32 %v6247_v3, %v1021_v13  ;;  %v1069_v50 = vrot.slane %v6409_v47, %v6337_v5 }
 0x32b   : > { %v1084_v56 = vsel %vm948_vm4, %v1065_v15, %v1056_v54  ;;  %v6448_v9 = vpop.permute.xlu1 %1122  ;;  %5900 = vtanh.f32 %v6405_v17 }
 0x32c   : > { %v6419_v52 = vadd.f32 %v1031_v28, %v1030_v18  ;;  %v6421_v48 = vadd.f32 %v1031_v28, %v1029_v49  ;;  %v1074_v14 = vsel %vm919_vm3, %v1073_v62, %v1069_v50  ;;  %5902 = vtanh.f32 %v6409_v47 }
 0x32d   : > { %v1085_v58 = vsel %vm949_vm5, %v1074_v14, %v1084_v56 }
 0x32e   : > { %v1078_v7 = vrot.slane %v6421_v48, %v6337_v5  ;;  %v1082_v3 = vrot.slane %v6419_v52, %v6341_v6  ;;  %5904 = vtanh.f32 %v6419_v52 }
 0x32f   : > { %5906 = vtanh.f32 %v6421_v48 }
 0x330   : > { %v1083_v57 = vsel %vm919_vm3, %v1082_v3, %v1078_v7 }
 0x331   : > { %v6434_v21 = vsel %vm951_vm6, %v1083_v57, %v1085_v58 }
 0x332   : > { %v1089_v29 = vsel %vm1088_vm7, %v6434_v21, -inf }
 0x333   : > { %1090 = vmax.xlane.f32.xlu0 %v1089_v29 }
 0x349   : > { %1126 = vbcast.lane.b32.xlu0 %v6330_v0, 264 }
 0x3c0   : > { %v1091_v8 = vpop.xlane.xlu0 %1090 }
 0x3c1   : > { %v1096_v19 = vrot.slane %v1091_v8, %v6440_v25  ;;  %v1100_v20 = vrot.slane %v1091_v8, %v6443_v22  ;;  %v1108_v23 = vrot.slane %v1091_v8, %v6446_v4  ;;  %v1104_v35 = vrot.slane %v1091_v8, %v6458_v32 }
 0x3c3   : > { %vm1113_vm8 = vcmp.ge.f32.partialorder %v6397_v31, %v1096_v19  ;;  %vm1116_vm9 = vcmp.ge.f32.partialorder %v6391_v41, %v1100_v20  ;;  %vm1114_vm10 = vcmp.ge.f32.partialorder %v6395_v43, %v1096_v19  ;;  %vm1119_vm11 = vcmp.ge.f32.partialorder %v6421_v48, %v1108_v23  ;;  %v5893_v43 = vpop.eup %5892 }
 0x3c4   : > { %v1127_v24 = vpop.permute.xlu0 %1126  ;;  %v1128_v27 = vsel %vm1113_vm8, %v6448_v9, 16  ;;  %v1134_v34 = vsel %vm1119_vm11, %v6448_v9, 16  ;;  %vm1115_vm12 = vcmp.ge.f32.partialorder %v6393_v42, %v1100_v20  ;;  %vm1117_vm13 = vcmp.ge.f32.partialorder %v6409_v47, %v1104_v35 }
 0x3c5   : > { %1137 = vperm.xlu1 %5861, %v1128_v27   ;;  %v1131_v30 = vsel %vm1116_vm9, %v1127_v24, 16  ;;  %v1129_v28 = vsel %vm1114_vm10, %v1127_v24, 16  ;;  %v1130_v37 = vsel %vm1115_vm12, %v6448_v9, 16  ;;  %v1132_v39 = vsel %vm1117_vm13, %v6448_v9, 16 }
 0x3c6   : > { %1146 = vperm.xlu0 %5862, %v1131_v30   ;;  %vm1118_vm14 = vcmp.ge.f32.partialorder %v6405_v17, %v1104_v35  ;;  %vm1120_vm15 = vcmp.ge.f32.partialorder %v6419_v52, %v1108_v23  ;;  %v1794_v52 = vrot.slane %v5893_v43, %v6341_v6 }
 0x3c7   : > { %v1133_v40 = vsel %vm1118_vm14, %v1127_v24, 16  ;;  %v1135_v38 = vsel %vm1120_vm15, %v1127_v24, 16  ;;  %vm1736_vm15 = vcmask 1040384  }
 0x3c9   : > { %1140 = vperm.xlu1 %5861, %v1129_v28  }
 0x3ca   : > { %1155 = vperm.xlu0 %5862, %v1134_v34  }
 0x3cd   : > { %1143 = vperm.xlu1 %5861, %v1130_v37  }
 0x3d1   : > { %1149 = vperm.xlu1 %5861, %v1132_v39  }
 0x3d5   : > { %1152 = vperm.xlu1 %5861, %v1133_v40  }
 0x3d9   : > { %1158 = vperm.xlu1 %5861, %v1135_v38  }
 0x444   : > { %v1138_v60 = vpop.permute.xlu1 %1137 }
 0x445   : > { %v1147_v55 = vpop.permute.xlu0 %1146  ;;  %v1163_v18 = vrot.slane %v1138_v60, %v6337_v5 }
 0x446   : > { %v1176_v11 = vrot.slane %v1147_v55, %v6341_v6 }
 0x448   : > { %v1141_v51 = vpop.permute.xlu1 %1140 }
 0x449   : > { %v1167_v13 = vrot.slane %v1141_v51, %v6341_v6  ;;  %v1156_v1 = vpop.permute.xlu0 %1155 }
 0x44a   : > { %v1190_v54 = vrot.slane %v1156_v1, %v6337_v5 }
 0x44b   : > { %v1168_v14 = vsel %vm919_vm3, %v1167_v13, %v1163_v18  ;;  %v6028_v13 = vmov 1966171168  }
 0x44c   : > { %v1144_v53 = vpop.permute.xlu1 %1143 }
 0x44d   : > { %v1172_v36 = vrot.slane %v1144_v53, %v6337_v5 }
 0x44f   : > { %v1177_v49 = vsel %vm919_vm3, %v1176_v11, %v1172_v36 }
 0x450   : > { %v1150_v59 = vpop.permute.xlu1 %1149  ;;  %v1196_v3 = vsel %vm948_vm4, %v1177_v49, %v1168_v14 }
 0x451   : > { %v1181_v62 = vrot.slane %v1150_v59, %v6337_v5 }
 0x454   : > { %v1153_v44 = vpop.permute.xlu1 %1152 }
 0x455   : > { %v1185_v46 = vrot.slane %v1153_v44, %v6341_v6 }
 0x457   : > { %v1186_v50 = vsel %vm919_vm3, %v1185_v46, %v1181_v62 }
 0x458   : > { %v1159_v15 = vpop.permute.xlu1 %1158  ;;  %v1197_v57 = vsel %vm949_vm5, %v1186_v50, %v1196_v3 }
 0x459   : > { %v1194_v7 = vrot.slane %v1159_v15, %v6341_v6 }
 0x45b   : > { %v1195_v56 = vsel %vm919_vm3, %v1194_v7, %v1190_v54 }
 0x45c   : > { %v1198_v58 = vsel %vm951_vm6, %v1195_v56, %v1197_v57 }
 0x45d   : > { %v1199_v29 = vsel %vm1088_vm7, %v1198_v58, 2147483647 }
 0x45e   : > { %v1201_v63 = vshra.s32 %v1199_v29, 16  ;;  %v1200_v19 = vand.u32 65535, %v1199_v29 }
 0x460   : > { %v1203_v8 = vcvt.s32.f32 %v1201_v63  ;;  %v1202_v23 = vcvt.s32.f32 %v1200_v19 }
 0x462   : > { %1204 = vmin.xlane.f32.xlu0 %v1203_v8 }
 0x4ef   : > { %v1205_v20 = vpop.xlane.xlu0 %1204 }
 0x4f0   : > { %vm1206_vm8 = vcmp.eq.f32.partialorder %v1203_v8, %v1205_v20  ;;  %v1211_v27 = vcvt.f32.s32 %v1205_v20 }
 0x4f1   : > { %v1207_v24 = vsel %vm1206_vm8, %v1202_v23, inf }
 0x4f2   : > { %1208 = vmin.xlane.f32.xlu1 %v1207_v24  ;;  %v1212_v28 = vshll.u32 %v1211_v27, 16 }
 0x57f   : > { %v1209_v30 = vpop.xlane.xlu1 %1208 }
 0x580   : > { %v1210_v34 = vcvt.f32.s32 %v1209_v30 }
 0x582   : > { %v1213_v35 = vadd.s32 %v1212_v28, %v1210_v34 }
 0x584   : > { %vm1214_vm9 = vcmp.eq.s32.totalorder %v6330_v0, %v1213_v35 }
 0x585   : > { %v5356_v37 = vsel %vm1214_vm9, 1.0, %v6024_v33 }
 0x586   : > { %vm1217_vm10 = vcmp.gt.f32.partialorder %v5356_v37, 0.0 }
 0x587   : > { %v1218_v39 = vsel %vm1217_vm10, -3e+38, %v6434_v21  ;;  %v1394_v21 = vunpack.c.l.s4 %v6028_v13 }
 0x588   : > { %v1219_v40 = vsel %vm1088_vm7, %v1218_v39, -inf }
 0x589   : > { %1220 = vmax.xlane.f32.xlu0 %v1219_v40  ;;  %v1395_v46 = vunpack.c.0.s8 %v1394_v21 }
 0x58b   : > { %v6492_v62 = vsub.s32 %v1395_v46, %v6332_v2 }
 0x58d   : > { %v1399_v15 = vrot.slane %v5356_v37, %v6492_v62 }
 0x58f   : > { %v1400_v7 = vcombine.high %v1399_v15, %v1399_v15  ;;  %v1407_v56 = vrot.slane %v1399_v15, %v6492_v62 }
 0x591   : > { %v1414_v63 = vrot.slane %v1400_v7, %v6492_v62  ;;  %v1415_v23 = vcombine.high %v1407_v56, %v1407_v56 }
 0x593   : > { %v1416_v34 = vcombine.high %v1414_v63, %v1414_v63 }
 0x616   : > { %v1221_v38 = vpop.xlane.xlu0 %1220 }
 0x617   : > { %vm1222_vm11 = vcmp.ge.f32.partialorder %v1218_v39, %v1221_v38 }
 0x618   : > { %v1223_v60 = vsel %vm1222_vm11, %v6330_v0, 16 }
 0x619   : > { %v1224_v51 = vsel %vm1088_vm7, %v1223_v60, 2147483647 }
 0x61a   : > { %v1226_v53 = vshra.s32 %v1224_v51, 16  ;;  %v1225_v59 = vand.u32 65535, %v1224_v51 }
 0x61c   : > { %v1228_v55 = vcvt.s32.f32 %v1226_v53  ;;  %v1227_v44 = vcvt.s32.f32 %v1225_v59 }
 0x61e   : > { %1229 = vmin.xlane.f32.xlu0 %v1228_v55 }
 0x6ab   : > { %v1230_v36 = vpop.xlane.xlu0 %1229 }
 0x6ac   : > { %vm1231_vm12 = vcmp.eq.f32.partialorder %v1228_v55, %v1230_v36  ;;  %v1236_v1 = vcvt.f32.s32 %v1230_v36 }
 0x6ad   : > { %v1232_v11 = vsel %vm1231_vm12, %v1227_v44, inf  ;;  %vm1741_vm12 = vcmask 1041408  }
 0x6ae   : > { %1233 = vmin.xlane.f32.xlu0 %v1232_v11  ;;  %v1237_v49 = vshll.u32 %v1236_v1, 16 }
 0x73b   : > { %v1234_v18 = vpop.xlane.xlu0 %1233 }
 0x73c   : > { %v1235_v50 = vcvt.f32.s32 %v1234_v18 }
 0x73e   : > { %v1238_v14 = vadd.s32 %v1237_v49, %v1235_v50 }
 0x740   : > { %vm1239_vm13 = vcmp.eq.s32.totalorder %v6330_v0, %v1238_v14 }
 0x741   : > { %v5357_v54 = vsel %vm1239_vm13, 1.0, %v6024_v33 }
 0x742   : > { %vm1242_vm14 = vcmp.gt.f32.partialorder %v5357_v54, 0.0  ;;  %v1428_v3 = vrot.slane %v5357_v54, %v6492_v62 }
 0x743   : > { %v1243_v57 = vsel %vm1242_vm14, -3e+38, %v1218_v39 }
 0x744   : > { %v1244_v2 = vsel %vm1088_vm7, %v1243_v57, -inf  ;;  %v1429_v58 = vcombine.high %v1428_v3, %v1428_v3  ;;  %v1436_v29 = vrot.slane %v1428_v3, %v6492_v62 }
 0x745   : > { %1245 = vmax.xlane.f32.xlu1 %v1244_v2 }
 0x746   : > { %v1443_v8 = vrot.slane %v1429_v58, %v6492_v62  ;;  %v1444_v19 = vcombine.high %v1436_v29, %v1436_v29  ;;  %v1599_v20 = vrot.slane %v1436_v29, %v6440_v25 }
 0x748   : > { %v1445_v24 = vcombine.high %v1443_v8, %v1443_v8  ;;  %v1603_v27 = vrot.slane %v1443_v8, %v6440_v25  ;;  %v1607_v30 = vrot.slane %v1444_v19, %v6440_v25  ;;  %v1737_v28 = vsel %vm1736_vm15, %v1407_v56, %v1599_v20 }
 0x74a   : > { %v1611_v35 = vrot.slane %v1445_v24, %v6440_v25  ;;  %v1738_v37 = vsel %vm1736_vm15, %v1414_v63, %v1603_v27  ;;  %v1739_v39 = vsel %vm1736_vm15, %v1415_v23, %v1607_v30 }
 0x74c   : > { %v1740_v40 = vsel %vm1736_vm15, %v1416_v34, %v1611_v35 }
 0x7d2   : > { %v1246_v38 = vpop.xlane.xlu1 %1245 }
 0x7d3   : > { %vm1247_vm8 = vcmp.ge.f32.partialorder %v1243_v57, %v1246_v38 }
 0x7d4   : > { %v1248_v60 = vsel %vm1247_vm8, %v6330_v0, 16 }
 0x7d5   : > { %v1249_v51 = vsel %vm1088_vm7, %v1248_v60, 2147483647 }
 0x7d6   : > { %v1251_v53 = vshra.s32 %v1249_v51, 16  ;;  %v1250_v59 = vand.u32 65535, %v1249_v51 }
 0x7d8   : > { %v1253_v55 = vcvt.s32.f32 %v1251_v53  ;;  %v1252_v44 = vcvt.s32.f32 %v1250_v59 }
 0x7da   : > { %1254 = vmin.xlane.f32.xlu0 %v1253_v55 }
 0x867   : > { %v1255_v36 = vpop.xlane.xlu0 %1254 }
 0x868   : > { %vm1256_vm9 = vcmp.eq.f32.partialorder %v1253_v55, %v1255_v36  ;;  %v1261_v13 = vcvt.f32.s32 %v1255_v36 }
 0x869   : > { %v1257_v11 = vsel %vm1256_vm9, %v1252_v44, inf }
 0x86a   : > { %1258 = vmin.xlane.f32.xlu1 %v1257_v11  ;;  %v1262_v46 = vshll.u32 %v1261_v13, 16 }
 0x8f7   : > { %v1259_v21 = vpop.xlane.xlu1 %1258 }
 0x8f8   : > { %v1260_v1 = vcvt.f32.s32 %v1259_v21 }
 0x8fa   : > { %v1263_v18 = vadd.s32 %v1262_v46, %v1260_v1 }
 0x8fc   : > { %vm1264_vm10 = vcmp.eq.s32.totalorder %v6330_v0, %v1263_v18 }
 0x8fd   : > { %v5358_v49 = vsel %vm1264_vm10, 1.0, %v6024_v33  ;;  %vm1746_vm10 = vcmask 1042432  }
 0x8fe   : > { %vm1267_vm11 = vcmp.gt.f32.partialorder %v5358_v49, 0.0  ;;  %v1453_v50 = vrot.slane %v5358_v49, %v6492_v62 }
 0x8ff   : > { %v1268_v15 = vsel %vm1267_vm11, -3e+38, %v1243_v57 }
 0x900   : > { %v1269_v14 = vsel %vm1088_vm7, %v1268_v15, -inf  ;;  %v1454_v54 = vcombine.high %v1453_v50, %v1453_v50  ;;  %v1461_v7 = vrot.slane %v1453_v50, %v6492_v62 }
 0x901   : > { %1270 = vmax.xlane.f32.xlu0 %v1269_v14 }
 0x902   : > { %v1468_v3 = vrot.slane %v1454_v54, %v6492_v62  ;;  %v1469_v56 = vcombine.high %v1461_v7, %v1461_v7  ;;  %v1619_v2 = vrot.slane %v1461_v7, %v6440_v25 }
 0x904   : > { %v1470_v58 = vcombine.high %v1468_v3, %v1468_v3  ;;  %v1623_v29 = vrot.slane %v1468_v3, %v6440_v25  ;;  %v1627_v63 = vrot.slane %v1469_v56, %v6440_v25  ;;  %v1742_v8 = vsel %vm1741_vm12, %v1737_v28, %v1619_v2 }
 0x906   : > { %v1631_v57 = vrot.slane %v1470_v58, %v6440_v25  ;;  %v1743_v19 = vsel %vm1741_vm12, %v1738_v37, %v1623_v29  ;;  %v1744_v20 = vsel %vm1741_vm12, %v1739_v39, %v1627_v63 }
 0x908   : > { %v1745_v23 = vsel %vm1741_vm12, %v1740_v40, %v1631_v57 }
 0x98e   : > { %v1271_v24 = vpop.xlane.xlu0 %1270 }
 0x98f   : > { %vm1272_vm13 = vcmp.ge.f32.partialorder %v1268_v15, %v1271_v24 }
 0x990   : > { %v1273_v27 = vsel %vm1272_vm13, %v6330_v0, 16 }
 0x991   : > { %v1274_v30 = vsel %vm1088_vm7, %v1273_v27, 2147483647 }
 0x992   : > { %v1276_v34 = vshra.s32 %v1274_v30, 16  ;;  %v1275_v38 = vand.u32 65535, %v1274_v30 }
 0x994   : > { %v1278_v35 = vcvt.s32.f32 %v1276_v34  ;;  %v1277_v28 = vcvt.s32.f32 %v1275_v38 }
 0x996   : > { %1279 = vmin.xlane.f32.xlu1 %v1278_v35 }
 0xa23   : > { %v1280_v60 = vpop.xlane.xlu1 %1279 }
 0xa24   : > { %vm1281_vm14 = vcmp.eq.f32.partialorder %v1278_v35, %v1280_v60  ;;  %v1286_v37 = vcvt.f32.s32 %v1280_v60 }
 0xa25   : > { %v1282_v51 = vsel %vm1281_vm14, %v1277_v28, inf }
 0xa26   : > { %1283 = vmin.xlane.f32.xlu0 %v1282_v51  ;;  %v1287_v39 = vshll.u32 %v1286_v37, 16 }
 0xab3   : > { %v1284_v53 = vpop.xlane.xlu0 %1283 }
 0xab4   : > { %v1285_v55 = vcvt.f32.s32 %v1284_v53 }
 0xab6   : > { %v1288_v40 = vadd.s32 %v1287_v39, %v1285_v55 }
 0xab8   : > { %vm1289_vm8 = vcmp.eq.s32.totalorder %v6330_v0, %v1288_v40 }
 0xab9   : > { %v5359_v59 = vsel %vm1289_vm8, 1.0, %v6024_v33 }
 0xaba   : > { %vm1292_vm9 = vcmp.gt.f32.partialorder %v5359_v59, 0.0  ;;  %v1478_v36 = vrot.slane %v5359_v59, %v6492_v62 }
 0xabb   : > { %v1293_v44 = vsel %vm1292_vm9, -3e+38, %v1268_v15  ;;  %vm1751_vm9 = vcmask 1043456  }
 0xabc   : > { %v1294_v11 = vsel %vm1088_vm7, %v1293_v44, -inf  ;;  %v1479_v13 = vcombine.high %v1478_v36, %v1478_v36  ;;  %v1486_v21 = vrot.slane %v1478_v36, %v6492_v62 }
 0xabd   : > { %1295 = vmax.xlane.f32.xlu1 %v1294_v11 }
 0xabe   : > { %v1493_v46 = vrot.slane %v1479_v13, %v6492_v62  ;;  %v1494_v1 = vcombine.high %v1486_v21, %v1486_v21  ;;  %v1639_v18 = vrot.slane %v1486_v21, %v6440_v25 }
 0xac0   : > { %v1495_v49 = vcombine.high %v1493_v46, %v1493_v46  ;;  %v1643_v50 = vrot.slane %v1493_v46, %v6440_v25  ;;  %v1647_v14 = vrot.slane %v1494_v1, %v6440_v25  ;;  %v1747_v54 = vsel %vm1746_vm10, %v1742_v8, %v1639_v18 }
 0xac2   : > { %v1651_v15 = vrot.slane %v1495_v49, %v6440_v25  ;;  %v1748_v7 = vsel %vm1746_vm10, %v1743_v19, %v1643_v50  ;;  %v1749_v3 = vsel %vm1746_vm10, %v1744_v20, %v1647_v14 }
 0xac4   : > { %v1750_v56 = vsel %vm1746_vm10, %v1745_v23, %v1651_v15 }
 0xb4a   : > { %v1296_v2 = vpop.xlane.xlu1 %1295 }
 0xb4b   : > { %vm1297_vm11 = vcmp.ge.f32.partialorder %v1293_v44, %v1296_v2 }
 0xb4c   : > { %v1298_v58 = vsel %vm1297_vm11, %v6330_v0, 16 }
 0xb4d   : > { %v1299_v29 = vsel %vm1088_vm7, %v1298_v58, 2147483647 }
 0xb4e   : > { %v1301_v63 = vshra.s32 %v1299_v29, 16  ;;  %v1300_v24 = vand.u32 65535, %v1299_v29 }
 0xb50   : > { %v1303_v57 = vcvt.s32.f32 %v1301_v63  ;;  %v1302_v8 = vcvt.s32.f32 %v1300_v24 }
 0xb52   : > { %1304 = vmin.xlane.f32.xlu0 %v1303_v57 }
 0xbdf   : > { %v1305_v27 = vpop.xlane.xlu0 %1304 }
 0xbe0   : > { %vm1306_vm13 = vcmp.eq.f32.partialorder %v1303_v57, %v1305_v27  ;;  %v1311_v19 = vcvt.f32.s32 %v1305_v27 }
 0xbe1   : > { %v1307_v30 = vsel %vm1306_vm13, %v1302_v8, inf }
 0xbe2   : > { %1308 = vmin.xlane.f32.xlu1 %v1307_v30  ;;  %v1312_v20 = vshll.u32 %v1311_v19, 16 }
 0xc6f   : > { %v1309_v34 = vpop.xlane.xlu1 %1308 }
 0xc70   : > { %v1310_v35 = vcvt.f32.s32 %v1309_v34 }
 0xc72   : > { %v1313_v23 = vadd.s32 %v1312_v20, %v1310_v35 }
 0xc74   : > { %vm1314_vm14 = vcmp.eq.s32.totalorder %v6330_v0, %v1313_v23 }
 0xc75   : > { %v5360_v38 = vsel %vm1314_vm14, 1.0, %v6024_v33 }
 0xc76   : > { %vm1317_vm8 = vcmp.gt.f32.partialorder %v5360_v38, 0.0  ;;  %v1503_v60 = vrot.slane %v5360_v38, %v6492_v62 }
 0xc77   : > { %v1318_v28 = vsel %vm1317_vm8, -3e+38, %v1293_v44 }
 0xc78   : > { %v1319_v51 = vsel %vm1088_vm7, %v1318_v28, -inf  ;;  %v1504_v37 = vcombine.high %v1503_v60, %v1503_v60  ;;  %v1511_v53 = vrot.slane %v1503_v60, %v6492_v62 }
 0xc79   : > { %1320 = vmax.xlane.f32.xlu0 %v1319_v51 }
 0xc7a   : > { %v1518_v39 = vrot.slane %v1504_v37, %v6492_v62  ;;  %v1519_v55 = vcombine.high %v1511_v53, %v1511_v53  ;;  %v1659_v40 = vrot.slane %v1511_v53, %v6440_v25 }
 0xc7c   : > { %v1520_v59 = vcombine.high %v1518_v39, %v1518_v39  ;;  %v1663_v36 = vrot.slane %v1518_v39, %v6440_v25  ;;  %v1667_v11 = vrot.slane %v1519_v55, %v6440_v25  ;;  %v1752_v13 = vsel %vm1751_vm9, %v1747_v54, %v1659_v40 }
 0xc7e   : > { %v1671_v44 = vrot.slane %v1520_v59, %v6440_v25  ;;  %v1753_v21 = vsel %vm1751_vm9, %v1748_v7, %v1663_v36  ;;  %v1754_v46 = vsel %vm1751_vm9, %v1749_v3, %v1667_v11 }
 0xc80   : > { %v1755_v1 = vsel %vm1751_vm9, %v1750_v56, %v1671_v44 }
 0xd06   : > { %v1321_v18 = vpop.xlane.xlu0 %1320 }
 0xd07   : > { %vm1322_vm11 = vcmp.ge.f32.partialorder %v1318_v28, %v1321_v18 }
 0xd08   : > { %v1323_v49 = vsel %vm1322_vm11, %v6330_v0, 16  ;;  %vm1756_vm11 = vcmask 1044480  }
 0xd09   : > { %v1324_v50 = vsel %vm1088_vm7, %v1323_v49, 2147483647 }
 0xd0a   : > { %v1326_v14 = vshra.s32 %v1324_v50, 16  ;;  %v1325_v2 = vand.u32 65535, %v1324_v50 }
 0xd0c   : > { %v1328_v15 = vcvt.s32.f32 %v1326_v14  ;;  %v1327_v54 = vcvt.s32.f32 %v1325_v2 }
 0xd0e   : > { %1329 = vmin.xlane.f32.xlu1 %v1328_v15 }
 0xd9b   : > { %v1330_v58 = vpop.xlane.xlu1 %1329 }
 0xd9c   : > { %vm1331_vm13 = vcmp.eq.f32.partialorder %v1328_v15, %v1330_v58  ;;  %v1336_v7 = vcvt.f32.s32 %v1330_v58 }
 0xd9d   : > { %v1332_v29 = vsel %vm1331_vm13, %v1327_v54, inf }
 0xd9e   : > { %1333 = vmin.xlane.f32.xlu0 %v1332_v29  ;;  %v1337_v3 = vshll.u32 %v1336_v7, 16 }
 0xe2b   : > { %v1334_v63 = vpop.xlane.xlu0 %1333 }
 0xe2c   : > { %v1335_v57 = vcvt.f32.s32 %v1334_v63 }
 0xe2e   : > { %v1338_v56 = vadd.s32 %v1337_v3, %v1335_v57 }
 0xe30   : > { %vm1339_vm14 = vcmp.eq.s32.totalorder %v6330_v0, %v1338_v56 }
 0xe31   : > { %v5361_v24 = vsel %vm1339_vm14, 1.0, %v6024_v33 }
 0xe32   : > { %vm1342_vm8 = vcmp.gt.f32.partialorder %v5361_v24, 0.0  ;;  %v1528_v27 = vrot.slane %v5361_v24, %v6492_v62 }
 0xe33   : > { %v1343_v8 = vsel %vm1342_vm8, -3e+38, %v1318_v28 }
 0xe34   : > { %v1344_v30 = vsel %vm1088_vm7, %v1343_v8, -inf  ;;  %v1529_v19 = vcombine.high %v1528_v27, %v1528_v27  ;;  %v1536_v34 = vrot.slane %v1528_v27, %v6492_v62 }
 0xe35   : > { %1345 = vmax.xlane.f32.xlu1 %v1344_v30 }
 0xe36   : > { %v1543_v20 = vrot.slane %v1529_v19, %v6492_v62  ;;  %v1544_v35 = vcombine.high %v1536_v34, %v1536_v34  ;;  %v1679_v23 = vrot.slane %v1536_v34, %v6440_v25 }
 0xe38   : > { %v1545_v38 = vcombine.high %v1543_v20, %v1543_v20  ;;  %v1683_v60 = vrot.slane %v1543_v20, %v6440_v25  ;;  %v1687_v51 = vrot.slane %v1544_v35, %v6440_v25  ;;  %v1757_v37 = vsel %vm1756_vm11, %v1752_v13, %v1679_v23 }
 0xe3a   : > { %v1691_v28 = vrot.slane %v1545_v38, %v6440_v25  ;;  %v1758_v53 = vsel %vm1756_vm11, %v1753_v21, %v1683_v60  ;;  %v1759_v39 = vsel %vm1756_vm11, %v1754_v46, %v1687_v51 }
 0xe3c   : > { %v1760_v55 = vsel %vm1756_vm11, %v1755_v1, %v1691_v28 }
 0xec2   : > { %v1346_v40 = vpop.xlane.xlu1 %1345 }
 0xec3   : > { %vm1347_vm13 = vcmp.ge.f32.partialorder %v1343_v8, %v1346_v40 }
 0xec4   : > { %v1348_v59 = vsel %vm1347_vm13, %v6330_v0, 16  ;;  %vm1761_vm13 = vcmask 1045504  }
 0xec5   : > { %v1349_v36 = vsel %vm1088_vm7, %v1348_v59, 2147483647 }
 0xec6   : > { %v1351_v11 = vshra.s32 %v1349_v36, 16  ;;  %v1350_v18 = vand.u32 65535, %v1349_v36 }
 0xec8   : > { %v1353_v44 = vcvt.s32.f32 %v1351_v11  ;;  %v1352_v50 = vcvt.s32.f32 %v1350_v18  ;;  %v5895_v18 = vpop.eup %5894 }
 0xec9   : > { %v5897_v41 = vpop.eup %5896  ;;  %v1790_v47 = vrot.slane %v5895_v18, %v6337_v5 }
 0xeca   : > { %1354 = vmin.xlane.f32.xlu0 %v1353_v44  ;;  %v5899_v31 = vpop.eup %5898 }
 0xf57   : > { %v1355_v49 = vpop.xlane.xlu0 %1354 }
 0xf58   : > { %vm1356_vm14 = vcmp.eq.f32.partialorder %v1353_v44, %v1355_v49  ;;  %v1361_v13 = vcvt.f32.s32 %v1355_v49  ;;  %v5901_v49 = vpop.eup %5900 }
 0xf59   : > { %v1357_v14 = vsel %vm1356_vm14, %v1352_v50, inf  ;;  %v5903_v50 = vpop.eup %5902 }
 0xf5a   : > { %1358 = vmin.xlane.f32.xlu1 %v1357_v14  ;;  %v1362_v21 = vshll.u32 %v1361_v13, 16  ;;  %v5905_v13 = vpop.eup %5904 }
 0xfe7   : > { %v1359_v15 = vpop.xlane.xlu1 %1358 }
 0xfe8   : > { %v1360_v46 = vcvt.f32.s32 %v1359_v15  ;;  %v1799_v15 = vrot.slane %v5899_v31, %v6337_v5 }
 0xfea   : > { %v1363_v1 = vadd.s32 %v1362_v21, %v1360_v46  ;;  %v1803_v21 = vrot.slane %v5897_v41, %v6341_v6  ;;  %v5907_v46 = vpop.eup %5906 }
 0xfec   : > { %vm1364_vm8 = vcmp.eq.s32.totalorder %v6330_v0, %v1363_v1 }
 0xfed   : > { %v5362_v2 = vsel %vm1364_vm8, 1.0, %v6024_v33 }
 0xfee   : > { %vm1367_vm11 = vcmp.gt.f32.partialorder %v5362_v2, 0.0  ;;  %v1553_v58 = vrot.slane %v5362_v2, %v6492_v62 }
 0xfef   : > { %v1368_v54 = vsel %vm1367_vm11, -3e+38, %v1343_v8  ;;  %vm1766_vm11 = vcmask 1046528  }
 0xff0   : > { %v1369_v29 = vsel %vm1088_vm7, %v1368_v54, -inf  ;;  %v1554_v7 = vcombine.high %v1553_v58, %v1553_v58  ;;  %v1561_v63 = vrot.slane %v1553_v58, %v6492_v62 }
 0xff1   : > { %1370 = vmax.xlane.f32.xlu0 %v1369_v29  ;;  %v1808_v29 = vrot.slane %v5903_v50, %v6337_v5 }
 0xff2   : > { %v1568_v3 = vrot.slane %v1554_v7, %v6492_v62  ;;  %v1569_v57 = vcombine.high %v1561_v63, %v1561_v63  ;;  %v1699_v56 = vrot.slane %v1561_v63, %v6440_v25  ;;  %v1812_v7 = vrot.slane %v5901_v49, %v6341_v6 }
 0xff4   : > { %v1570_v24 = vcombine.high %v1568_v3, %v1568_v3  ;;  %v1703_v27 = vrot.slane %v1568_v3, %v6440_v25  ;;  %v1707_v30 = vrot.slane %v1569_v57, %v6440_v25  ;;  %v1762_v19 = vsel %vm1761_vm13, %v1757_v37, %v1699_v56 }
 0xff6   : > { %v6582_v34 = vsel %vm1761_vm13, %v1758_v53, %v1703_v27  ;;  %v6584_v8 = vsel %vm1761_vm13, %v1759_v39, %v1707_v30  ;;  %v1711_v20 = vrot.slane %v1570_v24, %v6440_v25  ;;  %v1804_v27 = vsel %vm919_vm3, %v1803_v21, %v1799_v15 }
 0xff7   : > { %v1817_v30 = vrot.slane %v5907_v46, %v6337_v5 }
 0xff8   : > { %v6587_v35 = vsel %vm1761_vm13, %v1760_v55, %v1711_v20  ;;  %v1821_v20 = vrot.slane %v5905_v13, %v6341_v6 }
0x107e   : > { %v1371_v23 = vpop.xlane.xlu0 %1370 }
0x107f   : > { %vm1372_vm14 = vcmp.ge.f32.partialorder %v1368_v54, %v1371_v23  ;;  %v1795_v54 = vsel %vm919_vm3, %v1794_v52, %v1790_v47 }
0x1080   : > { %v1373_v38 = vsel %vm1372_vm14, %v6330_v0, 16 }
0x1081   : > { %v1374_v60 = vsel %vm1088_vm7, %v1373_v38, 2147483647 }
0x1082   : > { %v1376_v51 = vshra.s32 %v1374_v60, 16  ;;  %v1375_v40 = vand.u32 65535, %v1374_v60 }
0x1084   : > { %v1378_v28 = vcvt.s32.f32 %v1376_v51  ;;  %v1377_v37 = vcvt.s32.f32 %v1375_v40 }
0x1086   : > { %1379 = vmin.xlane.f32.xlu1 %v1378_v28 }
0x1113   : > { %v1380_v59 = vpop.xlane.xlu1 %1379 }
0x1114   : > { %vm1381_vm8 = vcmp.eq.f32.partialorder %v1378_v28, %v1380_v59  ;;  %v1386_v39 = vcvt.f32.s32 %v1380_v59  ;;  %v1822_v28 = vsel %vm919_vm3, %v1821_v20, %v1817_v30 }
0x1115   : > { %v1382_v53 = vsel %vm1381_vm8, %v1377_v37, inf }
0x1116   : > { %1383 = vmin.xlane.f32.xlu0 %v1382_v53  ;;  %v1387_v36 = vshll.u32 %v1386_v39, 16 }
0x11a3   : > { %v1384_v55 = vpop.xlane.xlu0 %1383 }
0x11a4   : > { %v1385_v11 = vcvt.f32.s32 %v1384_v55 }
0x11a6   : > { %v1388_v44 = vadd.s32 %v1387_v36, %v1385_v11 }
0x11a8   : > { %vm1389_vm7 = vcmp.eq.s32.totalorder %v6330_v0, %v1388_v44 }
0x11a9   : > { %v5363_v42 = vsel %vm1389_vm7, 1.0, %v6024_v33 }
0x11aa   : > { %v1578_v17 = vrot.slane %v5363_v42, %v6492_v62 }
0x11ac   : > { %v1579_v48 = vcombine.high %v1578_v17, %v1578_v17  ;;  %v1586_v14 = vrot.slane %v1578_v17, %v6492_v62 }
0x11ae   : > { %v1593_v1 = vrot.slane %v1579_v48, %v6492_v62  ;;  %v1594_v2 = vcombine.high %v1586_v14, %v1586_v14  ;;  %v1719_v58 = vrot.slane %v1586_v14, %v6440_v25 }
0x11b0   : > { %v1767_v63 = vsel %vm1766_vm11, %v1762_v19, %v1719_v58  ;;  %v1723_v3 = vrot.slane %v1593_v1, %v6440_v25  ;;  %v1727_v57 = vrot.slane %v1594_v2, %v6440_v25  ;;  %v1595_v56 = vcombine.high %v1593_v1, %v1593_v1 }
0x11b1   : > { %5568 = vmatmul.mubr.msk.f32.vlgmr.msra.gmra.mrb[12].mxu0 %vm482_vm0, %v1767_v63  ;;  %v1851_v24 = vmul.f32 %v1795_v54, %v1767_v63  ;;  %v2163_v40 = vpack.c.bf16 %v1767_v63, %v1767_v63  ;;  %v5868_v54 = vld [vmem:[%s7356_s6] sm:$0xff]  }
0x11b2   : > { %5799 = vmatpush3.bf16.msra.mxu0 %v6314_v45  ;;  %v1768_v23 = vsel %vm1766_vm11, %v6582_v34, %v1723_v3  ;;  %5581 = vmatprep.mubr.msk.f32.mxu0 %vm6025_vm1, %v6024_v33  ;;  %v1769_v19 = vsel %vm1766_vm11, %v6584_v8, %v1727_v57  ;;  %v1731_v38 = vrot.slane %v1595_v56, %v6440_v25 }
0x11b3   : > { %5575 = vmatmul.mubr.msk.f32.vlgmr.msra.gmra.mrb[12].mxu1 %vm482_vm0, %v1768_v23  ;;  %5591 = vmatprep.subr.bf16.mxu0 %v6024_v33  ;;  %v1855_v60 = vsel %vm482_vm0, %v1851_v24, 0.0  ;;  %v1852_v6 = vmul.f32 %v1804_v27, %v1768_v23  ;;  %v1813_v45 = vsel %vm919_vm3, %v1812_v7, %v1808_v29  ;;  %v2169_v37 = vsel %vm482_vm0, %v2163_v40, 0 }
0x11b4   : > { %5802 = vmatpush3.bf16.msra.mxu1 %v6327_v61  ;;  %1856 = vadd.xlane.f32.xlu1 %v1855_v60  ;;  %v1770_v34 = vsel %vm1766_vm11, %v6587_v35, %v1731_v38  ;;  %v1853_v51 = vmul.f32 %v1813_v45, %v1769_v19  ;;  %v5869_v60 = vld [vmem:[%s7356_s6 + $0x8] sm:$0xff]   ;;  %vm2608_vm3 = vcmask 64512  }
0x11b5   : > { %5582 = vmatmul.mubr.msk.f32.vlgmr.msra.gmra.mrb[14].mxu0 %vm482_vm0, %v1769_v19  ;;  %5588 = vmatprep.mubr.msk.f32.mxu1 %vm6025_vm1, %v6024_v33  ;;  %v1858_v8 = vsel %vm482_vm0, %v1852_v6, 0.0  ;;  %v1854_v61 = vmul.f32 %v1822_v28, %v1770_v34  ;;  %v2166_v59 = vpack.c.bf16 %v1770_v34, %v1770_v34 }
0x11b6   : > { %5592 = vmatpush3.bf16.msra.mxu0 %v6177_v10  ;;  %5597 = vmatprep.subr.bf16.mxu1 %v6024_v33  ;;  %v1861_v35 = vsel %vm482_vm0, %v1853_v51, 0.0  ;;  %v2164_v10 = vpack.c.bf16 %v1768_v23, %v1768_v23 }
0x11b7   : > { %1859 = vadd.xlane.f32.xlu0 %v1858_v8  ;;  %5589 = vmatmul.mubr.msk.f32.vlgmr.msra.gmra.mrb[14].mxu1 %vm482_vm0, %v1770_v34  ;;  %v2301_v57 = vsel %vm482_vm0, %v2166_v59, 0 }
0x11b8   : > { %5598 = vmatpush3.bf16.msra.mxu1 %v6182_v12  ;;  %5593 = vmatprep.mubr.msk.bf16.mxu0 %vm6025_vm1, %v6024_v33  ;;  %v1864_v12 = vsel %vm482_vm0, %v1854_v61, 0.0 }
0x11b9   : > { %5603 = vmatprep.subr.bf16.mxu0 %v6024_v33  ;;  %1862 = vadd.xlane.f32.xlu1 %v1861_v35 }
0x11ba   : > { %5594 = vmatmul.mubr.msk.bf16.vlgmr.msra.gmra.mrb[16].mxu0 %vm482_vm0, %v2163_v40  ;;  %5599 = vmatprep.mubr.msk.bf16.mxu1 %vm6025_vm1, %v6024_v33 }
0x11bb   : > { %5604 = vmatpush3.bf16.msra.mxu0 %v6189_v16  ;;  %5609 = vmatprep.subr.bf16.mxu1 %v6024_v33  ;;  %v2165_v16 = vpack.c.bf16 %v1769_v19, %v1769_v19 }
0x11bc   : > { %1865 = vadd.xlane.f32.xlu0 %v1864_v12  ;;  %5600 = vmatmul.mubr.msk.bf16.vlgmr.msra.gmra.mrb[16].mxu1 %vm482_vm0, %v2164_v10 }
0x11bd   : > { %5610 = vmatpush3.bf16.msra.mxu1 %v6207_v26  ;;  %5605 = vmatprep.mubr.msk.bf16.mxu0 %vm6025_vm1, %v6024_v33  ;;  %v2213_v26 = vsel %vm482_vm0, %v2164_v10, 0  ;;  %v2257_v63 = vsel %vm482_vm0, %v2165_v16, 0 }
0x11be   : > { %5615 = vmatprep.subr.bf16.mxu0 %v6024_v33  ;;  %5611 = vmatprep.mubr.msk.bf16.mxu1 %vm6025_vm1, %v6024_v33 }
0x11bf   : > { %5621 = vmatprep.subr.bf16.mxu1 %v6024_v33 }
0x11c2   : > { %5606 = vmatmul.mubr.msk.bf16.vlgmr.msra.gmra.mrb[20].mxu0 %vm482_vm0, %v2165_v16 }
0x11c3   : > { %5617 = vmatprep.mubr.msk.bf16.mxu0 %vm6025_vm1, %v6024_v33 }
0x11c4   : > { %5616 = vmatpush3.bf16.xpose.msra.mxu0 %v2169_v37  ;;  %5612 = vmatmul.mubr.msk.bf16.vlgmr.msra.gmra.mrb[20].mxu1 %vm482_vm0, %v2166_v59 }
0x11c5   : > { %5627 = vmatprep.subr.bf16.mxu0 %v6024_v33  ;;  %5623 = vmatprep.mubr.msk.bf16.mxu1 %vm6025_vm1, %v6024_v33 }
0x11c6   : > { %5622 = vmatpush3.bf16.xpose.msra.mxu1 %v2213_v26 }
0x11c7   : > { %5633 = vmatprep.subr.bf16.mxu1 %v6024_v33 }
0x1241   : > { %v1857_v36 = vpop.xlane.xlu1 %1856 }
0x1244   : > { %v1860_v39 = vpop.xlane.xlu0 %1859 }
0x1246   : > { %v1863_v50 = vpop.xlane.xlu1 %1862 }
0x1249   : > { %v1866_v49 = vpop.xlane.xlu0 %1865 }
0x1284   : > { %v1936_v53 = vpop.f32.mrb[12].mxu0 }
0x1285   : > { %v5569_v55 = vpop.f32.mrb[13].mxu0  ;;  %v6671_v44 = vmul.f32 %v1936_v53, %v1857_v36 }
0x1286   : > { %v2009_v11 = vpop.f32.mrb[12].mxu1 }
0x1287   : > { %v6673_v43 = vmul.f32 %v2009_v11, %v1860_v39  ;;  %v5576_v18 = vpop.f32.mrb[13].mxu1 }
0x1288   : > { %v2082_v41 = vpop.f32.mrb[14].mxu0 }
0x1289   : > { %v2634_v42 = vpack.c.bf16 %v6673_v43, %v6671_v44  ;;  %v5583_v31 = vpop.f32.mrb[15].mxu0  ;;  %v6679_v14 = vmul.f32 %v2082_v41, %v1863_v50 }
0x128a   : > { %v2155_v17 = vpop.f32.mrb[14].mxu1 }
0x128b   : > { %v5590_v47 = vpop.f32.mrb[15].mxu1  ;;  %v6677_v52 = vmul.f32 %v2155_v17, %v1866_v49 }
0x128d   : > { %v2205_v48 = vpop.f32.mrb[16].mxu0  ;;  %v2635_v46 = vpack.c.bf16 %v6677_v52, %v6679_v14 }
0x128e   : > { %v5595_v13 = vpop.f32.mrb[17].mxu0  ;;  %v2343_v1 = vpack.c.bf16 %v2205_v48, %v2205_v48 }
0x128f   : > { %v2208_v15 = vpop.f32.mrb[18].mxu0  ;;  %v2249_v21 = vpop.f32.mrb[16].mxu1 }
0x1290   : > { %v5596_v2 = vpop.f32.mrb[19].mxu0  ;;  %v5601_v58 = vpop.f32.mrb[17].mxu1  ;;  %v2344_v7 = vpack.c.bf16 %v2249_v21, %v2249_v21  ;;  %5618 = vmatmul.mubr.msk.bf16.vlgmr.msra.gmra.mrb[24].mxu0 %vm482_vm0, %v2343_v1 }
0x1291   : > { %v2252_v29 = vpop.f32.mrb[18].mxu1  ;;  %5628 = vmatpush3.bf16.xpose.msra.mxu0 %v2257_v63  ;;  %5629 = vmatprep.mubr.msk.bf16.mxu0 %vm6025_vm1, %v6024_v33 }
0x1292   : > { %v5602_v3 = vpop.f32.mrb[19].mxu1  ;;  %5624 = vmatmul.mubr.msk.bf16.vlgmr.msra.gmra.mrb[24].mxu1 %vm482_vm0, %v2344_v7  ;;  %5639 = vmatprep.subr.bf16.mxu0 %v5868_v54 }
0x1293   : > { %5634 = vmatpush3.bf16.xpose.msra.mxu1 %v2301_v57  ;;  %5635 = vmatprep.mubr.msk.bf16.mxu1 %vm6025_vm1, %v6024_v33 }
0x1294   : > { %5647 = vmatprep.subr.bf16.mxu1 %v6024_v33 }
0x1295   : > { %v2293_v56 = vpop.f32.mrb[20].mxu0 }
0x1296   : > { %v2345_v24 = vpack.c.bf16 %v2293_v56, %v2293_v56  ;;  %v5607_v27 = vpop.f32.mrb[21].mxu0 }
0x1297   : > { %v2296_v30 = vpop.f32.mrb[22].mxu0  ;;  %v2337_v20 = vpop.f32.mrb[20].mxu1 }
0x1298   : > { %v2346_v23 = vpack.c.bf16 %v2337_v20, %v2337_v20  ;;  %v5608_v19 = vpop.f32.mrb[23].mxu0  ;;  %v5613_v38 = vpop.f32.mrb[21].mxu1  ;;  %5630 = vmatmul.mubr.msk.bf16.vlgmr.msra.gmra.mrb[28].mxu0 %vm482_vm0, %v2345_v24 }
0x1299   : > { %v2340_v6 = vpop.f32.mrb[22].mxu1  ;;  %5640 = vmatpush3.bf16.msra.mxu0 %v5868_v54  ;;  %5643 = vmatprep.mubr.msk.bf16.mxu0 %vm867_vm2, %v2634_v42 }
0x129a   : > { %v5614_v45 = vpop.f32.mrb[23].mxu1  ;;  %5636 = vmatmul.mubr.msk.bf16.vlgmr.msra.gmra.mrb[28].mxu1 %vm482_vm0, %v2346_v23  ;;  %5641 = vmatprep.subr.bf16.mxu0 %v5869_v60  ;;  %vm3042_vm0 = vcmask 60416  }
0x129b   : > { %5649 = vmatprep.mubr.msk.bf16.mxu1 %vm6025_vm1, %v6024_v33 }
0x129d   : > { %5642 = vmatpush3.bf16.msra.mxu0 %v5869_v60 }
0x129e   : > { %5653 = vmatprep.subr.bf16.mxu0 %v6024_v33 }
0x12a0   : > { %5644 = vmatmul.mubr.msk.bf16.vlgmr.msra.gmra.mrb[32].mxu0 %vm867_vm2, %v2635_v46 }
0x12a1   : > { %5655 = vmatprep.mubr.msk.bf16.mxu0 %vm6025_vm1, %v6024_v33 }
0x1363   : > { %v2384_v34 = vpop.f32.mrb[24].mxu0 }
0x1364   : > { %v6707_v51 = vpack.c.bf16 %v2384_v34, %v2384_v34  ;;  %v5619_v8 = vpop.f32.mrb[25].mxu0 }
0x1365   : > { %v2387_v28 = vpop.f32.mrb[26].mxu0  ;;  %v2427_v61 = vpop.f32.mrb[24].mxu1 }
0x1366   : > { %v6709_v40 = vpack.c.bf16 %v2427_v61, %v2427_v61  ;;  %v5620_v35 = vpop.f32.mrb[27].mxu0  ;;  %v5625_v10 = vpop.f32.mrb[25].mxu1  ;;  %v2604_v12 = vunpack.c.l.bf16 %v6707_v51 }
0x1367   : > { %v2430_v16 = vpop.f32.mrb[26].mxu1 }
0x1368   : > { %v5626_v59 = vpop.f32.mrb[27].mxu1  ;;  %v2609_v37 = vsel %vm2608_vm3, %v2604_v12, 0.0  ;;  %v2605_v26 = vunpack.c.l.bf16 %v6709_v40 }
0x1369   : > { %2610 = vadd.xlane.f32.xlu1 %v2609_v37  ;;  %v5384_v37 = vld [vmem:[%s7357_s7] ss:$0 sm:$0xff] }
0x136a   : > { %v2612_v53 = vsel %vm2608_vm3, %v2605_v26, 0.0 }
0x136b   : > { %v2470_v39 = vpop.f32.mrb[28].mxu0  ;;  %2613 = vadd.xlane.f32.xlu0 %v2612_v53 }
0x136c   : > { %v6719_v55 = vpack.c.bf16 %v2470_v39, %v2470_v39  ;;  %v5631_v36 = vpop.f32.mrb[29].mxu0 }
0x136d   : > { %v2473_v11 = vpop.f32.mrb[30].mxu0  ;;  %v2513_v18 = vpop.f32.mrb[28].mxu1 }
0x136e   : > { %v6721_v41 = vpack.c.bf16 %v2513_v18, %v2513_v18  ;;  %v5632_v42 = vpop.f32.mrb[31].mxu0  ;;  %v5637_v31 = vpop.f32.mrb[29].mxu1  ;;  %v2606_v17 = vunpack.c.l.bf16 %v6719_v55 }
0x136f   : > { %v2516_v49 = vpop.f32.mrb[30].mxu1 }
0x1370   : > { %v5638_v47 = vpop.f32.mrb[31].mxu1  ;;  %v2615_v50 = vsel %vm2608_vm3, %v2606_v17, 0.0  ;;  %v2607_v48 = vunpack.c.l.bf16 %v6721_v41 }
0x1371   : > { %2616 = vadd.xlane.f32.xlu1 %v2615_v50 }
0x1372   : > { %v2618_v13 = vsel %vm2608_vm3, %v2607_v48, 0.0 }
0x1373   : > { %2619 = vadd.xlane.f32.xlu0 %v2618_v13  ;;  %v5645_v15 = vpop.f32.mrb[32].mxu0  ;;  %v5386_v13 = vld [vmem:[%s7358_s8] ss:$0 sm:$0xff] }
0x1374   : > { %v2688_v21 = vpop.f32.mrb[33].mxu0 }
0x1375   : > { %v5646_v46 = vpop.f32.mrb[34].mxu0 }
0x1376   : > { %v2691_v1 = vpop.f32.mrb[35].mxu0 }
0x13f6   : > { %v2611_v2 = vpop.xlane.xlu1 %2610 }
0x13f7   : > { %v2621_v58 = vadd.f32 1.0, %v2611_v2 }
0x13f8   : > { %v2614_v54 = vpop.xlane.xlu0 %2613 }
0x13f9   : > { %5908 = vrsqrt.f32 %v2621_v58  ;;  %v2622_v29 = vadd.f32 1.0, %v2614_v54 }
0x13fb   : > { %5910 = vrsqrt.f32 %v2622_v29 }
0x13fe   : > { %v2617_v7 = vpop.xlane.xlu1 %2616 }
0x13ff   : > { %v2623_v63 = vadd.f32 1.0, %v2617_v7 }
0x1400   : > { %v2620_v3 = vpop.xlane.xlu0 %2619 }
0x1401   : > { %5912 = vrsqrt.f32 %v2623_v63  ;;  %v2624_v57 = vadd.f32 1.0, %v2620_v3 }
0x1403   : > { %v6731_v56 = vpop.eup %5908  ;;  %5914 = vrsqrt.f32 %v2624_v57 }
0x1404   : > { %v2703_v24 = vmul.f32 %v6731_v56, %v2688_v21 }
0x1405   : > { %v6734_v27 = vpop.eup %5910 }
0x1406   : > { %v2707_v30 = vpack.c.bf16 %v2703_v24, %v2703_v24  ;;  %v2704_v20 = vmul.f32 %v6734_v27, %v2691_v1 }
0x1408   : > { %v2715_v23 = vsel %vm1751_vm9, %v2707_v30, 0  ;;  %v2708_v19 = vpack.c.bf16 %v2704_v20, %v2704_v20 }
0x1409   : > { %5648 = vmatpush3.bf16.msra.mxu1 %v2715_v23 }
0x140a   : > { %v2761_v38 = vsel %vm1751_vm9, %v2708_v19, 0  ;;  %5659 = vmatprep.subr.bf16.mxu1 %v6024_v33 }
0x140b   : > { %v6740_v60 = vpop.eup %5912  ;;  %5654 = vmatpush3.bf16.msra.mxu0 %v2761_v38 }
0x140c   : > { %5650 = vmatmul.mubr.msk.bf16.vlgmr.msra.gmra.mrb[32].mxu1 %vm2608_vm3, %v6707_v51  ;;  %v2705_v6 = vmul.f32 %v6740_v60, %v5645_v15  ;;  %5665 = vmatprep.subr.bf16.mxu0 %v6024_v33 }
0x140d   : > { %v6746_v45 = vpop.eup %5914  ;;  %5661 = vmatprep.mubr.msk.bf16.mxu1 %vm6025_vm1, %v6024_v33 }
0x140e   : > { %5656 = vmatmul.mubr.msk.bf16.vlgmr.msra.gmra.mrb[36].mxu0 %vm2608_vm3, %v6709_v40  ;;  %v2709_v34 = vpack.c.bf16 %v2705_v6, %v2705_v6  ;;  %v2706_v8 = vmul.f32 %v6746_v45, %v5646_v46 }
0x140f   : > { %5667 = vmatprep.mubr.msk.bf16.mxu0 %vm6025_vm1, %v6024_v33 }
0x1410   : > { %v2807_v28 = vsel %vm1751_vm9, %v2709_v34, 0  ;;  %v2710_v61 = vpack.c.bf16 %v2706_v8, %v2706_v8 }
0x1411   : > { %5660 = vmatpush3.bf16.msra.mxu1 %v2807_v28 }
0x1412   : > { %v2853_v35 = vsel %vm1751_vm9, %v2710_v61, 0  ;;  %5671 = vmatprep.subr.mxu1 %v6024_v33 }
0x1413   : > { %5666 = vmatpush3.bf16.msra.mxu0 %v2853_v35 }
0x1414   : > { %5662 = vmatmul.mubr.msk.bf16.vlgmr.msra.gmra.mrb[36].mxu1 %vm2608_vm3, %v6719_v55  ;;  %5681 = vmatprep.subr.mxu0 %v6024_v33 }
0x1415   : > { %5673 = vmatprep.mubr.msk.f32.mxu1 %vm6025_vm1, %v6024_v33 }
0x1416   : > { %5668 = vmatmul.mubr.msk.bf16.vlgmr.msra.gmra.mrb[40].mxu0 %vm2608_vm3, %v6721_v41 }
0x1417   : > { %5683 = vmatprep.mubr.msk.f32.mxu0 %vm6025_vm1, %v6024_v33 }
0x14df   : > { %v2751_v10 = vpop.f32.mrb[32].mxu1 }
0x14e0   : > { %v2752_v16 = vadd.f32 %v2751_v10, %v2703_v24  ;;  %v5651_v59 = vpop.f32.mrb[33].mxu1 }
0x14e1   : > { %v2754_v53 = vpop.f32.mrb[34].mxu1  ;;  %v2797_v39 = vpop.f32.mrb[36].mxu0 }
0x14e2   : > { %v2895_v36 = vmul.f32 %v6731_v56, %v2752_v16  ;;  %v2798_v11 = vadd.f32 %v2797_v39, %v2704_v20  ;;  %v5652_v18 = vpop.f32.mrb[35].mxu1  ;;  %v5657_v42 = vpop.f32.mrb[37].mxu0 }
0x14e3   : > { %v2800_v31 = vpop.f32.mrb[38].mxu0 }
0x14e4   : > { %v2905_v49 = vadd.f32 %v5384_v37, %v2895_v36  ;;  %v2896_v47 = vmul.f32 %v6734_v27, %v2798_v11  ;;  %v5658_v50 = vpop.f32.mrb[39].mxu0 }
0x14e6   : > { %v2909_v15 = vmax.f32 %v2905_v49, 0.0  ;;  %v6775_v21 = vadd.f32 %v5384_v37, %v2896_v47 }
0x14e7   : > { %v2843_v46 = vpop.f32.mrb[36].mxu1 }
0x14e8   : > { %v2844_v1 = vadd.f32 %v2843_v46, %v2705_v6  ;;  %v5663_v2 = vpop.f32.mrb[37].mxu1  ;;  %5672 = vmatpush3.msra.mxu1 %v2909_v15  ;;  %v2921_v58 = vmul.f32 %v5386_v13, %v2909_v15  ;;  %v2910_v54 = vmax.f32 %v6775_v21, 0.0 }
0x14e9   : > { %v2846_v29 = vpop.f32.mrb[38].mxu1  ;;  %v2889_v7 = vpop.f32.mrb[40].mxu0  ;;  %5676 = vmatprep.subr.mxu1 %v6024_v33 }
0x14ea   : > { %v2897_v63 = vmul.f32 %v6740_v60, %v2844_v1  ;;  %v2890_v3 = vadd.f32 %v2889_v7, %v2706_v8  ;;  %v5664_v57 = vpop.f32.mrb[39].mxu1  ;;  %v5669_v24 = vpop.f32.mrb[41].mxu0  ;;  %v2925_v30 = vsel %vm867_vm2, %v2921_v58, 0.0  ;;  %v2922_v20 = vmul.f32 %v5386_v13, %v2910_v54 }
0x14eb   : > { %2926 = vadd.xlane.f32.xlu1 %v2925_v30  ;;  %v2892_v23 = vpop.f32.mrb[42].mxu0 }
0x14ec   : > { %v2907_v19 = vadd.f32 %v5384_v37, %v2897_v63  ;;  %v2898_v38 = vmul.f32 %v6746_v45, %v2890_v3  ;;  %v5670_v6 = vpop.f32.mrb[43].mxu0  ;;  %v2928_v34 = vsel %vm867_vm2, %v2922_v20, 0.0  ;;  %v3013_v20 = vstv %s5385_s26  ;;  %s439_s26 = sand.u32 1, %s6013_s22  }
0x14ed   : > { %2929 = vadd.xlane.f32.xlu0 %v2928_v34  ;;  %s5334_s28 = sshll.u32 %s439_s26, 2  ;;  %s7309_s25 = scalar_lea.sflag [#allocation3], %s439_s26 }
0x14ee   : > { %v2911_v28 = vmax.f32 %v2907_v19, 0.0  ;;  %v6785_v61 = vadd.f32 %v5384_v37, %v2898_v38  ;;  %s441_s29 = scalar_lea.vmem [#allocation5], %s5334_s28 }
0x14ef   : > { %s5242_s16 = sshll.u32 %s441_s29, 4  ;;  %s7303_s16 = int_to_ptr.vmem [resolvable:$true] %s5242_s16 }
0x14f0   : > { %5682 = vmatpush3.msra.mxu0 %v2911_v28  ;;  %v2923_v8 = vmul.f32 %v5386_v13, %v2911_v28  ;;  %v2912_v35 = vmax.f32 %v6785_v61, 0.0  ;;  %v3775_v61 = vsel %vm1751_vm9, %v6709_v40, 0  ;;  %v3865_v40 = vsel %vm1751_vm9, %v6721_v41, 0  ;;  %s5955_s20 = scalar_lea.vmem %s7303_s16, 64 }
0x14f1   : > { %5691 = vmatprep.subr.bf16.mxu0 %v6024_v33  ;;  %p5956_p9 = scmp.ne.s32.totalorder %s7303_s16, %s5955_s20 }
0x14f2   : > { %v2931_v10 = vsel %vm867_vm2, %v2923_v8, 0.0  ;;  %v2924_v16 = vmul.f32 %v5386_v13, %v2912_v35 }
0x14f3   : > { %2932 = vadd.xlane.f32.xlu1 %v2931_v10  ;;  %p5957_p10 = pnand %p5956_p9, %p6136_p5 }
0x14f4   : > { %v2934_v59 = vsel %vm867_vm2, %v2924_v16, 0.0 }
0x14f5   : > { %2935 = vadd.xlane.f32.xlu0 %v2934_v59  ;;  %p5958_p12 = pneg %p5957_p10 }
0x1578   : > { %v2927_v53 = vpop.xlane.xlu1 %2926 }
0x1579   : > { %v2937_v39 = vmul.f32 %v6731_v56, %v2927_v53 }
0x157a   : > { %v2930_v37 = vpop.xlane.xlu0 %2929 }
0x157b   : > { %v2948_v36 = vrot.slane %v2937_v39, %v6337_v5  ;;  %v2938_v11 = vmul.f32 %v6734_v27, %v2930_v37 }
0x157d   : > { %v2952_v18 = vrot.slane %v2938_v11, %v6337_v5  ;;  %v2989_v42 = vmul.f32 %v2948_v36, %v2604_v12 }
0x157f   : > { %v2993_v31 = vsel %vm2608_vm3, %v2989_v42, 0.0  ;;  %v2990_v49 = vmul.f32 %v2952_v18, %v2605_v26 }
0x1580   : > { %2994 = vadd.xlane.f32.xlu1 %v2993_v31  ;;  %v2933_v47 = vpop.xlane.xlu1 %2932 }
0x1581   : > { %v2939_v50 = vmul.f32 %v6740_v60, %v2933_v47  ;;  %v2996_v13 = vsel %vm2608_vm3, %v2990_v49, 0.0 }
0x1582   : > { %2997 = vadd.xlane.f32.xlu0 %v2996_v13  ;;  %v2936_v15 = vpop.xlane.xlu0 %2935 }
0x1583   : > { %v2956_v46 = vrot.slane %v2939_v50, %v6337_v5  ;;  %v2940_v1 = vmul.f32 %v6746_v45, %v2936_v15 }
0x1585   : > { %v2960_v2 = vrot.slane %v2940_v1, %v6337_v5  ;;  %v2991_v12 = vmul.f32 %v2956_v46, %v2606_v17 }
0x1587   : > { %v2999_v58 = vsel %vm2608_vm3, %v2991_v12, 0.0  ;;  %v2992_v26 = vmul.f32 %v2960_v2, %v2607_v48 }
0x1588   : > { %3000 = vadd.xlane.f32.xlu1 %v2999_v58 }
0x1589   : > { %v3002_v29 = vsel %vm2608_vm3, %v2992_v26, 0.0 }
0x158a   : > { %3003 = vadd.xlane.f32.xlu0 %v3002_v29 }
0x160d   : > { %v2995_v7 = vpop.xlane.xlu1 %2994 }
0x160e   : > { %v3005_v63 = vadd.f32 %v2995_v7, %v2937_v39 }
0x160f   : > { %v2998_v3 = vpop.xlane.xlu0 %2997 }
0x1610   : > { %v3006_v57 = vadd.f32 %v2998_v3, %v2938_v11  ;;  %v3009_v30 = vmul.f32 %v6731_v56, %v3005_v63 }
0x1612   : > { %v3010_v24 = vmul.f32 %v6734_v27, %v3006_v57  ;;  %v6817_v38 = vadd.f32 %v3013_v20, %v3009_v30 }
0x1614   : > { %v6815_v17 = vadd.f32 %v3013_v20, %v3010_v24  ;;  %v3025_v56 = vrot.slane %v6817_v38, %v6337_v5  ;;  %5916 = vtanh.f32 %v6817_v38 }
0x1615   : > { %v3001_v23 = vpop.xlane.xlu1 %3000 }
0x1616   : > { %v3007_v19 = vadd.f32 %v3001_v23, %v2939_v50  ;;  %v3029_v28 = vrot.slane %v6815_v17, %v6337_v5  ;;  %5918 = vtanh.f32 %v6815_v17 }
0x1617   : > { %v3004_v48 = vpop.xlane.xlu0 %3003 }
0x1618   : > { %v3011_v6 = vmul.f32 %v6740_v60, %v3007_v19  ;;  %v3008_v34 = vadd.f32 %v3004_v48, %v2940_v1  ;;  %v3038_v59 = vsel %vm948_vm4, %v3029_v28, %v3025_v56 }
0x161a   : > { %v6822_v8 = vadd.f32 %v3013_v20, %v3011_v6  ;;  %v3012_v27 = vmul.f32 %v6746_v45, %v3008_v34 }
0x161c   : > { %v6827_v10 = vadd.f32 %v3013_v20, %v3012_v27  ;;  %v3033_v16 = vrot.slane %v6822_v8, %v6337_v5  ;;  %5920 = vtanh.f32 %v6822_v8 }
0x161e   : > { %v3037_v60 = vrot.slane %v6827_v10, %v6337_v5  ;;  %v3039_v53 = vsel %vm949_vm5, %v3033_v16, %v3038_v59  ;;  %5922 = vtanh.f32 %v6827_v10 }
0x1620   : > { %v3040_v39 = vsel %vm951_vm6, %v3037_v60, %v3039_v53 }
0x1621   : > { %v3043_v45 = vsel %vm3042_vm0, %v3040_v39, -inf }
0x1622   : > { %3044 = vmax.xlane.f32.xlu1 %v3043_v45 }
0x16af   : > { %v3045_v37 = vpop.xlane.xlu1 %3044 }
0x16b0   : > { %v3054_v36 = vrot.slane %v3045_v37, %v6443_v22  ;;  %v3050_v11 = vrot.slane %v3045_v37, %v6440_v25  ;;  %v3058_v18 = vrot.slane %v3045_v37, %v6458_v32  ;;  %v3062_v49 = vrot.slane %v3045_v37, %v6446_v4 }
0x16b2   : > { %vm3068_vm13 = vcmp.ge.f32.partialorder %v6815_v17, %v3054_v36  ;;  %vm3067_vm14 = vcmp.ge.f32.partialorder %v6817_v38, %v3050_v11  ;;  %vm3069_vm8 = vcmp.ge.f32.partialorder %v6822_v8, %v3058_v18  ;;  %vm3070_vm7 = vcmp.ge.f32.partialorder %v6827_v10, %v3062_v49 }
0x16b3   : > { %v3072_v42 = vsel %vm3068_vm13, %v6448_v9, 8  ;;  %v3071_v31 = vsel %vm3067_vm14, %v6448_v9, 8  ;;  %v3073_v47 = vsel %vm3069_vm8, %v6448_v9, 8  ;;  %v3074_v50 = vsel %vm3070_vm7, %v6448_v9, 8 }
0x16b4   : > { %3079 = vperm.xlu1 %5861, %v3072_v42   ;;  %3076 = vperm.xlu0 %5862, %v3071_v31  }
0x16b8   : > { %3082 = vperm.xlu1 %5861, %v3073_v47  }
0x16bc   : > { %3085 = vperm.xlu1 %5861, %v3074_v50  }
0x1733   : > { %v3080_v13 = vpop.permute.xlu1 %3079  ;;  %v3077_v15 = vpop.permute.xlu0 %3076 }
0x1734   : > { %v3094_v1 = vrot.slane %v3080_v13, %v6337_v5  ;;  %v3090_v2 = vrot.slane %v3077_v15, %v6337_v5 }
0x1736   : > { %v3103_v26 = vsel %vm948_vm4, %v3094_v1, %v3090_v2 }
0x1737   : > { %v3083_v46 = vpop.permute.xlu1 %3082 }
0x1738   : > { %v3098_v12 = vrot.slane %v3083_v46, %v6337_v5 }
0x173a   : > { %v3104_v7 = vsel %vm949_vm5, %v3098_v12, %v3103_v26 }
0x173b   : > { %v3086_v58 = vpop.permute.xlu1 %3085 }
0x173c   : > { %v3102_v29 = vrot.slane %v3086_v58, %v6337_v5 }
0x173e   : > { %v3105_v63 = vsel %vm951_vm6, %v3102_v29, %v3104_v7 }
0x173f   : > { %v3106_v3 = vsel %vm3042_vm0, %v3105_v63, 2147483647 }
0x1740   : > { %v3108_v57 = vshra.s32 %v3106_v3, 16  ;;  %v3107_v30 = vand.u32 65535, %v3106_v3 }
0x1742   : > { %v3110_v24 = vcvt.s32.f32 %v3108_v57  ;;  %v3109_v23 = vcvt.s32.f32 %v3107_v30 }
0x1744   : > { %3111 = vmin.xlane.f32.xlu0 %v3110_v24 }
0x17d1   : > { %v3112_v20 = vpop.xlane.xlu0 %3111 }
0x17d2   : > { %vm3113_vm11 = vcmp.eq.f32.partialorder %v3110_v24, %v3112_v20  ;;  %v3118_v48 = vcvt.f32.s32 %v3112_v20 }
0x17d3   : > { %v3114_v19 = vsel %vm3113_vm11, %v3109_v23, inf }
0x17d4   : > { %3115 = vmin.xlane.f32.xlu1 %v3114_v19  ;;  %v3119_v34 = vshll.u32 %v3118_v48, 16 }
0x1861   : > { %v3116_v6 = vpop.xlane.xlu1 %3115 }
0x1862   : > { %v3117_v28 = vcvt.f32.s32 %v3116_v6 }
0x1864   : > { %v3120_v27 = vadd.s32 %v3119_v34, %v3117_v28 }
0x1866   : > { %vm3121_vm13 = vcmp.eq.s32.totalorder %v6330_v0, %v3120_v27 }
0x1867   : > { %v5387_v56 = vsel %vm3121_vm13, 1.0, %v6024_v33 }
0x1868   : > { %vm3124_vm14 = vcmp.gt.f32.partialorder %v5387_v56, 0.0  ;;  %v3206_v13 = vrot.slane %v5387_v56, %v6492_v62 }
0x1869   : > { %v3125_v16 = vsel %vm3124_vm14, -3e+38, %v3040_v39 }
0x186a   : > { %v3126_v59 = vsel %vm3042_vm0, %v3125_v16, -inf  ;;  %v3207_v1 = vcombine.high %v3206_v13, %v3206_v13  ;;  %v3214_v12 = vrot.slane %v3206_v13, %v6492_v62 }
0x186b   : > { %3127 = vmax.xlane.f32.xlu0 %v3126_v59 }
0x186c   : > { %v3221_v63 = vrot.slane %v3207_v1, %v6492_v62  ;;  %v3222_v30 = vcombine.high %v3214_v12, %v3214_v12 }
0x186e   : > { %v3223_v6 = vcombine.high %v3221_v63, %v3221_v63 }
0x18f8   : > { %v3128_v60 = vpop.xlane.xlu0 %3127 }
0x18f9   : > { %vm3129_vm8 = vcmp.ge.f32.partialorder %v3125_v16, %v3128_v60 }
0x18fa   : > { %v3130_v53 = vsel %vm3129_vm8, %v6330_v0, 8 }
0x18fb   : > { %v3131_v45 = vsel %vm3042_vm0, %v3130_v53, 2147483647 }
0x18fc   : > { %v3133_v37 = vshra.s32 %v3131_v45, 16  ;;  %v3132_v11 = vand.u32 65535, %v3131_v45 }
0x18fe   : > { %v3135_v36 = vcvt.s32.f32 %v3133_v37  ;;  %v3134_v42 = vcvt.s32.f32 %v3132_v11 }
0x1900   : > { %3136 = vmin.xlane.f32.xlu0 %v3135_v36 }
0x198d   : > { %v3137_v18 = vpop.xlane.xlu0 %3136 }
0x198e   : > { %vm3138_vm7 = vcmp.eq.f32.partialorder %v3135_v36, %v3137_v18  ;;  %v3143_v49 = vcvt.f32.s32 %v3137_v18 }
0x198f   : > { %v3139_v31 = vsel %vm3138_vm7, %v3134_v42, inf }
0x1990   : > { %3140 = vmin.xlane.f32.xlu0 %v3139_v31  ;;  %v3144_v47 = vshll.u32 %v3143_v49, 16 }
0x1a1d   : > { %v3141_v39 = vpop.xlane.xlu0 %3140 }
0x1a1e   : > { %v3142_v50 = vcvt.f32.s32 %v3141_v39 }
0x1a20   : > { %v3145_v15 = vadd.s32 %v3144_v47, %v3142_v50 }
0x1a22   : > { %vm3146_vm11 = vcmp.eq.s32.totalorder %v6330_v0, %v3145_v15 }
0x1a23   : > { %v5388_v46 = vsel %vm3146_vm11, 1.0, %v6024_v33 }
0x1a24   : > { %vm3149_vm13 = vcmp.gt.f32.partialorder %v5388_v46, 0.0  ;;  %v3235_v2 = vrot.slane %v5388_v46, %v6492_v62 }
0x1a25   : > { %v3150_v58 = vsel %vm3149_vm13, -3e+38, %v3125_v16 }
0x1a26   : > { %v3151_v26 = vsel %vm3042_vm0, %v3150_v58, -inf  ;;  %v3236_v29 = vcombine.high %v3235_v2, %v3235_v2  ;;  %v3243_v7 = vrot.slane %v3235_v2, %v6492_v62 }
0x1a27   : > { %3152 = vmax.xlane.f32.xlu1 %v3151_v26 }
0x1a28   : > { %v3250_v3 = vrot.slane %v3236_v29, %v6492_v62  ;;  %v3251_v57 = vcombine.high %v3243_v7, %v3243_v7  ;;  %v3306_v24 = vrot.slane %v3243_v7, %v6440_v25 }
0x1a2a   : > { %v3252_v20 = vcombine.high %v3250_v3, %v3250_v3  ;;  %v3310_v23 = vrot.slane %v3250_v3, %v6440_v25  ;;  %v3314_v19 = vrot.slane %v3251_v57, %v6440_v25  ;;  %v3363_v48 = vsel %vm1736_vm15, %v3214_v12, %v3306_v24 }
0x1a2c   : > { %v3318_v34 = vrot.slane %v3252_v20, %v6440_v25  ;;  %v3365_v28 = vsel %vm1736_vm15, %v3222_v30, %v3314_v19  ;;  %v3364_v27 = vsel %vm1736_vm15, %v3221_v63, %v3310_v23 }
0x1a2e   : > { %v3366_v56 = vsel %vm1736_vm15, %v3223_v6, %v3318_v34 }
0x1ab4   : > { %v3153_v16 = vpop.xlane.xlu1 %3152 }
0x1ab5   : > { %vm3154_vm14 = vcmp.ge.f32.partialorder %v3150_v58, %v3153_v16 }
0x1ab6   : > { %v3155_v59 = vsel %vm3154_vm14, %v6330_v0, 8 }
0x1ab7   : > { %v3156_v60 = vsel %vm3042_vm0, %v3155_v59, 2147483647 }
0x1ab8   : > { %v3158_v53 = vshra.s32 %v3156_v60, 16  ;;  %v3157_v37 = vand.u32 65535, %v3156_v60 }
0x1aba   : > { %v3160_v45 = vcvt.s32.f32 %v3158_v53  ;;  %v3159_v11 = vcvt.s32.f32 %v3157_v37 }
0x1abc   : > { %3161 = vmin.xlane.f32.xlu0 %v3160_v45 }
0x1b49   : > { %v3162_v36 = vpop.xlane.xlu0 %3161 }
0x1b4a   : > { %vm3163_vm8 = vcmp.eq.f32.partialorder %v3160_v45, %v3162_v36  ;;  %v3168_v42 = vcvt.f32.s32 %v3162_v36 }
0x1b4b   : > { %v3164_v18 = vsel %vm3163_vm8, %v3159_v11, inf }
0x1b4c   : > { %3165 = vmin.xlane.f32.xlu1 %v3164_v18  ;;  %v3169_v49 = vshll.u32 %v3168_v42, 16  ;;  %v5917_v18 = vpop.eup %5916 }
0x1bd9   : > { %v3166_v31 = vpop.xlane.xlu1 %3165 }
0x1bda   : > { %v3167_v39 = vcvt.f32.s32 %v3166_v31  ;;  %v5919_v31 = vpop.eup %5918 }
0x1bdb   : > { %v5921_v17 = vpop.eup %5920 }
0x1bdc   : > { %v3170_v47 = vadd.s32 %v3169_v49, %v3167_v39 }
0x1bde   : > { %vm3171_vm7 = vcmp.eq.s32.totalorder %v6330_v0, %v3170_v47  ;;  %v3386_v47 = vrot.slane %v5917_v18, %v6337_v5 }
0x1bdf   : > { %v5389_v50 = vsel %vm3171_vm7, 1.0, %v6024_v33 }
0x1be0   : > { %vm3174_vm11 = vcmp.gt.f32.partialorder %v5389_v50, 0.0  ;;  %v3260_v13 = vrot.slane %v5389_v50, %v6492_v62 }
0x1be1   : > { %v3175_v15 = vsel %vm3174_vm11, -3e+38, %v3150_v58 }
0x1be2   : > { %v3176_v46 = vsel %vm3042_vm0, %v3175_v15, -inf  ;;  %v3261_v1 = vcombine.high %v3260_v13, %v3260_v13  ;;  %v3268_v2 = vrot.slane %v3260_v13, %v6492_v62 }
0x1be3   : > { %3177 = vmax.xlane.f32.xlu0 %v3176_v46  ;;  %v5923_v46 = vpop.eup %5922 }
0x1be4   : > { %v3275_v12 = vrot.slane %v3261_v1, %v6492_v62  ;;  %v3276_v26 = vcombine.high %v3268_v2, %v3268_v2  ;;  %v3326_v29 = vrot.slane %v3268_v2, %v6440_v25  ;;  %v3390_v2 = vrot.slane %v5919_v31, %v6337_v5 }
0x1be6   : > { %v3277_v7 = vcombine.high %v3275_v12, %v3275_v12  ;;  %v3330_v63 = vrot.slane %v3275_v12, %v6440_v25  ;;  %v3334_v3 = vrot.slane %v3276_v26, %v6440_v25  ;;  %v3367_v57 = vsel %vm1741_vm12, %v3363_v48, %v3326_v29 }
0x1be7   : > { %v3394_v12 = vrot.slane %v5921_v17, %v6337_v5 }
0x1be8   : > { %v3369_v58 = vsel %vm1741_vm12, %v3365_v28, %v3334_v3  ;;  %v3368_v24 = vsel %vm1741_vm12, %v3364_v27, %v3330_v63  ;;  %v3338_v30 = vrot.slane %v3277_v7, %v6440_v25  ;;  %v3730_v63 = vsel %vm1751_vm9, %v6707_v51, 0 }
0x1bea   : > { %v3370_v20 = vsel %vm1741_vm12, %v3366_v56, %v3338_v30 }
0x1c70   : > { %v3178_v23 = vpop.xlane.xlu0 %3177 }
0x1c71   : > { %vm3179_vm13 = vcmp.ge.f32.partialorder %v3175_v15, %v3178_v23 }
0x1c72   : > { %v3180_v19 = vsel %vm3179_vm13, %v6330_v0, 8 }
0x1c73   : > { %v3181_v6 = vsel %vm3042_vm0, %v3180_v19, 2147483647 }
0x1c74   : > { %v3183_v34 = vshra.s32 %v3181_v6, 16  ;;  %v3182_v59 = vand.u32 65535, %v3181_v6 }
0x1c76   : > { %v3185_v16 = vcvt.s32.f32 %v3183_v34  ;;  %v3184_v48 = vcvt.s32.f32 %v3182_v59 }
0x1c78   : > { %3186 = vmin.xlane.f32.xlu1 %v3185_v16 }
0x1d05   : > { %v3187_v60 = vpop.xlane.xlu1 %3186 }
0x1d06   : > { %vm3188_vm14 = vcmp.eq.f32.partialorder %v3185_v16, %v3187_v60  ;;  %v3193_v27 = vcvt.f32.s32 %v3187_v60 }
0x1d07   : > { %v3189_v28 = vsel %vm3188_vm14, %v3184_v48, inf }
0x1d08   : > { %3190 = vmin.xlane.f32.xlu0 %v3189_v28  ;;  %v3194_v53 = vshll.u32 %v3193_v27, 16 }
0x1d95   : > { %v3191_v56 = vpop.xlane.xlu0 %3190 }
0x1d96   : > { %v3192_v45 = vcvt.f32.s32 %v3191_v56 }
0x1d98   : > { %v3195_v37 = vadd.s32 %v3194_v53, %v3192_v45 }
0x1d9a   : > { %vm3196_vm8 = vcmp.eq.s32.totalorder %v6330_v0, %v3195_v37 }
0x1d9b   : > { %v5390_v36 = vsel %vm3196_vm8, 1.0, %v6024_v33 }
0x1d9c   : > { %v3285_v11 = vrot.slane %v5390_v36, %v6492_v62 }
0x1d9e   : > { %v3286_v42 = vcombine.high %v3285_v11, %v3285_v11  ;;  %v3293_v38 = vrot.slane %v3285_v11, %v6492_v62 }
0x1da0   : > { %v3300_v49 = vrot.slane %v3286_v42, %v6492_v62  ;;  %v3301_v8 = vcombine.high %v3293_v38, %v3293_v38  ;;  %v3346_v39 = vrot.slane %v3293_v38, %v6440_v25  ;;  %v5870_v38 = vld [vmem:[%s7359_s9] sm:$0xff]  }
0x1da2   : > { %v3371_v10 = vsel %vm1746_vm10, %v3367_v57, %v3346_v39  ;;  %v3354_v50 = vrot.slane %v3301_v8, %v6440_v25  ;;  %v3350_v13 = vrot.slane %v3300_v49, %v6440_v25  ;;  %v3302_v15 = vcombine.high %v3300_v49, %v3300_v49 }
0x1da3   : > { %5674 = vmatmul.mubr.msk.f32.vlgmr.msra.gmra.mrb[40].mxu1 %vm2608_vm3, %v3371_v10  ;;  %v3411_v1 = vmul.f32 %v3386_v47, %v3371_v10 }
0x1da4   : > { %5677 = vmatpush3.msra.mxu1 %v2910_v54  ;;  %v3373_v26 = vsel %vm1746_vm10, %v3369_v58, %v3354_v50  ;;  %5678 = vmatprep.mubr.msk.f32.mxu1 %vm6025_vm1, %v6024_v33  ;;  %v3372_v29 = vsel %vm1746_vm10, %v3368_v24, %v3350_v13  ;;  %v3358_v7 = vrot.slane %v3302_v15, %v6440_v25 }
0x1da5   : > { %5684 = vmatmul.mubr.msk.f32.vlgmr.msra.gmra.mrb[44].mxu0 %vm2608_vm3, %v3373_v26  ;;  %5686 = vmatprep.subr.mxu1 %v6024_v33  ;;  %v3415_v3 = vsel %vm3042_vm0, %v3411_v1, 0.0  ;;  %v3412_v21 = vmul.f32 %v3390_v2, %v3372_v29  ;;  %v3413_v54 = vmul.f32 %v3394_v12, %v3373_v26  ;;  %v3398_v58 = vrot.slane %v5923_v46, %v6337_v5 }
0x1da6   : > { %5692 = vmatpush3.bf16.msra.mxu0 %v3730_v63  ;;  %3416 = vadd.xlane.f32.xlu1 %v3415_v3  ;;  %v3374_v57 = vsel %vm1746_vm10, %v3370_v20, %v3358_v7  ;;  %v3723_v24 = vpack.c.bf16 %v3371_v10, %v3371_v10  ;;  %v3820_v20 = vsel %vm1751_vm9, %v6719_v55, 0  ;;  %v3724_v55 = vpack.c.bf16 %v3372_v29, %v3372_v29 }
0x1da7   : > { %5679 = vmatmul.mubr.msk.f32.vlgmr.msra.gmra.mrb[42].mxu1 %vm2608_vm3, %v3372_v29  ;;  %5693 = vmatprep.mubr.msk.bf16.mxu0 %vm6025_vm1, %v6024_v33  ;;  %v3418_v51 = vsel %vm3042_vm0, %v3412_v21, 0.0  ;;  %v3414_v30 = vmul.f32 %v3398_v58, %v3374_v57  ;;  %v3421_v23 = vsel %vm3042_vm0, %v3413_v54, 0.0  ;;  %v3725_v19 = vpack.c.bf16 %v3373_v26, %v3373_v26 }
0x1da8   : > { %5687 = vmatpush3.msra.mxu1 %v2912_v35  ;;  %5703 = vmatprep.subr.bf16.mxu0 %v6024_v33  ;;  %v3728_v6 = vsel %vm2608_vm3, %v3723_v24, 0  ;;  %v3726_v34 = vpack.c.bf16 %v3374_v57, %v3374_v57  ;;  %v3773_v41 = vsel %vm2608_vm3, %v3724_v55, 0  ;;  %vm4177_vm10 = vcmask 27648  }
0x1da9   : > { %3419 = vadd.xlane.f32.xlu0 %v3418_v51  ;;  %5694 = vmatmul.mubr.msk.bf16.vlgmr.msra.gmra.mrb[48].mxu0 %vm2608_vm3, %v3723_v24  ;;  %v3424_v35 = vsel %vm3042_vm0, %v3414_v30, 0.0  ;;  %v3818_v10 = vsel %vm2608_vm3, %v3725_v19, 0 }
0x1daa   : > { %5704 = vmatpush3.bf16.msra.mxu0 %v3820_v20  ;;  %3422 = vadd.xlane.f32.xlu1 %v3421_v23  ;;  %v3863_v24 = vsel %vm2608_vm3, %v3726_v34, 0 }
0x1dab   : > { %5688 = vmatprep.mubr.msk.f32.mxu1 %vm6025_vm1, %v6024_v33  ;;  %5697 = vmatprep.subr.bf16.mxu1 %v6024_v33 }
0x1dac   : > { %5689 = vmatmul.mubr.msk.f32.vlgmr.msra.gmra.mrb[44].mxu1 %vm2608_vm3, %v3374_v57  ;;  %5705 = vmatprep.mubr.msk.bf16.mxu0 %vm6025_vm1, %v6024_v33  ;;  %v5871_v57 = vld [vmem:[%s7359_s9 + $0x8] sm:$0xff]  }
0x1dad   : > { %5698 = vmatpush3.bf16.msra.mxu1 %v3775_v61  ;;  %3425 = vadd.xlane.f32.xlu0 %v3424_v35 }
0x1dae   : > { %5699 = vmatprep.mubr.msk.bf16.mxu1 %vm6025_vm1, %v6024_v33  ;;  %5709 = vmatprep.subr.bf16.mxu1 %v6024_v33 }
0x1daf   : > { %5715 = vmatprep.subr.bf16.mxu0 %v6024_v33 }
0x1db0   : > { %5700 = vmatmul.mubr.msk.bf16.vlgmr.msra.gmra.mrb[48].mxu1 %vm2608_vm3, %v3724_v55 }
0x1db1   : > { %5710 = vmatpush3.bf16.msra.mxu1 %v3865_v40  ;;  %5706 = vmatmul.mubr.msk.bf16.vlgmr.msra.gmra.mrb[52].mxu0 %vm2608_vm3, %v3725_v19 }
0x1db2   : > { %5711 = vmatprep.mubr.msk.bf16.mxu1 %vm6025_vm1, %v6024_v33  ;;  %5721 = vmatprep.subr.bf16.mxu1 %v6024_v33 }
0x1db3   : > { %5716 = vmatpush3.bf16.xpose.msra.mxu0 %v3728_v6  ;;  %5717 = vmatprep.mubr.msk.bf16.mxu0 %vm6025_vm1, %v6024_v33 }
0x1db4   : > { %5727 = vmatprep.subr.bf16.mxu0 %v6024_v33 }
0x1db8   : > { %5712 = vmatmul.mubr.msk.bf16.vlgmr.msra.gmra.mrb[52].mxu1 %vm2608_vm3, %v3726_v34 }
0x1db9   : > { %5723 = vmatprep.mubr.msk.bf16.mxu1 %vm6025_vm1, %v6024_v33 }
0x1dba   : > { %5722 = vmatpush3.bf16.xpose.msra.mxu1 %v3773_v41 }
0x1dbb   : > { %5733 = vmatprep.subr.bf16.mxu1 %v6024_v33 }
0x1e33   : > { %v3417_v60 = vpop.xlane.xlu1 %3416 }
0x1e36   : > { %v3420_v27 = vpop.xlane.xlu0 %3419 }
0x1e37   : > { %v3423_v31 = vpop.xlane.xlu1 %3422 }
0x1e3a   : > { %v3426_v50 = vpop.xlane.xlu0 %3425 }
0x1e76   : > { %v3496_v16 = vpop.f32.mrb[40].mxu1 }
0x1e77   : > { %v5675_v59 = vpop.f32.mrb[41].mxu1  ;;  %v6968_v56 = vmul.f32 %v3496_v16, %v3417_v60 }
0x1e78   : > { %v3642_v48 = vpop.f32.mrb[44].mxu0 }
0x1e79   : > { %v5685_v28 = vpop.f32.mrb[45].mxu0  ;;  %v4203_v17 = vsel %vm1751_vm9, %v6968_v56, 0.0  ;;  %v6981_v13 = vmul.f32 %v3642_v48, %v3423_v31 }
0x1e7a   : > { %v3569_v53 = vpop.f32.mrb[42].mxu1 }
0x1e7b   : > { %v6970_v45 = vmul.f32 %v3569_v53, %v3420_v27  ;;  %v5680_v37 = vpop.f32.mrb[43].mxu1  ;;  %v4205_v2 = vsel %vm1751_vm9, %v6981_v13, 0.0 }
0x1e7c   : > { %v3766_v36 = vpop.f32.mrb[48].mxu0 }
0x1e7d   : > { %v4204_v11 = vsel %vm1751_vm9, %v6970_v45, 0.0  ;;  %v3907_v18 = vpack.c.bf16 %v3766_v36, %v3766_v36  ;;  %v5695_v42 = vpop.f32.mrb[49].mxu0 }
0x1e7e   : > { %v3769_v49 = vpop.f32.mrb[50].mxu0  ;;  %v4207_v8 = vpack.c.bf16 %v4204_v11, %v4203_v17 }
0x1e7f   : > { %v3715_v39 = vpop.f32.mrb[44].mxu1  ;;  %v5696_v47 = vpop.f32.mrb[51].mxu0  ;;  %5718 = vmatmul.mubr.msk.bf16.vlgmr.msra.gmra.mrb[56].mxu0 %vm2608_vm3, %v3907_v18 }
0x1e80   : > { %v5690_v15 = vpop.f32.mrb[45].mxu1  ;;  %5728 = vmatpush3.bf16.xpose.msra.mxu0 %v3818_v10  ;;  %5729 = vmatprep.mubr.msk.bf16.mxu0 %vm6025_vm1, %v6024_v33  ;;  %v6985_v46 = vmul.f32 %v3715_v39, %v3426_v50 }
0x1e81   : > { %5739 = vmatprep.subr.bf16.mxu0 %v5870_v38 }
0x1e82   : > { %v4206_v12 = vsel %vm1751_vm9, %v6985_v46, 0.0 }
0x1e83   : > { %v3811_v1 = vpop.f32.mrb[48].mxu1  ;;  %v4208_v63 = vpack.c.bf16 %v4206_v12, %v4205_v2 }
0x1e84   : > { %v3908_v26 = vpack.c.bf16 %v3811_v1, %v3811_v1  ;;  %v5701_v29 = vpop.f32.mrb[49].mxu1  ;;  %v3856_v7 = vpop.f32.mrb[52].mxu0 }
0x1e85   : > { %v3814_v3 = vpop.f32.mrb[50].mxu1  ;;  %v3909_v21 = vpack.c.bf16 %v3856_v7, %v3856_v7  ;;  %v5707_v54 = vpop.f32.mrb[53].mxu0 }
0x1e86   : > { %v5702_v58 = vpop.f32.mrb[51].mxu1  ;;  %5724 = vmatmul.mubr.msk.bf16.vlgmr.msra.gmra.mrb[56].mxu1 %vm2608_vm3, %v3908_v26  ;;  %v3859_v51 = vpop.f32.mrb[54].mxu0 }
0x1e87   : > { %5734 = vmatpush3.bf16.xpose.msra.mxu1 %v3863_v24  ;;  %v5708_v30 = vpop.f32.mrb[55].mxu0  ;;  %5730 = vmatmul.mubr.msk.bf16.vlgmr.msra.gmra.mrb[60].mxu0 %vm2608_vm3, %v3909_v21 }
0x1e88   : > { %5740 = vmatpush3.bf16.msra.mxu0 %v5870_v38  ;;  %5743 = vmatprep.mubr.msk.bf16.mxu0 %vm867_vm2, %v4207_v8 }
0x1e89   : > { %5741 = vmatprep.subr.bf16.mxu0 %v5871_v57  ;;  %5735 = vmatprep.mubr.msk.bf16.mxu1 %vm6025_vm1, %v6024_v33 }
0x1e8a   : > { %5747 = vmatprep.subr.bf16.mxu1 %v6024_v33 }
0x1e8b   : > { %v3901_v20 = vpop.f32.mrb[52].mxu1 }
0x1e8c   : > { %v3910_v23 = vpack.c.bf16 %v3901_v20, %v3901_v20  ;;  %v5713_v61 = vpop.f32.mrb[53].mxu1  ;;  %5742 = vmatpush3.bf16.msra.mxu0 %v5871_v57 }
0x1e8d   : > { %v3904_v35 = vpop.f32.mrb[54].mxu1  ;;  %5753 = vmatprep.subr.bf16.mxu0 %v6024_v33 }
0x1e8e   : > { %v5714_v55 = vpop.f32.mrb[55].mxu1  ;;  %5736 = vmatmul.mubr.msk.bf16.vlgmr.msra.gmra.mrb[60].mxu1 %vm2608_vm3, %v3910_v23  ;;  %vm4284_vm3 = vcmask 31744  }
0x1e8f   : > { %5744 = vmatmul.mubr.msk.bf16.vlgmr.msra.gmra.mrb[64].mxu0 %vm867_vm2, %v4208_v63  ;;  %5749 = vmatprep.mubr.msk.bf16.mxu1 %vm6025_vm1, %v6024_v33 }
0x1e90   : > { %5755 = vmatprep.mubr.msk.bf16.mxu0 %vm6025_vm1, %v6024_v33 }
0x1f52   : > { %v3948_v19 = vpop.f32.mrb[56].mxu0 }
0x1f53   : > { %v7008_v40 = vpack.c.bf16 %v3948_v19, %v3948_v19  ;;  %v5719_v6 = vpop.f32.mrb[57].mxu0 }
0x1f54   : > { %v3951_v34 = vpop.f32.mrb[58].mxu0 }
0x1f55   : > { %v5720_v41 = vpop.f32.mrb[59].mxu0  ;;  %v4173_v16 = vunpack.c.l.bf16 %v7008_v40 }
0x1f57   : > { %v4178_v59 = vsel %vm4177_vm10, %v4173_v16, 0.0 }
0x1f58   : > { %4179 = vadd.xlane.f32.xlu1 %v4178_v59 }
0x1f59   : > { %v3991_v60 = vpop.f32.mrb[56].mxu1 }
0x1f5a   : > { %v7014_v48 = vpack.c.bf16 %v3991_v60, %v3991_v60  ;;  %v5725_v28 = vpop.f32.mrb[57].mxu1  ;;  %v4034_v27 = vpop.f32.mrb[60].mxu0 }
0x1f5b   : > { %v3994_v53 = vpop.f32.mrb[58].mxu1  ;;  %v7016_v37 = vpack.c.bf16 %v4034_v27, %v4034_v27  ;;  %v5731_v36 = vpop.f32.mrb[61].mxu0 }
0x1f5c   : > { %v5726_v11 = vpop.f32.mrb[59].mxu1  ;;  %v4037_v18 = vpop.f32.mrb[62].mxu0  ;;  %v4174_v42 = vunpack.c.l.bf16 %v7014_v48 }
0x1f5d   : > { %v5732_v38 = vpop.f32.mrb[63].mxu0  ;;  %v4175_v31 = vunpack.c.l.bf16 %v7016_v37 }
0x1f5e   : > { %v4181_v17 = vsel %vm4177_vm10, %v4174_v42, 0.0  ;;  %v5411_v38 = vld [vmem:[%s7360_s10] ss:$0 sm:$0xff] }
0x1f5f   : > { %4182 = vadd.xlane.f32.xlu0 %v4181_v17  ;;  %v4184_v49 = vsel %vm4177_vm10, %v4175_v31, 0.0 }
0x1f60   : > { %4185 = vadd.xlane.f32.xlu1 %v4184_v49 }
0x1f61   : > { %v4077_v8 = vpop.f32.mrb[60].mxu1 }
0x1f62   : > { %v7026_v39 = vpack.c.bf16 %v4077_v8, %v4077_v8  ;;  %v5737_v47 = vpop.f32.mrb[61].mxu1  ;;  %v5745_v10 = vpop.f32.mrb[64].mxu0 }
0x1f63   : > { %v4080_v50 = vpop.f32.mrb[62].mxu1  ;;  %v4261_v15 = vpop.f32.mrb[65].mxu0 }
0x1f64   : > { %v5738_v1 = vpop.f32.mrb[63].mxu1  ;;  %v5746_v2 = vpop.f32.mrb[66].mxu0  ;;  %v4176_v12 = vunpack.c.l.bf16 %v7026_v39 }
0x1f65   : > { %v4264_v26 = vpop.f32.mrb[67].mxu0 }
0x1f66   : > { %v4187_v29 = vsel %vm4177_vm10, %v4176_v12, 0.0 }
0x1f67   : > { %4188 = vadd.xlane.f32.xlu0 %v4187_v29 }
0x1fe5   : > { %v4180_v7 = vpop.xlane.xlu1 %4179 }
0x1fe6   : > { %v4190_v63 = vadd.f32 1.0, %v4180_v7 }
0x1fe8   : > { %5924 = vrsqrt.f32 %v4190_v63 }
0x1fec   : > { %v4183_v3 = vpop.xlane.xlu0 %4182 }
0x1fed   : > { %v4191_v21 = vadd.f32 1.0, %v4183_v3  ;;  %v4186_v54 = vpop.xlane.xlu1 %4185 }
0x1fee   : > { %v4192_v57 = vadd.f32 1.0, %v4186_v54 }
0x1fef   : > { %5926 = vrsqrt.f32 %v4191_v21 }
0x1ff0   : > { %5928 = vrsqrt.f32 %v4192_v57 }
0x1ff2   : > { %v7032_v58 = vpop.eup %5924 }
0x1ff3   : > { %v4276_v24 = vmul.f32 %v7032_v58, %v4261_v15 }
0x1ff4   : > { %v4189_v51 = vpop.xlane.xlu0 %4188 }
0x1ff5   : > { %v4193_v30 = vadd.f32 1.0, %v4189_v51  ;;  %v4280_v20 = vpack.c.bf16 %v4276_v24, %v4276_v24 }
0x1ff7   : > { %5930 = vrsqrt.f32 %v4193_v30  ;;  %v4289_v23 = vsel %vm1741_vm12, %v4280_v20, 0 }
0x1ff8   : > { %5748 = vmatpush3.bf16.msra.mxu1 %v4289_v23 }
0x1ff9   : > { %v7036_v61 = vpop.eup %5926  ;;  %5759 = vmatprep.subr.bf16.mxu1 %v6024_v33 }
0x1ffa   : > { %v7039_v35 = vpop.eup %5928  ;;  %v4277_v55 = vmul.f32 %v7036_v61, %v4264_v26 }
0x1ffb   : > { %5750 = vmatmul.mubr.msk.bf16.vlgmr.msra.gmra.mrb[64].mxu1 %vm4284_vm3, %v7008_v40  ;;  %v4278_v19 = vmul.f32 %v7039_v35, %v5745_v10  ;;  %v5413_v10 = vld [vmem:[%s7361_s11] ss:$0 sm:$0xff] }
0x1ffc   : > { %v4281_v6 = vpack.c.bf16 %v4277_v55, %v4277_v55  ;;  %5761 = vmatprep.mubr.msk.bf16.mxu1 %vm6025_vm1, %v6024_v33 }
0x1ffd   : > { %v4282_v34 = vpack.c.bf16 %v4278_v19, %v4278_v19 }
0x1ffe   : > { %v4335_v41 = vsel %vm1741_vm12, %v4281_v6, 0 }
0x1fff   : > { %5754 = vmatpush3.bf16.msra.mxu0 %v4335_v41  ;;  %v4381_v59 = vsel %vm1741_vm12, %v4282_v34, 0 }
0x2000   : > { %5760 = vmatpush3.bf16.msra.mxu1 %v4381_v59  ;;  %5765 = vmatprep.subr.bf16.mxu0 %v6024_v33 }
0x2001   : > { %v7050_v60 = vpop.eup %5930  ;;  %5771 = vmatprep.subr.mxu1 %v6024_v33 }
0x2002   : > { %5756 = vmatmul.mubr.msk.bf16.vlgmr.msra.gmra.mrb[68].mxu0 %vm4284_vm3, %v7014_v48  ;;  %v4279_v28 = vmul.f32 %v7050_v60, %v5746_v2 }
0x2003   : > { %5762 = vmatmul.mubr.msk.bf16.vlgmr.msra.gmra.mrb[68].mxu1 %vm4284_vm3, %v7016_v37  ;;  %5767 = vmatprep.mubr.msk.bf16.mxu0 %vm6025_vm1, %v6024_v33 }
0x2004   : > { %v4283_v27 = vpack.c.bf16 %v4279_v28, %v4279_v28  ;;  %5773 = vmatprep.mubr.msk.f32.mxu1 %vm6025_vm1, %v6024_v33 }
0x2006   : > { %v4427_v53 = vsel %vm1741_vm12, %v4283_v27, 0  ;;  %vm4083_vm12 = vcmask 257024  }
0x2007   : > { %5766 = vmatpush3.bf16.msra.mxu0 %v4427_v53 }
0x2008   : > { %5781 = vmatprep.subr.mxu0 %v6024_v33 }
0x200a   : > { %5768 = vmatmul.mubr.msk.bf16.vlgmr.msra.gmra.mrb[72].mxu0 %vm4284_vm3, %v7026_v39 }
0x200b   : > { %5783 = vmatprep.mubr.msk.f32.mxu0 %vm6025_vm1, %v6024_v33 }
0x20ce   : > { %v4325_v36 = vpop.f32.mrb[64].mxu1 }
0x20cf   : > { %v4326_v11 = vadd.f32 %v4325_v36, %v4276_v24  ;;  %v5751_v18 = vpop.f32.mrb[65].mxu1 }
0x20d0   : > { %v4328_v17 = vpop.f32.mrb[66].mxu1 }
0x20d1   : > { %v4469_v49 = vmul.f32 %v7032_v58, %v4326_v11  ;;  %v5752_v8 = vpop.f32.mrb[67].mxu1 }
0x20d3   : > { %v4479_v47 = vadd.f32 %v5411_v38, %v4469_v49 }
0x20d5   : > { %v4483_v50 = vmax.f32 %v4479_v47, 0.0  ;;  %v4371_v15 = vpop.f32.mrb[68].mxu0 }
0x20d6   : > { %v4372_v1 = vadd.f32 %v4371_v15, %v4277_v55  ;;  %v5757_v2 = vpop.f32.mrb[69].mxu0  ;;  %v4417_v26 = vpop.f32.mrb[68].mxu1 }
0x20d7   : > { %v4374_v29 = vpop.f32.mrb[70].mxu0  ;;  %v4418_v7 = vadd.f32 %v4417_v26, %v4278_v19  ;;  %v5763_v63 = vpop.f32.mrb[69].mxu1  ;;  %5772 = vmatpush3.msk.msra.mxu1 %vm1751_vm9, %v4483_v50  ;;  %v4495_v3 = vmul.f32 %v5413_v10, %v4483_v50 }
0x20d8   : > { %v4470_v21 = vmul.f32 %v7036_v61, %v4372_v1  ;;  %v5758_v54 = vpop.f32.mrb[71].mxu0  ;;  %v4420_v57 = vpop.f32.mrb[70].mxu1  ;;  %5776 = vmatprep.subr.mxu1 %v6024_v33 }
0x20d9   : > { %v4471_v24 = vmul.f32 %v7039_v35, %v4418_v7  ;;  %v5764_v51 = vpop.f32.mrb[71].mxu1  ;;  %v4499_v30 = vsel %vm4083_vm12, %v4495_v3, 0.0 }
0x20da   : > { %v7080_v20 = vadd.f32 %v5411_v38, %v4470_v21  ;;  %4500 = vadd.xlane.f32.xlu1 %v4499_v30 }
0x20db   : > { %v4481_v23 = vadd.f32 %v5411_v38, %v4471_v24 }
0x20dc   : > { %v4484_v55 = vmax.f32 %v7080_v20, 0.0 }
0x20dd   : > { %v4485_v19 = vmax.f32 %v4481_v23, 0.0  ;;  %v4463_v6 = vpop.f32.mrb[72].mxu0 }
0x20de   : > { %v4464_v34 = vadd.f32 %v4463_v6, %v4279_v28  ;;  %v5769_v41 = vpop.f32.mrb[73].mxu0  ;;  %v4496_v59 = vmul.f32 %v5413_v10, %v4484_v55 }
0x20df   : > { %v4466_v27 = vpop.f32.mrb[74].mxu0  ;;  %5782 = vmatpush3.msk.msra.mxu0 %vm1751_vm9, %v4485_v19  ;;  %v4497_v53 = vmul.f32 %v5413_v10, %v4485_v19 }
0x20e0   : > { %v4472_v36 = vmul.f32 %v7050_v60, %v4464_v34  ;;  %v5770_v11 = vpop.f32.mrb[75].mxu0  ;;  %v4502_v18 = vsel %vm4083_vm12, %v4496_v59, 0.0  ;;  %v4571_v59 = vstv %s5412_s0  ;;  %s6030_s0 = smov [#allocation5]  }
0x20e1   : > { %4503 = vadd.xlane.f32.xlu0 %v4502_v18  ;;  %v4505_v17 = vsel %vm4083_vm12, %v4497_v53, 0.0 }
0x20e2   : > { %v7089_v49 = vadd.f32 %v5411_v38, %v4472_v36  ;;  %4506 = vadd.xlane.f32.xlu1 %v4505_v17 }
0x20e4   : > { %v4486_v28 = vmax.f32 %v7089_v49, 0.0 }
0x20e6   : > { %v4498_v8 = vmul.f32 %v5413_v10, %v4486_v28 }
0x20e8   : > { %v4508_v47 = vsel %vm4083_vm12, %v4498_v8, 0.0 }
0x20e9   : > { %4509 = vadd.xlane.f32.xlu0 %v4508_v47 }
0x2167   : > { %v4501_v50 = vpop.xlane.xlu1 %4500 }
0x2168   : > { %v4511_v15 = vmul.f32 %v7032_v58, %v4501_v50 }
0x216a   : > { %v4522_v1 = vrot.slane %v4511_v15, %v6337_v5 }
0x216c   : > { %v4547_v2 = vmul.f32 %v4522_v1, %v4173_v16 }
0x216e   : > { %v4504_v26 = vpop.xlane.xlu0 %4503  ;;  %v4551_v38 = vsel %vm4177_vm10, %v4547_v2, 0.0 }
0x216f   : > { %v4512_v29 = vmul.f32 %v7036_v61, %v4504_v26  ;;  %4552 = vadd.xlane.f32.xlu1 %v4551_v38  ;;  %v4507_v7 = vpop.xlane.xlu1 %4506 }
0x2170   : > { %v4513_v10 = vmul.f32 %v7039_v35, %v4507_v7 }
0x2171   : > { %v4526_v63 = vrot.slane %v4512_v29, %v6337_v5 }
0x2172   : > { %v4530_v3 = vrot.slane %v4513_v10, %v6337_v5 }
0x2173   : > { %v4548_v21 = vmul.f32 %v4526_v63, %v4174_v42 }
0x2174   : > { %v4549_v40 = vmul.f32 %v4530_v3, %v4175_v31 }
0x2175   : > { %v4554_v16 = vsel %vm4177_vm10, %v4548_v21, 0.0 }
0x2176   : > { %4555 = vadd.xlane.f32.xlu0 %v4554_v16  ;;  %v4510_v54 = vpop.xlane.xlu0 %4509  ;;  %v4557_v57 = vsel %vm4177_vm10, %v4549_v40, 0.0 }
0x2177   : > { %v4514_v24 = vmul.f32 %v7050_v60, %v4510_v54  ;;  %4558 = vadd.xlane.f32.xlu1 %v4557_v57 }
0x2179   : > { %v4534_v51 = vrot.slane %v4514_v24, %v6337_v5 }
0x217b   : > { %v4550_v30 = vmul.f32 %v4534_v51, %v4176_v12 }
0x217d   : > { %v4560_v48 = vsel %vm4177_vm10, %v4550_v30, 0.0 }
0x217e   : > { %4561 = vadd.xlane.f32.xlu0 %v4560_v48 }
0x21fc   : > { %v4553_v37 = vpop.xlane.xlu1 %4552 }
0x21fd   : > { %v4563_v42 = vadd.f32 %v4553_v37, %v4511_v15 }
0x21ff   : > { %v4567_v34 = vmul.f32 %v7032_v58, %v4563_v42 }
0x2201   : > { %v7120_v39 = vadd.f32 %v4571_v59, %v4567_v34 }
0x2203   : > { %v4556_v31 = vpop.xlane.xlu0 %4555  ;;  %v4583_v17 = vrot.slane %v7120_v39, %v6337_v5  ;;  %5932 = vtanh.f32 %v7120_v39 }
0x2204   : > { %v4564_v23 = vadd.f32 %v4556_v31, %v4512_v29  ;;  %v4559_v19 = vpop.xlane.xlu1 %4558 }
0x2205   : > { %v4565_v6 = vadd.f32 %v4559_v19, %v4513_v10 }
0x2206   : > { %v4568_v41 = vmul.f32 %v7036_v61, %v4564_v23 }
0x2207   : > { %v4569_v27 = vmul.f32 %v7039_v35, %v4565_v6 }
0x2208   : > { %v7118_v53 = vadd.f32 %v4571_v59, %v4568_v41 }
0x2209   : > { %v7122_v12 = vadd.f32 %v4571_v59, %v4569_v27 }
0x220a   : > { %v4587_v11 = vrot.slane %v7118_v53, %v6337_v5  ;;  %5934 = vtanh.f32 %v7118_v53 }
0x220b   : > { %v4562_v36 = vpop.xlane.xlu0 %4561  ;;  %v4591_v61 = vrot.slane %v7122_v12, %v6337_v5  ;;  %5936 = vtanh.f32 %v7122_v12 }
0x220c   : > { %v4566_v18 = vadd.f32 %v4562_v36, %v4514_v24  ;;  %v4596_v8 = vsel %vm948_vm4, %v4587_v11, %v4583_v17 }
0x220d   : > { %v4597_v50 = vsel %vm949_vm5, %v4591_v61, %v4596_v8 }
0x220e   : > { %v4570_v58 = vmul.f32 %v7050_v60, %v4566_v18 }
0x2210   : > { %v7131_v35 = vadd.f32 %v4571_v59, %v4570_v58 }
0x2212   : > { %v4595_v47 = vrot.slane %v7131_v35, %v6337_v5  ;;  %5938 = vtanh.f32 %v7131_v35 }
0x2214   : > { %v4598_v15 = vsel %vm951_vm6, %v4595_v47, %v4597_v50 }
0x2215   : > { %v4600_v1 = vsel %vm4177_vm10, %v4598_v15, -inf }
0x2216   : > { %4601 = vmax.xlane.f32.xlu1 %v4600_v1 }
0x22a3   : > { %v4602_v2 = vpop.xlane.xlu1 %4601 }
0x22a4   : > { %v4607_v60 = vrot.slane %v4602_v2, %v6440_v25  ;;  %v4611_v26 = vrot.slane %v4602_v2, %v6443_v22  ;;  %v4615_v38 = vrot.slane %v4602_v2, %v6458_v32  ;;  %v4619_v10 = vrot.slane %v4602_v2, %v6446_v4 }
0x22a6   : > { %vm4625_vm0 = vcmp.ge.f32.partialorder %v7118_v53, %v4611_v26  ;;  %vm4624_vm7 = vcmp.ge.f32.partialorder %v7120_v39, %v4607_v60  ;;  %vm4626_vm11 = vcmp.ge.f32.partialorder %v7122_v12, %v4615_v38  ;;  %vm4627_vm13 = vcmp.ge.f32.partialorder %v7131_v35, %v4619_v10 }
0x22a7   : > { %v4629_v29 = vsel %vm4625_vm0, %v6448_v9, 4  ;;  %v4628_v7 = vsel %vm4624_vm7, %v6448_v9, 4  ;;  %v4630_v63 = vsel %vm4626_vm11, %v6448_v9, 4  ;;  %v4631_v22 = vsel %vm4627_vm13, %v6448_v9, 4 }
0x22a8   : > { %4636 = vperm.xlu1 %5861, %v4629_v29   ;;  %4633 = vperm.xlu0 %5862, %v4628_v7   ;;  %v2554_v35 = vsel %vm867_vm2, %v6673_v43, 0.0  ;;  %vm4816_vm0 = vcmask 25600  }
0x22ac   : > { %4639 = vperm.xlu1 %5861, %v4630_v63   ;;  %v2547_v63 = vsel %vm867_vm2, %v6671_v44, 0.0 }
0x22b0   : > { %4642 = vperm.xlu1 %5861, %v4631_v22  }
0x2327   : > { %v4637_v32 = vpop.permute.xlu1 %4636  ;;  %v4634_v3 = vpop.permute.xlu0 %4633 }
0x2328   : > { %v4651_v40 = vrot.slane %v4637_v32, %v6337_v5  ;;  %v4647_v16 = vrot.slane %v4634_v3, %v6337_v5  ;;  %v2548_v32 = vrot.slane %v2547_v63, 4  ;;  %v5933_v3 = vpop.eup %5932 }
0x232a   : > { %v4660_v57 = vsel %vm948_vm4, %v4651_v40, %v4647_v16  ;;  %v5935_v16 = vpop.eup %5934 }
0x232b   : > { %v4640_v21 = vpop.permute.xlu1 %4639 }
0x232c   : > { %v4655_v4 = vrot.slane %v4640_v21, %v6337_v5 }
0x232e   : > { %v4661_v51 = vsel %vm949_vm5, %v4655_v4, %v4660_v57 }
0x232f   : > { %v4643_v54 = vpop.permute.xlu1 %4642 }
0x2330   : > { %v4659_v24 = vrot.slane %v4643_v54, %v6337_v5  ;;  %v5937_v54 = vpop.eup %5936 }
0x2332   : > { %v4662_v30 = vsel %vm951_vm6, %v4659_v24, %v4661_v51 }
0x2333   : > { %v4663_v9 = vsel %vm4177_vm10, %v4662_v30, 2147483647  ;;  %v2561_v30 = vsel %vm867_vm2, %v6679_v14, 0.0 }
0x2334   : > { %v4665_v48 = vshra.s32 %v4663_v9, 16  ;;  %v4664_v42 = vand.u32 65535, %v4663_v9 }
0x2336   : > { %v4667_v37 = vcvt.s32.f32 %v4665_v48  ;;  %v4666_v23 = vcvt.s32.f32 %v4664_v42  ;;  %v4795_v48 = vrot.slane %v5933_v3, %v6337_v5 }
0x2338   : > { %4668 = vmin.xlane.f32.xlu0 %v4667_v37 }
0x23c5   : > { %v4669_v31 = vpop.xlane.xlu0 %4668 }
0x23c6   : > { %vm4670_vm14 = vcmp.eq.f32.partialorder %v4667_v37, %v4669_v31  ;;  %v4675_v6 = vcvt.f32.s32 %v4669_v31  ;;  %v5939_v37 = vpop.eup %5938 }
0x23c7   : > { %v4671_v19 = vsel %vm4670_vm14, %v4666_v23, inf  ;;  %v4807_v20 = vrot.slane %v5939_v37, %v6337_v5 }
0x23c8   : > { %4672 = vmin.xlane.f32.xlu1 %v4671_v19  ;;  %v4676_v41 = vshll.u32 %v4675_v6, 16  ;;  %v4799_v6 = vrot.slane %v5935_v16, %v6337_v5 }
0x2455   : > { %v4673_v34 = vpop.xlane.xlu1 %4672 }
0x2456   : > { %v4674_v59 = vcvt.f32.s32 %v4673_v34  ;;  %v4803_v34 = vrot.slane %v5937_v54, %v6337_v5 }
0x2458   : > { %v4677_v27 = vadd.s32 %v4676_v41, %v4674_v59  ;;  %v2562_v59 = vrot.slane %v2561_v30, 4 }
0x245a   : > { %vm4678_vm4 = vcmp.eq.s32.totalorder %v6330_v0, %v4677_v27 }
0x245b   : > { %v5414_v36 = vsel %vm4678_vm4, 1.0, %v6024_v33 }
0x245c   : > { %vm4681_vm5 = vcmp.gt.f32.partialorder %v5414_v36, 0.0  ;;  %v4713_v7 = vrot.slane %v5414_v36, %v6492_v62 }
0x245d   : > { %v4682_v11 = vsel %vm4681_vm5, -3e+38, %v4598_v15 }
0x245e   : > { %v4683_v18 = vsel %vm4177_vm10, %v4682_v11, -inf  ;;  %v4714_v22 = vcombine.high %v4713_v7, %v4713_v7  ;;  %v4721_v12 = vrot.slane %v4713_v7, %v6492_v62 }
0x245f   : > { %4684 = vmax.xlane.f32.xlu0 %v4683_v18 }
0x2460   : > { %v4728_v4 = vrot.slane %v4714_v22, %v6492_v62  ;;  %v4729_v9 = vcombine.high %v4721_v12, %v4721_v12 }
0x2462   : > { %v4730_v41 = vcombine.high %v4728_v4, %v4728_v4 }
0x24ec   : > { %v4685_v17 = vpop.xlane.xlu0 %4684 }
0x24ed   : > { %vm4686_vm6 = vcmp.ge.f32.partialorder %v4682_v11, %v4685_v17 }
0x24ee   : > { %v4687_v58 = vsel %vm4686_vm6, %v6330_v0, 4 }
0x24ef   : > { %v4688_v61 = vsel %vm4177_vm10, %v4687_v58, 2147483647 }
0x24f0   : > { %v4690_v8 = vshra.s32 %v4688_v61, 16  ;;  %v4689_v50 = vand.u32 65535, %v4688_v61 }
0x24f2   : > { %v4692_v47 = vcvt.s32.f32 %v4690_v8  ;;  %v4691_v2 = vcvt.s32.f32 %v4689_v50  ;;  %v2555_v50 = vrot.slane %v2554_v35, 4 }
0x24f4   : > { %4693 = vmin.xlane.f32.xlu0 %v4692_v47 }
0x2581   : > { %v4694_v1 = vpop.xlane.xlu0 %4693 }
0x2582   : > { %vm4695_vm8 = vcmp.eq.f32.partialorder %v4692_v47, %v4694_v1  ;;  %v4700_v26 = vcvt.f32.s32 %v4694_v1  ;;  %v2563_v1 = vadd.f32 %v2562_v59, %v2561_v30 }
0x2583   : > { %v4696_v60 = vsel %vm4695_vm8, %v4691_v2, inf  ;;  %v4119_v2 = vsel %vm4083_vm12, %v6970_v45, 0.0 }
0x2584   : > { %4697 = vmin.xlane.f32.xlu0 %v4696_v60  ;;  %v4701_v38 = vshll.u32 %v4700_v26, 16  ;;  %v4112_v26 = vsel %vm4083_vm12, %v6968_v56, 0.0 }
0x2611   : > { %v4698_v15 = vpop.xlane.xlu0 %4697 }
0x2612   : > { %v4699_v29 = vcvt.f32.s32 %v4698_v15  ;;  %v2556_v15 = vadd.f32 %v2555_v50, %v2554_v35 }
0x2614   : > { %v4702_v10 = vadd.s32 %v4701_v38, %v4699_v29  ;;  %v4120_v38 = vrot.slane %v4119_v2, 4  ;;  %v2564_v29 = vrot.slane %v2563_v1, 2  ;;  %v2557_v22 = vrot.slane %v2556_v15, 2 }
0x2616   : > { %vm4703_vm10 = vcmp.eq.s32.totalorder %v6330_v0, %v4702_v10  ;;  %v2549_v0 = vadd.f32 %v2548_v32, %v2547_v63  ;;  %v4113_v10 = vrot.slane %v4112_v26, 4  ;;  %v4133_v63 = vsel %vm4083_vm12, %v6985_v46, 0.0 }
0x2617   : > { %v5415_v39 = vsel %vm4703_vm10, 1.0, %v6024_v33  ;;  %v4134_v32 = vrot.slane %v4133_v63, 4  ;;  %v2558_v16 = vadd.f32 %v2557_v22, %v2556_v15  ;;  %v2519_v15 = vsel %vm867_vm2, %v6671_v44, -inf }
0x2618   : > { %v4742_v53 = vrot.slane %v5415_v39, %v6492_v62  ;;  %v2550_v47 = vrot.slane %v2549_v0, 2  ;;  %v4121_v39 = vadd.f32 %v4120_v38, %v4119_v2  ;;  %v4091_v2 = vsel %vm4083_vm12, %v6970_v45, -inf }
0x2619   : > { %v2559_v37 = vrot.slane %v2558_v16, 1  ;;  %v4084_v38 = vsel %vm4083_vm12, %v6968_v56, -inf  ;;  %v2533_v45 = vsel %vm867_vm2, %v6679_v14, -inf }
0x261a   : > { %v4743_v21 = vcombine.high %v4742_v53, %v4742_v53  ;;  %v4750_v40 = vrot.slane %v4742_v53, %v6492_v62  ;;  %v4122_v35 = vrot.slane %v4121_v39, 2  ;;  %v2534_v56 = vrot.slane %v2533_v45, 4 }
0x261c   : > { %v4757_v57 = vrot.slane %v4743_v21, %v6492_v62  ;;  %v4758_v24 = vcombine.high %v4750_v40, %v4750_v40  ;;  %v4763_v51 = vrot.slane %v4750_v40, %v6440_v25  ;;  %v4114_v21 = vadd.f32 %v4113_v10, %v4112_v26 }
0x261d   : > { %v4123_v30 = vadd.f32 %v4122_v35, %v4121_v39  ;;  %v4092_v26 = vrot.slane %v4091_v2, 4 }
0x261e   : > { %v4780_v42 = vsel %vm1736_vm15, %v4721_v12, %v4763_v51  ;;  %v4771_v31 = vrot.slane %v4758_v24, %v6440_v25  ;;  %v4767_v23 = vrot.slane %v4757_v57, %v6440_v25  ;;  %v4759_v19 = vcombine.high %v4757_v57, %v4757_v57 }
0x261f   : > { %5774 = vmatmul.mubr.msk.f32.vlgmr.msra.gmra.mrb[46].mxu1 %vm4284_vm3, %v4780_v42  ;;  %v4812_v62 = vmul.f32 %v4795_v48, %v4780_v42  ;;  %v2565_v12 = vadd.f32 %v2564_v29, %v2563_v1  ;;  %v4115_v57 = vrot.slane %v4114_v21, 2 }
0x2620   : > { %5777 = vmatpush3.msk.msra.mxu1 %vm1751_vm9, %v4484_v55  ;;  %v4782_v27 = vsel %vm1736_vm15, %v4729_v9, %v4771_v31  ;;  %5778 = vmatprep.mubr.msk.f32.mxu1 %vm6025_vm1, %v6024_v33  ;;  %v4781_v36 = vsel %vm1736_vm15, %v4728_v4, %v4767_v23  ;;  %v4775_v11 = vrot.slane %v4759_v19, %v6440_v25  ;;  %v2568_v55 = vsel %vm867_vm2, %v6677_v52, 0.0 }
0x2621   : > { %5784 = vmatmul.mubr.msk.f32.vlgmr.msra.gmra.mrb[46].mxu0 %vm4284_vm3, %v4782_v27  ;;  %5786 = vmatprep.subr.mxu1 %v6024_v33  ;;  %v4817_v18 = vsel %vm4816_vm0, %v4812_v62, 0.0  ;;  %v4813_v17 = vmul.f32 %v4799_v6, %v4781_v36  ;;  %v4814_v58 = vmul.f32 %v4803_v34, %v4782_v27  ;;  %v2569_v5 = vrot.slane %v2568_v55, 4 }
0x2622   : > { %4818 = vadd.xlane.f32.xlu1 %v4817_v18  ;;  %v4783_v61 = vsel %vm1736_vm15, %v4730_v41, %v4775_v11  ;;  %v4135_v4 = vadd.f32 %v4134_v32, %v4133_v63  ;;  %v2566_v51 = vrot.slane %v2565_v12, 1  ;;  %v4116_v42 = vadd.f32 %v4115_v57, %v4114_v21 }
0x2623   : > { %5779 = vmatmul.mubr.msk.f32.vlgmr.msra.gmra.mrb[72].mxu1 %vm4284_vm3, %v4781_v36  ;;  %v4820_v25 = vsel %vm4816_vm0, %v4813_v17, 0.0  ;;  %v4815_v8 = vmul.f32 %v4807_v20, %v4783_v61  ;;  %v4823_v60 = vsel %vm4816_vm0, %v4814_v58, 0.0  ;;  %v2570_v7 = vadd.f32 %v2569_v5, %v2568_v55 }
0x2624   : > { %5787 = vmatpush3.msk.msra.mxu1 %vm1751_vm9, %v4486_v28  ;;  %4821 = vadd.xlane.f32.xlu0 %v4820_v25  ;;  %v2551_v28 = vadd.f32 %v2550_v47, %v2549_v0  ;;  %v4136_v9 = vrot.slane %v4135_v4, 2  ;;  %v2567_v23 = vadd.f32 %v2566_v51, %v2565_v12  ;;  %v2560_v6 = vadd.f32 %v2559_v37, %v2558_v16 }
0x2625   : > { %5788 = vmatprep.mubr.msk.f32.mxu1 %vm6025_vm1, %v6024_v33  ;;  %v4826_v49 = vsel %vm4816_vm0, %v4815_v8, 0.0  ;;  %v4126_v33 = vsel %vm4083_vm12, %v6981_v13, 0.0  ;;  %v2571_v3 = vrot.slane %v2570_v7, 2  ;;  %v4124_v34 = vrot.slane %v4123_v30, 1 }
0x2626   : > { %4824 = vadd.xlane.f32.xlu1 %v4823_v60  ;;  %v2552_v53 = vrot.slane %v2551_v28, 1  ;;  %v4127_v40 = vrot.slane %v4126_v33, 4  ;;  %v4137_v62 = vadd.f32 %v4136_v9, %v4135_v4  ;;  %v2578_v59 = vmul.f32 0.125, %v2567_v23 }
0x2627   : > { %5789 = vmatmul.mubr.msk.f32.vlgmr.msra.gmra.mrb[74].mxu1 %vm4284_vm3, %v4783_v61  ;;  %v2572_v0 = vadd.f32 %v2571_v3, %v2570_v7  ;;  %v4117_v36 = vrot.slane %v4116_v42, 1  ;;  %v2577_v11 = vmul.f32 0.125, %v2560_v6  ;;  %v4125_v18 = vadd.f32 %v4124_v34, %v4123_v30 }
0x2628   : > { %4827 = vadd.xlane.f32.xlu0 %v4826_v49  ;;  %v2553_v54 = vadd.f32 %v2552_v53, %v2551_v28  ;;  %v4128_v24 = vadd.f32 %v4127_v40, %v4126_v33  ;;  %v4138_v17 = vrot.slane %v4137_v62, 1  ;;  %v2526_v5 = vsel %vm867_vm2, %v6673_v43, -inf }
0x2629   : > { %v2573_v19 = vrot.slane %v2572_v0, 1  ;;  %v4118_v20 = vadd.f32 %v4117_v36, %v4116_v42  ;;  %v4142_v61 = vmul.f32 0.25, %v4125_v18  ;;  %v2527_v60 = vrot.slane %v2526_v5, 4 }
0x262a   : > { %v2576_v48 = vmul.f32 0.125, %v2553_v54  ;;  %v4129_v31 = vrot.slane %v4128_v24, 2  ;;  %v4139_v25 = vadd.f32 %v4138_v17, %v4137_v62  ;;  %v2540_v49 = vsel %vm867_vm2, %v6677_v52, -inf }
0x262b   : > { %v2574_v27 = vadd.f32 %v2573_v19, %v2572_v0  ;;  %v4141_v8 = vmul.f32 0.25, %v4118_v20  ;;  %v4105_v28 = vsel %vm4083_vm12, %v6985_v46, -inf  ;;  %v2528_v29 = vmax.f32 %v2526_v5, %v2527_v60 }
0x262c   : > { %v4130_v41 = vadd.f32 %v4129_v31, %v4128_v24  ;;  %v4144_v50 = vmul.f32 0.25, %v4139_v25  ;;  %v2541_v7 = vrot.slane %v2540_v49, 4  ;;  %v4093_v43 = vmax.f32 %v4091_v2, %v4092_v26 }
0x262d   : > { %v2579_v58 = vmul.f32 0.125, %v2574_v27  ;;  %v4106_v10 = vrot.slane %v4105_v28, 4  ;;  %v2520_v63 = vrot.slane %v2519_v15, 4  ;;  %v4085_v33 = vrot.slane %v4084_v38, 4 }
0x262e   : > { %v4131_v55 = vrot.slane %v4130_v41, 1  ;;  %v4098_v52 = vsel %vm4083_vm12, %v6981_v13, -inf  ;;  %v2529_v46 = vrot.slane %v2528_v29, 2  ;;  %v2542_v39 = vmax.f32 %v2540_v49, %v2541_v7 }
0x262f   : > { %v4094_v44 = vrot.slane %v4093_v43, 2  ;;  %v4107_v32 = vmax.f32 %v4105_v28, %v4106_v10  ;;  %v2521_v53 = vmax.f32 %v2519_v15, %v2520_v63  ;;  %v4086_v3 = vmax.f32 %v4084_v38, %v4085_v33 }
0x2630   : > { %v4132_v47 = vadd.f32 %v4131_v55, %v4130_v41  ;;  %v4099_v21 = vrot.slane %v4098_v52, 4  ;;  %v2530_v16 = vmax.f32 %v2528_v29, %v2529_v46  ;;  %v2543_v35 = vrot.slane %v2542_v39, 2 }
0x2631   : > { %v4095_v14 = vmax.f32 %v4093_v43, %v4094_v44  ;;  %v4108_v4 = vrot.slane %v4107_v32, 2  ;;  %v2522_v54 = vrot.slane %v2521_v53, 2  ;;  %v2535_v0 = vmax.f32 %v2533_v45, %v2534_v56 }
0x2632   : > { %v4143_v1 = vmul.f32 0.25, %v4132_v47  ;;  %v4087_v57 = vrot.slane %v4086_v3, 2  ;;  %v4100_v24 = vmax.f32 %v4098_v52, %v4099_v21  ;;  %v2544_v30 = vmax.f32 %v2542_v39, %v2543_v35 }
0x2633   : > { %v4109_v9 = vmax.f32 %v4107_v32, %v4108_v4  ;;  %v4096_v37 = vrot.slane %v4095_v14, 1  ;;  %v2523_v42 = vmax.f32 %v2521_v53, %v2522_v54  ;;  %v2536_v31 = vrot.slane %v2535_v0, 2 }
0x2634   : > { %v4088_v19 = vmax.f32 %v4086_v3, %v4087_v57  ;;  %v4101_v62 = vrot.slane %v4100_v24, 2  ;;  %vm5137_vm1 = vcmask 254976   ;;  %vm5223_vm15 = vcmask 516096  }
0x2635   : > { %v4097_v41 = vmax.f32 %v4095_v14, %v4096_v37  ;;  %v4110_v27 = vrot.slane %v4109_v9, 1  ;;  %v2537_v36 = vmax.f32 %v2535_v0, %v2536_v31 }
0x2636   : > { %v4102_v17 = vmax.f32 %v4100_v24, %v4101_v62  ;;  %v4089_v55 = vrot.slane %v4088_v19, 1 }
0x2637   : > { %2584 = vrot.lane.b32.xlu1 %v2576_v48, %s6029_s30  ;;  %v2531_v48 = vrot.slane %v2530_v16, 1  ;;  %v4111_v47 = vmax.f32 %v4109_v9, %v4110_v27 }
0x2638   : > { %v4090_v26 = vmax.f32 %v4088_v19, %v4089_v55  ;;  %v4103_v49 = vrot.slane %v4102_v17, 1 }
0x2639   : > { %v2532_v34 = vmax.f32 %v2530_v16, %v2531_v48 }
0x263a   : > { %v4104_v10 = vmax.f32 %v4102_v17, %v4103_v49 }
0x263b   : > { %2588 = vrot.lane.b32.xlu1 %v2578_v59, %s6029_s30  ;;  %v2545_v59 = vrot.slane %v2544_v30, 1 }
0x263e   : > { %2586 = vrot.lane.b32.xlu0 %v2577_v11, %s6029_s30  ;;  %v2524_v11 = vrot.slane %v2523_v42, 1 }
0x263f   : > { %2590 = vrot.lane.b32.xlu1 %v2579_v58, %s6029_s30 }
0x2642   : > { %4151 = vrot.lane.b32.xlu0 %v4142_v61, %s6029_s30 }
0x2643   : > { %4149 = vrot.lane.b32.xlu1 %v4141_v8, %s6029_s30  ;;  %v2546_v8 = vmax.f32 %v2544_v30, %v2545_v59 }
0x2646   : > { %4155 = vrot.lane.b32.xlu0 %v4144_v50, %s6029_s30  ;;  %v2525_v50 = vmax.f32 %v2523_v42, %v2524_v11 }
0x2647   : > { %4153 = vrot.lane.b32.xlu1 %v4143_v1, %s6029_s30  ;;  %v2538_v1 = vrot.slane %v2537_v36, 1 }
0x2649   : > { %v2539_v43 = vmax.f32 %v2537_v36, %v2538_v1 }
0x26af   : > { %v7247_v22 = vpop.xlane.xlu1 %4818 }
0x26b1   : > { %v7249_v12 = vpop.xlane.xlu0 %4821 }
0x26b3   : > { %v4825_v40 = vpop.xlane.xlu1 %4824 }
0x26b5   : > { %v7251_v13 = vpop.xlane.xlu0 %4827 }
0x26b7   : > { %v2585_v51 = vpop.permute.xlu1 %2584 }
0x26b8   : > { %v2596_v38 = vsel %vm867_vm2, %v2525_v50, %v2585_v51 }
0x26b9   : > { %v2587_v23 = vpop.permute.xlu0 %2586 }
0x26ba   : > { %v2597_v58 = vsel %vm867_vm2, %v2532_v34, %v2587_v23 }
0x26bb   : > { %v2589_v6 = vpop.permute.xlu1 %2588 }
0x26bc   : > { %v2598_v45 = vsel %vm867_vm2, %v2539_v43, %v2589_v6 }
0x26bd   : > { %v4152_v18 = vpop.permute.xlu0 %4151 }
0x26be   : > { %v4162_v20 = vsel %vm867_vm2, %v4097_v41, %v4152_v18 }
0x26bf   : > { %v7255_v61 = vadd.f32 %v4162_v20, %v2597_v58  ;;  %v2591_v25 = vpop.permute.xlu1 %2590 }
0x26c0   : > { %v2599_v2 = vsel %vm867_vm2, %v2546_v8, %v2591_v25 }
0x26c1   : > { %v4156_v5 = vpop.permute.xlu0 %4155 }
0x26c2   : > { %v4164_v60 = vsel %vm867_vm2, %v4111_v47, %v4156_v5 }
0x26c3   : > { %v7259_v28 = vadd.f32 %v4164_v60, %v2599_v2  ;;  %v4150_v15 = vpop.permute.xlu1 %4149 }
0x26c4   : > { %v4161_v29 = vsel %vm867_vm2, %v4090_v26, %v4150_v15 }
0x26c5   : > { %v7263_v7 = vadd.f32 %v4161_v29, %v2596_v38 }
0x26c7   : > { %v4154_v63 = vpop.permute.xlu1 %4153 }
0x26c8   : > { %v4163_v33 = vsel %vm867_vm2, %v4104_v10, %v4154_v63 }
0x26c9   : > { %v7267_v52 = vadd.f32 %v4163_v33, %v2598_v45 }
0x26f2   : > { %v4901_v46 = vpop.f32.mrb[46].mxu1 }
0x26f3   : > { %v5133_v39 = vmul.f32 %v4901_v46, %v7247_v22  ;;  %v5775_v44 = vpop.f32.mrb[47].mxu1 }
0x26f4   : > { %v5053_v32 = vpop.f32.mrb[46].mxu0 }
0x26f5   : > { %v5138_v53 = vsel %vm5137_vm1, %v5133_v39, -inf  ;;  %v5166_v56 = vsel %vm5137_vm1, %v5133_v39, 0.0  ;;  %v5135_v3 = vmul.f32 %v5053_v32, %v4825_v40  ;;  %v5785_v21 = vpop.f32.mrb[47].mxu0 }
0x26f6   : > { %v5167_v16 = vrot.slane %v5166_v56, 4  ;;  %v4977_v35 = vpop.f32.mrb[72].mxu1  ;;  %v5139_v2 = vrot.slane %v5138_v53, 4 }
0x26f7   : > { %v5152_v14 = vsel %vm5137_vm1, %v5135_v3, -inf  ;;  %v5180_v4 = vsel %vm5137_vm1, %v5135_v3, 0.0  ;;  %v5134_v54 = vmul.f32 %v4977_v35, %v7249_v12  ;;  %v5780_v0 = vpop.f32.mrb[73].mxu1 }
0x26f8   : > { %v5168_v57 = vadd.f32 %v5167_v16, %v5166_v56  ;;  %v5181_v24 = vrot.slane %v5180_v4, 4  ;;  %v5140_v60 = vmax.f32 %v5138_v53, %v5139_v2  ;;  %v5153_v26 = vrot.slane %v5152_v14, 4 }
0x26f9   : > { %v5145_v22 = vsel %vm5137_vm1, %v5134_v54, -inf  ;;  %v5173_v51 = vsel %vm5137_vm1, %v5134_v54, 0.0 }
0x26fa   : > { %v5169_v30 = vrot.slane %v5168_v57, 2  ;;  %v5182_v9 = vadd.f32 %v5181_v24, %v5180_v4  ;;  %v5129_v48 = vpop.f32.mrb[74].mxu1  ;;  %v5174_v40 = vrot.slane %v5173_v51, 4  ;;  %v5146_v49 = vrot.slane %v5145_v22, 4 }
0x26fb   : > { %v5136_v37 = vmul.f32 %v5129_v48, %v7251_v13  ;;  %v5790_v42 = vpop.f32.mrb[75].mxu1  ;;  %v5141_v15 = vrot.slane %v5140_v60, 2  ;;  %v5154_v38 = vmax.f32 %v5152_v14, %v5153_v26 }
0x26fc   : > { %v5170_v31 = vadd.f32 %v5169_v30, %v5168_v57  ;;  %v5183_v23 = vrot.slane %v5182_v9, 2  ;;  %v5175_v19 = vadd.f32 %v5174_v40, %v5173_v51  ;;  %v5147_v29 = vmax.f32 %v5145_v22, %v5146_v49 }
0x26fd   : > { %v5159_v62 = vsel %vm5137_vm1, %v5136_v37, -inf  ;;  %v5187_v12 = vsel %vm5137_vm1, %v5136_v37, 0.0  ;;  %v5142_v10 = vmax.f32 %v5140_v60, %v5141_v15  ;;  %v5155_v63 = vrot.slane %v5154_v38, 2 }
0x26fe   : > { %v5171_v6 = vrot.slane %v5170_v31, 1  ;;  %v5184_v34 = vadd.f32 %v5183_v23, %v5182_v9  ;;  %v5176_v41 = vrot.slane %v5175_v19, 2  ;;  %v5188_v59 = vrot.slane %v5187_v12, 4 }
0x26ff   : > { %v5160_v43 = vrot.slane %v5159_v62, 4  ;;  %v5148_v45 = vrot.slane %v5147_v29, 2  ;;  %v5143_v46 = vrot.slane %v5142_v10, 1  ;;  %v5156_v39 = vmax.f32 %v5154_v38, %v5155_v63 }
0x2700   : > { %v5172_v27 = vadd.f32 %v5171_v6, %v5170_v31  ;;  %v5185_v36 = vrot.slane %v5184_v34, 1  ;;  %v5177_v11 = vadd.f32 %v5176_v41, %v5175_v19  ;;  %v5189_v18 = vadd.f32 %v5188_v59, %v5187_v12 }
0x2701   : > { %v5161_v33 = vmax.f32 %v5159_v62, %v5160_v43  ;;  %v5149_v44 = vmax.f32 %v5147_v29, %v5148_v45  ;;  %v5157_v56 = vrot.slane %v5156_v39, 1  ;;  %v5144_v53 = vmax.f32 %v5142_v10, %v5143_v46 }
0x2702   : > { %v5186_v17 = vadd.f32 %v5185_v36, %v5184_v34  ;;  %v5195_v58 = vmul.f32 0.5, %v5172_v27  ;;  %v5178_v20 = vrot.slane %v5177_v11, 1  ;;  %v5190_v13 = vrot.slane %v5189_v18, 2 }
0x2703   : > { %v5162_v32 = vrot.slane %v5161_v33, 2  ;;  %v5150_v3 = vrot.slane %v5149_v44, 1  ;;  %v5158_v4 = vmax.f32 %v5156_v39, %v5157_v56 }
0x2704   : > { %5203 = vrot.lane.b32.xlu1 %v5195_v58, %s6029_s30  ;;  %v5179_v55 = vadd.f32 %v5178_v20, %v5177_v11  ;;  %v5191_v25 = vadd.f32 %v5190_v13, %v5189_v18  ;;  %v5197_v8 = vmul.f32 0.5, %v5186_v17 }
0x2705   : > { %v5163_v21 = vmax.f32 %v5161_v33, %v5162_v32  ;;  %v5151_v57 = vmax.f32 %v5149_v44, %v5150_v3 }
0x2706   : > { %v5192_v47 = vrot.slane %v5191_v25, 1  ;;  %v5196_v50 = vmul.f32 0.5, %v5179_v55 }
0x2707   : > { %v5164_v54 = vrot.slane %v5163_v21, 1 }
0x2708   : > { %5207 = vrot.lane.b32.xlu1 %v5197_v8, %s6029_s30  ;;  %v5193_v1 = vadd.f32 %v5192_v47, %v5191_v25  ;;  %5205 = vrot.lane.b32.xlu0 %v5196_v50, %s6029_s30 }
0x270a   : > { %v5198_v5 = vmul.f32 0.5, %v5193_v1 }
0x270c   : > { %5209 = vrot.lane.b32.xlu0 %v5198_v5, %s6029_s30  ;;  %s5959_s30 = sshll.u32 %s6030_s0, 4  ;;  %s5960_s30 = int_to_ptr.vmem [resolvable:$false] %s5959_s30 }
0x270d   : > { %s5961_s28 = scalar_lea.vmem %s5960_s30, 128  ;;  %p5962_p13 = scmp.lt.s32.totalorder %s7303_s16, %s5960_s30 }
0x270e   : > { %p5963_p0 = scmp.lt.s32.totalorder %s5961_s28, %s5955_s20 }
0x2710   : > { %p5964_p1 = por %p5963_p0, %p5962_p13 }
0x2712   : > { %p5965_p2 = pnand %p5964_p1, %p5958_p12 }
0x2776   : > { %v5204_v16 = vpop.permute.xlu1 %5203 }
0x2777   : > { %v5215_v35 = vsel %vm867_vm2, %v5144_v53, %v5204_v16 }
0x2778   : > { %v5219_v14 = vadd.f32 %v5215_v35, %v7263_v7  ;;  %v5165_v7 = vmax.f32 %v5163_v21, %v5164_v54 }
0x277a   : > { %5224 = vst.msk [vmem:[%s441_s29] sm:$0x1] %vm5223_vm15, %v5219_v14  ;;  %v5208_v0 = vpop.permute.xlu1 %5207  ;;  %v5206_v22 = vpop.permute.xlu0 %5205 }
0x277b   : > { %v5217_v24 = vsel %vm867_vm2, %v5158_v4, %v5208_v0  ;;  %v5216_v30 = vsel %vm867_vm2, %v5151_v57, %v5206_v22 }
0x277c   : > { %v5221_v51 = vadd.f32 %v5217_v24, %v7267_v52  ;;  %v5220_v9 = vadd.f32 %v5216_v30, %v7255_v61 }
0x277e   : > { %5226 = vst.msk [vmem:[%s441_s29 + $0x2] sm:$0x1] %vm5223_vm15, %v5221_v51  ;;  %5225 = vst.msk [vmem:[%s441_s29 + $0x1] sm:$0x1] %vm5223_vm15, %v5220_v9  ;;  %v5210_v48 = vpop.permute.xlu0 %5209 }
0x277f   : > { %v5218_v40 = vsel %vm867_vm2, %v5165_v7, %v5210_v48 }
0x2780   : > { %v5222_v61 = vadd.f32 %v5218_v40, %v7259_v28 }
0x2782   : > { %5227 = vst.msk [vmem:[%s441_s29 + $0x3] sm:$0x1] %vm5223_vm15, %v5222_v61 }
0x2783   : > { %5968 = shalt.err (!%p5965_p2)
}
0x2784   : > { %s5969_s26 = scalar_lea.hbm %s7301_s19, 64  ;;  %s5973_s17 = scalar_lea.hbm %s7362_s12, 128 }
0x2785   : > { %p5970_p3 = scmp.ne.s32.totalorder %s7301_s19, %s5969_s26  ;;  %p5974_p8 = scmp.lt.u32.totalorder %s7301_s19, %s7362_s12 }
0x2786   : > { %p5975_p11 = scmp.lt.u32.totalorder %s5973_s17, %s5969_s26  ;;  %p5977_p10 = scmp.lt.u32.totalorder %s5969_s26, %s7301_s19 }
0x2787   : > { %p5971_p4 = pnand %p5970_p3, %p6136_p5 }
0x2788   : > { %p5976_p9 = por %p5975_p11, %p5974_p8 }
0x2789   : > { %p5972_p7 = pneg %p5971_p4 }
0x278a   : > { %p5978_p12 = por %p5977_p10, %p5976_p9 }
0x278c   : > { %p5979_p13 = pnand %p5978_p12, %p5972_p7 }
0x278e   : > { %5982 = shalt.err (!%p5979_p13)
}
0x278f   : > { %s6031_s20 = smov 16   ;;  %s6032_s30 = smov 1  }
0x2790   : > { %5807 = dma.vmem_to_hbm [thread:$0]  (%p6136_p5), %s7303_s16, 64, %s7301_s19, %s7309_s25, %s6031_s20, %s6031_s20, %s6032_s30  }
0x2791 PF: > { %p5819_p0 = scmp.ge.s32.totalorder %s6021_s24, 2  ;;  %s5257_s28 = sand.u32 1, %s6009_s21  }
0x2792   : > { %s5258_s26 = scalar_lea.sflag [#allocation3], %s5257_s28 }
0x2793   : > { %p5814_p1 = pnand %p5819_p0, %p6140_p6 }
0x2795   : > { %6004 = dma.done.wait (!%p5814_p1), %s5258_s26, 64  }
0x2796   : > { %6006 = vsyncadd (!%p5814_p1), %s5258_s26, 4294967232  ;;  %s7369_s29 = sld [smem:[#allocation8_spill]]  ;;  %p23_p2 = scmp.ge.s32.totalorder %s6123_s27, 4  }
0x2797   : > { %s7370_s21 = smov %s6013_s22  ;;  %s7371_s22 = smov %s6017_s23 }
0x2798   : > { %s7373_s24 = smov %s6123_s27  ;;  %25 = sbr.rel (!%p23_p2) target bundleno = 6 (0x6), region = 111 }
0x279c   : > { %s7372_s23 = smov %s7369_s29 }
0x279f   :  { %5263 = vsyncpa [#allocation3], 1 }
0x27a0   :  { %5265 = vsyncpa [#allocation3 + $0x1], 1 }
0x27a1   :  { %5266 = vsyncpa [#allocation4], 1 }
0x27a2   :  { %5268 = vsyncpa [#allocation4 + $0x1], 1 }

</bundles_post_ra>
